<compile_context>
chip_gen: v6e
topology: v6e:2x2x1
jax: 0.10.0
libtpu: 0.0.40
codegen_flags: <defaults>
</compile_context>

<pallas_src>
import functools
import math

import jax
import jax.numpy as jnp
from jax.experimental import pallas as pl
from jax.experimental.pallas import tpu as pltpu


# ----------------------------------------------------------------------------- kernel
def ae_fused_kernel(q0_ref, x_ref, wx_ref, bx_ref, wh_ref, bh_ref, wo_ref, bo_ref,
                    o_ref, *, num_heads, bb, n, num_inds, dim_v, mxu_dtype):
    """Fused AE forward for one batch block of `bb` elements.

    q0_ref : (H, num_inds, ds)      fc_q(I), hoisted + head-split in the wrapper (f32)
    x_ref  : (bb*n, dim_in)         input set, batch/set rows flattened (f32)
    wx_ref : (3*H, dim_in, ds)      per-head weights [mab0.fc_k | mab0.fc_v | mab1.fc_q]
    bx_ref : (3*H, 1, ds)           matching biases (f32)
    wh_ref : (2*H, dim_v, ds)       per-head weights [mab1.fc_k | mab1.fc_v]
    bh_ref : (2*H, 1, ds)           matching biases (f32)
    wo_ref : (2*H, ds, dim_v)       per-head fc_o weights [mab0.fc_o | mab1.fc_o]
    bo_ref : (2, 1, dim_v)          fc_o biases (f32)
    o_ref  : (bb*n, dim_v)          output block
    """
    ds = dim_v // num_heads
    scale = 1.0 / math.sqrt(dim_v)          # reference scales by sqrt(dim_V), not sqrt(ds)

    def mxu(a):                              # MXU operand cast (bf16 normally, f32 in check mode)
        return a.astype(mxu_dtype)

    def project_heads(inp2, w_ref, b_ref, base, nq):
        """Per-head linear projection.  inp2: (bb*nq, in), already in MXU dtype.
        Returns num_heads arrays of shape (bb, nq, ds), f32 (head-grouped layout is
        produced directly by the matmul -> no lane-slice/concat relayouts)."""
        outs = []
        for h in range(num_heads):
            y = jnp.dot(inp2, w_ref[base + h],
                        preferred_element_type=jnp.float32) + b_ref[base + h]
            outs.append(y.reshape(bb, nq, ds))      # leading-dim split: free
        return outs

    def attend(q_heads, k_heads, v_heads, mab_idx, nq):
        """One MAB attention block (ln=False path) in head-grouped layout.
        Returns (bb*nq, dim_v) f32 = O + relu(fc_o(O))."""
        o_heads = []
        proj = jnp.zeros((bb * nq, dim_v), jnp.float32)
        for h in range(num_heads):
            qh, kh, vh = q_heads[h], k_heads[h], v_heads[h]
            # scores: contract last dims directly (no materialized K^T)
            s = jnp.einsum('bqd,bkd->bqk', mxu(qh), mxu(kh),
                           preferred_element_type=jnp.float32) * scale
            s = s - jnp.max(s, axis=-1, keepdims=True)
            p = jnp.exp(s)                                    # EUP
            denom = jnp.sum(p, axis=-1, keepdims=True)
            r = pl.reciprocal(denom, approx=True)             # EUP slot (cheap)
            r = r * (2.0 - denom * r)                         # one Newton step -> near-exact
            a = p * r
            oh = qh + jnp.einsum('bqk,bkd->bqd', mxu(a), mxu(vh),
                                 preferred_element_type=jnp.float32)
            o_heads.append(oh.reshape(bb * nq, ds))           # leading merge: free
            # fc_o folded per head: sum_h O_h @ wo_h == O @ wo^T (no extra un-group)
            proj = proj + jnp.dot(mxu(o_heads[-1]), wo_ref[mab_idx * num_heads + h],
                                  preferred_element_type=jnp.float32)
        o = jnp.concatenate(o_heads, axis=-1)                 # the single head un-group per MAB
        proj = proj + bo_ref[mab_idx]
        return o + jnp.maximum(proj, 0.0)                     # O + relu(fc_o(O)), f32

    dim_in = x_ref.shape[1]
    x2 = mxu(x_ref[...])                                      # (bb*n, dim_in), cast once

    # All X-side projections (mab0.fc_k, mab0.fc_v, mab1.fc_q) share the same operand x2.
    k0 = project_heads(x2, wx_ref, bx_ref, 0 * num_heads, n)
    v0 = project_heads(x2, wx_ref, bx_ref, 1 * num_heads, n)
    q1 = project_heads(x2, wx_ref, bx_ref, 2 * num_heads, n)

    # ---------------- MAB0: queries are the (wrapper-hoisted) projected inducing points
    q0 = [jnp.broadcast_to(q0_ref[h][None], (bb, num_inds, ds)) for h in range(num_heads)]
    h_act = attend(q0, k0, v0, 0, num_inds)                   # (bb*num_inds, dim_v), stays on-chip

    # ---------------- MAB1: queries from X, keys/values from H
    h2 = mxu(h_act)
    k1 = project_heads(h2, wh_ref, bh_ref, 0 * num_heads, num_inds)
    v1 = project_heads(h2, wh_ref, bh_ref, 1 * num_heads, num_inds)

    out2 = attend(q1, k1, v1, 1, n)                           # (bb*n, dim_v)
    o_ref[...] = out2.astype(o_ref.dtype)


# ----------------------------------------------------------------------------- wrapper
def _pick_batch_block(B, N, *, rows_per_step=256, max_rows=2048):
    """Pick the per-step batch block `bb`.

    * each step should feed the MXU >= ~256 rows (bb*N) for the projection matmuls
      (v6e/v7x MXU M dimension; also >> the 128 rows a v5e MXU wants);
    * >=2 grid steps are preferred ONLY when each step still meets that row target
      (v7x megacore sharding via "parallel" semantics);
    * bb*N is capped (max_rows) so live intermediates stay far inside VMEM even on
      v7x's 64 MiB per-TC budget;
    * sub-batch blocks keep the row dim 8-aligned (sublane tile)."""
    if B <= 1:
        return 1
    divisors = [d for d in range(1, B + 1) if B % d == 0]
    ok = [d for d in divisors if d == B or (d * N) % 8 == 0]
    multi = [d for d in ok if d < B and rows_per_step <= d * N <= max_rows]
    if multi:
        return min(multi)                 # most grid steps that still meet the row target
    fits = [d for d in ok if d * N <= max_rows] or [min(ok)]
    return max(fits)                      # otherwise: fewest steps / largest matmul M


def ae_forward(X, I, mab0_params, mab1_params, num_heads, mxu_dtype=jnp.bfloat16):
    """AE.forward: H = mab0(I (broadcast), X); return mab1(X, H).  One fused kernel."""
    B, N, dim_in = X.shape
    wq0, bq0, wk0, bk0, wv0, bv0, wo0, bo0 = mab0_params
    wq1, bq1, wk1, bk1, wv1, bv1, wo1, bo1 = mab1_params
    dim_V = wq0.shape[0]
    num_inds = I.shape[1]
    assert dim_V % num_heads == 0
    ds = dim_V // num_heads

    # ---- grid-invariant prep (tiny one-time XLA ops, outside the grid) -------------
    # fc_q(I) is constant across batch/grid: hoist it and hand it over head-split.
    q0 = I[0] @ wq0.T + bq0                                           # (num_inds, dim_V)
    q0_heads = q0.reshape(num_inds, num_heads, ds).transpose(1, 0, 2).astype(jnp.float32)

    def heads_in(w):          # torch (out, in) -> per-head (H, in, ds)
        return w.T.reshape(w.shape[1], num_heads, ds).transpose(1, 0, 2)

    def heads_bias(b):        # (1, dim_V) -> (H, 1, ds)
        return b.reshape(num_heads, 1, ds)

    def heads_out(w):         # fc_o (dim_V, dim_V) -> (H, ds, dim_V)
        return w.T.reshape(num_heads, ds, dim_V)

    # Pack the 16 weight/bias tensors into 6 stacked slabs; MXU weights pre-cast to bf16.
    wx = jnp.concatenate([heads_in(wk0), heads_in(wv0), heads_in(wq1)], 0).astype(mxu_dtype)
    bx = jnp.concatenate([heads_bias(bk0), heads_bias(bv0), heads_bias(bq1)], 0).astype(jnp.float32)
    wh = jnp.concatenate([heads_in(wk1), heads_in(wv1)], 0).astype(mxu_dtype)
    bh = jnp.concatenate([heads_bias(bk1), heads_bias(bv1)], 0).astype(jnp.float32)
    wo = jnp.concatenate([heads_out(wo0), heads_out(wo1)], 0).astype(mxu_dtype)
    bo = jnp.stack([bo0, bo1], 0).astype(jnp.float32)                 # (2, 1, dim_V)

    bb = _pick_batch_block(B, N)
    grid = (B // bb,)

    x2d = X.reshape(B * N, dim_in)        # wrapper-side flatten (metadata-only in XLA)

    kernel = functools.partial(ae_fused_kernel, num_heads=num_heads, bb=bb, n=N,
                               num_inds=num_inds, dim_v=dim_V, mxu_dtype=mxu_dtype)

    def _const_index_map(ndim):
        def im(b):
            return (0,) * ndim
        return im

    def const_spec(a):        # full array, resident across the whole grid
        return pl.BlockSpec(a.shape, _const_index_map(a.ndim))

    out2d = pl.pallas_call(
        kernel,
        out_shape=jax.ShapeDtypeStruct((B * N, dim_V), jnp.float32),
        grid=grid,
        in_specs=[
            const_spec(q0_heads),
            pl.BlockSpec((bb * N, dim_in), lambda b: (b, 0)),
            const_spec(wx), const_spec(bx),
            const_spec(wh), const_spec(bh),
            const_spec(wo), const_spec(bo),
        ],
        out_specs=pl.BlockSpec((bb * N, dim_V), lambda b: (b, 0)),
        compiler_params=pltpu.CompilerParams(dimension_semantics=("parallel",)),
    )(q0_heads, x2d, wx, bx, wh, bh, wo, bo)

    return out2d.reshape(B, N, dim_V)


# ----------------------------------------------------------------------------- reference (pure JAX)
def mab_ref(Q, K, params, num_heads):
    wq, bq, wk, bk, wv, bv, wo, bo = params
    dim_V = wq.shape[0]
    Qp = Q @ wq.T + bq
    Kp = K @ wk.T + bk
    Vp = K @ wv.T + bv
    ds = dim_V // num_heads
    B = Q.shape[0]
    Q_ = jnp.concatenate([Qp[..., h * ds:(h + 1) * ds] for h in range(num_heads)], 0)
    K_ = jnp.concatenate([Kp[..., h * ds:(h + 1) * ds] for h in range(num_heads)], 0)
    V_ = jnp.concatenate([Vp[..., h * ds:(h + 1) * ds] for h in range(num_heads)], 0)
    A = jax.nn.softmax(jnp.einsum('bqd,bkd->bqk', Q_, K_) / math.sqrt(dim_V), axis=2)
    O_ = Q_ + jnp.einsum('bqk,bkd->bqd', A, V_)
    O = jnp.concatenate([O_[h * B:(h + 1) * B] for h in range(num_heads)], 2)
    return O + jax.nn.relu(O @ wo.T + bo)


def ae_ref(X, I, mab0_params, mab1_params, num_heads):
    B = X.shape[0]
    H = mab_ref(jnp.broadcast_to(I, (B,) + I.shape[1:]), X, mab0_params, num_heads)
    return mab_ref(X, H, mab1_params, num_heads)


# ----------------------------------------------------------------------------- param init (matches torch defaults)
def init_linear(key, out_f, in_f):
    k1, k2 = jax.random.split(key)
    bound = 1.0 / math.sqrt(in_f)
    w = jax.random.uniform(k1, (out_f, in_f), jnp.float32, -bound, bound)
    b = jax.random.uniform(k2, (1, out_f), jnp.float32, -bound, bound)
    return w, b


def init_mab(key, dim_Q, dim_K, dim_V):
    ks = jax.random.split(key, 4)
    wq, bq = init_linear(ks[0], dim_V, dim_Q)
    wk, bk = init_linear(ks[1], dim_V, dim_K)
    wv, bv = init_linear(ks[2], dim_V, dim_K)
    wo, bo = init_linear(ks[3], dim_V, dim_V)
    return (wq, bq, wk, bk, wv, bv, wo, bo)


# ----------------------------------------------------------------------------- main
if __name__ == "__main__":
    # AE(dim_in, dim_out, num_heads, num_inds, ln=False)
    B, N = 2, 16
    dim_in, dim_out, num_heads, num_inds = 16, 32, 4, 8

    key = jax.random.PRNGKey(0)
    k_x, k_i, k_m0, k_m1 = jax.random.split(key, 4)

    X = jax.random.normal(k_x, (B, N, dim_in), jnp.float32)

    # I : nn.Parameter(1, num_inds, dim_out), xavier_uniform_
    bound = math.sqrt(6.0 / (num_inds + dim_out))
    I = jax.random.uniform(k_i, (1, num_inds, dim_out), jnp.float32, -bound, bound)

    mab0_params = init_mab(k_m0, dim_out, dim_in, dim_out)   # MAB(dim_out, dim_in, dim_out)
    mab1_params = init_mab(k_m1, dim_in, dim_out, dim_out)   # MAB(dim_in, dim_out, dim_out)

    ref = ae_ref(X, I, mab0_params, mab1_params, num_heads)

    # Performance configuration: bf16 MXU operands, f32 accumulation.
    # bf16 operand rounding (~2^-9 rel) across two stacked MABs -> a few e-3 absolute
    # deviation from the f32 reference, so checked at a 2e-2 tolerance.
    out = jax.block_until_ready(ae_forward(X, I, mab0_params, mab1_params, num_heads))
    assert out.shape == (B, N, dim_out)
    assert jnp.allclose(out, ref, atol=2e-2, rtol=2e-2), "bf16 kernel mismatch vs reference"

    # Exact-precision mode of the same kernel (f32 MXU operands): tight check that
    # the forward-pass semantics are preserved bit-for-bit up to accumulation order.
    out_f32 = jax.block_until_ready(
        ae_forward(X, I, mab0_params, mab1_params, num_heads, mxu_dtype=jnp.float32))
    assert jnp.allclose(out_f32, ref, atol=1e-3, rtol=1e-3), "f32 kernel mismatch vs reference"

    print("KERNEL_OK")
</pallas_src>

<mosaic_0001>
module attributes {stable_mosaic.version = 11 : i64} {
  func.func @ae_fused_kernel(%arg0: i32, %arg1: memref<4x8x8xf32, #tpu.memory_space<vmem>>, %arg2: memref<32x16xf32, #tpu.memory_space<vmem>>, %arg3: memref<12x16x8xbf16, #tpu.memory_space<vmem>>, %arg4: memref<12x1x8xf32, #tpu.memory_space<vmem>>, %arg5: memref<8x32x8xbf16, #tpu.memory_space<vmem>>, %arg6: memref<8x1x8xf32, #tpu.memory_space<vmem>>, %arg7: memref<8x8x32xbf16, #tpu.memory_space<vmem>>, %arg8: memref<2x1x32xf32, #tpu.memory_space<vmem>>, %arg9: memref<32x32xf32, #tpu.memory_space<vmem>>) attributes {dimension_semantics = [#tpu.dimension_semantics<parallel>], iteration_bounds = array<i64: 1>, scalar_prefetch = 0 : i64, scratch_operands = 0 : i64, tpu.core_type = #tpu.core_type<tc>, window_params = [{pipeline_mode = #tpu.pipeline_mode<synchronous>, transform_indices = @transform_0, window_bounds = array<i64: 4, 8, 8>}, {transform_indices = @transform_1, window_bounds = array<i64: 32, 16>}, {pipeline_mode = #tpu.pipeline_mode<synchronous>, transform_indices = @transform_2, window_bounds = array<i64: 12, 16, 8>}, {pipeline_mode = #tpu.pipeline_mode<synchronous>, transform_indices = @transform_3, window_bounds = array<i64: 12, 1, 8>}, {pipeline_mode = #tpu.pipeline_mode<synchronous>, transform_indices = @transform_4, window_bounds = array<i64: 8, 32, 8>}, {pipeline_mode = #tpu.pipeline_mode<synchronous>, transform_indices = @transform_5, window_bounds = array<i64: 8, 1, 8>}, {pipeline_mode = #tpu.pipeline_mode<synchronous>, transform_indices = @transform_6, window_bounds = array<i64: 8, 8, 32>}, {pipeline_mode = #tpu.pipeline_mode<synchronous>, transform_indices = @transform_7, window_bounds = array<i64: 2, 1, 32>}, {transform_indices = @transform_8, window_bounds = array<i64: 32, 32>}]} {
    %c0 = arith.constant 0 : index
    %c0_0 = arith.constant 0 : index
    %0 = vector.load %arg2[%c0, %c0_0] : memref<32x16xf32, #tpu.memory_space<vmem>>, vector<32x16xf32>
    %1 = arith.truncf %0 : vector<32x16xf32> to vector<32x16xbf16>
    %c0_1 = arith.constant 0 : index
    %c0_2 = arith.constant 0 : index
    %c0_3 = arith.constant 0 : index
    %2 = vector.load %arg3[%c0_1, %c0_2, %c0_3] : memref<12x16x8xbf16, #tpu.memory_space<vmem>>, vector<1x16x8xbf16>
    %3 = vector.shape_cast %2 : vector<1x16x8xbf16> to vector<16x8xbf16>
    %cst = arith.constant dense<0.000000e+00> : vector<32x8xf32>
    %4 = tpu.matmul %1, %3, %cst {dimension_numbers = #tpu.dot_dimension_numbers<[1], [0], [0], [1], [0, 0, 1, 1], [], []>} : vector<32x16xbf16>, vector<16x8xbf16>, vector<32x8xf32> -> vector<32x8xf32>
    %c0_4 = arith.constant 0 : index
    %c0_5 = arith.constant 0 : index
    %c0_6 = arith.constant 0 : index
    %5 = vector.load %arg4[%c0_4, %c0_5, %c0_6] : memref<12x1x8xf32, #tpu.memory_space<vmem>>, vector<1x1x8xf32>
    %6 = vector.shape_cast %5 : vector<1x1x8xf32> to vector<1x8xf32>
    %7 = vector.broadcast %6 : vector<1x8xf32> to vector<32x8xf32>
    %8 = arith.addf %4, %7 : vector<32x8xf32>
    %9 = vector.shape_cast %8 : vector<32x8xf32> to vector<2x16x8xf32>
    %c1 = arith.constant 1 : index
    %c0_7 = arith.constant 0 : index
    %c0_8 = arith.constant 0 : index
    %10 = vector.load %arg3[%c1, %c0_7, %c0_8] : memref<12x16x8xbf16, #tpu.memory_space<vmem>>, vector<1x16x8xbf16>
    %11 = vector.shape_cast %10 : vector<1x16x8xbf16> to vector<16x8xbf16>
    %cst_9 = arith.constant dense<0.000000e+00> : vector<32x8xf32>
    %12 = tpu.matmul %1, %11, %cst_9 {dimension_numbers = #tpu.dot_dimension_numbers<[1], [0], [0], [1], [0, 0, 1, 1], [], []>} : vector<32x16xbf16>, vector<16x8xbf16>, vector<32x8xf32> -> vector<32x8xf32>
    %c1_10 = arith.constant 1 : index
    %c0_11 = arith.constant 0 : index
    %c0_12 = arith.constant 0 : index
    %13 = vector.load %arg4[%c1_10, %c0_11, %c0_12] : memref<12x1x8xf32, #tpu.memory_space<vmem>>, vector<1x1x8xf32>
    %14 = vector.shape_cast %13 : vector<1x1x8xf32> to vector<1x8xf32>
    %15 = vector.broadcast %14 : vector<1x8xf32> to vector<32x8xf32>
    %16 = arith.addf %12, %15 : vector<32x8xf32>
    %17 = vector.shape_cast %16 : vector<32x8xf32> to vector<2x16x8xf32>
    %c2 = arith.constant 2 : index
    %c0_13 = arith.constant 0 : index
    %c0_14 = arith.constant 0 : index
    %18 = vector.load %arg3[%c2, %c0_13, %c0_14] : memref<12x16x8xbf16, #tpu.memory_space<vmem>>, vector<1x16x8xbf16>
    %19 = vector.shape_cast %18 : vector<1x16x8xbf16> to vector<16x8xbf16>
    %cst_15 = arith.constant dense<0.000000e+00> : vector<32x8xf32>
    %20 = tpu.matmul %1, %19, %cst_15 {dimension_numbers = #tpu.dot_dimension_numbers<[1], [0], [0], [1], [0, 0, 1, 1], [], []>} : vector<32x16xbf16>, vector<16x8xbf16>, vector<32x8xf32> -> vector<32x8xf32>
    %c2_16 = arith.constant 2 : index
    %c0_17 = arith.constant 0 : index
    %c0_18 = arith.constant 0 : index
    %21 = vector.load %arg4[%c2_16, %c0_17, %c0_18] : memref<12x1x8xf32, #tpu.memory_space<vmem>>, vector<1x1x8xf32>
    %22 = vector.shape_cast %21 : vector<1x1x8xf32> to vector<1x8xf32>
    %23 = vector.broadcast %22 : vector<1x8xf32> to vector<32x8xf32>
    %24 = arith.addf %20, %23 : vector<32x8xf32>
    %25 = vector.shape_cast %24 : vector<32x8xf32> to vector<2x16x8xf32>
    %c3 = arith.constant 3 : index
    %c0_19 = arith.constant 0 : index
    %c0_20 = arith.constant 0 : index
    %26 = vector.load %arg3[%c3, %c0_19, %c0_20] : memref<12x16x8xbf16, #tpu.memory_space<vmem>>, vector<1x16x8xbf16>
    %27 = vector.shape_cast %26 : vector<1x16x8xbf16> to vector<16x8xbf16>
    %cst_21 = arith.constant dense<0.000000e+00> : vector<32x8xf32>
    %28 = tpu.matmul %1, %27, %cst_21 {dimension_numbers = #tpu.dot_dimension_numbers<[1], [0], [0], [1], [0, 0, 1, 1], [], []>} : vector<32x16xbf16>, vector<16x8xbf16>, vector<32x8xf32> -> vector<32x8xf32>
    %c3_22 = arith.constant 3 : index
    %c0_23 = arith.constant 0 : index
    %c0_24 = arith.constant 0 : index
    %29 = vector.load %arg4[%c3_22, %c0_23, %c0_24] : memref<12x1x8xf32, #tpu.memory_space<vmem>>, vector<1x1x8xf32>
    %30 = vector.shape_cast %29 : vector<1x1x8xf32> to vector<1x8xf32>
    %31 = vector.broadcast %30 : vector<1x8xf32> to vector<32x8xf32>
    %32 = arith.addf %28, %31 : vector<32x8xf32>
    %33 = vector.shape_cast %32 : vector<32x8xf32> to vector<2x16x8xf32>
    %c4 = arith.constant 4 : index
    %c0_25 = arith.constant 0 : index
    %c0_26 = arith.constant 0 : index
    %34 = vector.load %arg3[%c4, %c0_25, %c0_26] : memref<12x16x8xbf16, #tpu.memory_space<vmem>>, vector<1x16x8xbf16>
    %35 = vector.shape_cast %34 : vector<1x16x8xbf16> to vector<16x8xbf16>
    %cst_27 = arith.constant dense<0.000000e+00> : vector<32x8xf32>
    %36 = tpu.matmul %1, %35, %cst_27 {dimension_numbers = #tpu.dot_dimension_numbers<[1], [0], [0], [1], [0, 0, 1, 1], [], []>} : vector<32x16xbf16>, vector<16x8xbf16>, vector<32x8xf32> -> vector<32x8xf32>
    %c4_28 = arith.constant 4 : index
    %c0_29 = arith.constant 0 : index
    %c0_30 = arith.constant 0 : index
    %37 = vector.load %arg4[%c4_28, %c0_29, %c0_30] : memref<12x1x8xf32, #tpu.memory_space<vmem>>, vector<1x1x8xf32>
    %38 = vector.shape_cast %37 : vector<1x1x8xf32> to vector<1x8xf32>
    %39 = vector.broadcast %38 : vector<1x8xf32> to vector<32x8xf32>
    %40 = arith.addf %36, %39 : vector<32x8xf32>
    %41 = vector.shape_cast %40 : vector<32x8xf32> to vector<2x16x8xf32>
    %c5 = arith.constant 5 : index
    %c0_31 = arith.constant 0 : index
    %c0_32 = arith.constant 0 : index
    %42 = vector.load %arg3[%c5, %c0_31, %c0_32] : memref<12x16x8xbf16, #tpu.memory_space<vmem>>, vector<1x16x8xbf16>
    %43 = vector.shape_cast %42 : vector<1x16x8xbf16> to vector<16x8xbf16>
    %cst_33 = arith.constant dense<0.000000e+00> : vector<32x8xf32>
    %44 = tpu.matmul %1, %43, %cst_33 {dimension_numbers = #tpu.dot_dimension_numbers<[1], [0], [0], [1], [0, 0, 1, 1], [], []>} : vector<32x16xbf16>, vector<16x8xbf16>, vector<32x8xf32> -> vector<32x8xf32>
    %c5_34 = arith.constant 5 : index
    %c0_35 = arith.constant 0 : index
    %c0_36 = arith.constant 0 : index
    %45 = vector.load %arg4[%c5_34, %c0_35, %c0_36] : memref<12x1x8xf32, #tpu.memory_space<vmem>>, vector<1x1x8xf32>
    %46 = vector.shape_cast %45 : vector<1x1x8xf32> to vector<1x8xf32>
    %47 = vector.broadcast %46 : vector<1x8xf32> to vector<32x8xf32>
    %48 = arith.addf %44, %47 : vector<32x8xf32>
    %49 = vector.shape_cast %48 : vector<32x8xf32> to vector<2x16x8xf32>
    %c6 = arith.constant 6 : index
    %c0_37 = arith.constant 0 : index
    %c0_38 = arith.constant 0 : index
    %50 = vector.load %arg3[%c6, %c0_37, %c0_38] : memref<12x16x8xbf16, #tpu.memory_space<vmem>>, vector<1x16x8xbf16>
    %51 = vector.shape_cast %50 : vector<1x16x8xbf16> to vector<16x8xbf16>
    %cst_39 = arith.constant dense<0.000000e+00> : vector<32x8xf32>
    %52 = tpu.matmul %1, %51, %cst_39 {dimension_numbers = #tpu.dot_dimension_numbers<[1], [0], [0], [1], [0, 0, 1, 1], [], []>} : vector<32x16xbf16>, vector<16x8xbf16>, vector<32x8xf32> -> vector<32x8xf32>
    %c6_40 = arith.constant 6 : index
    %c0_41 = arith.constant 0 : index
    %c0_42 = arith.constant 0 : index
    %53 = vector.load %arg4[%c6_40, %c0_41, %c0_42] : memref<12x1x8xf32, #tpu.memory_space<vmem>>, vector<1x1x8xf32>
    %54 = vector.shape_cast %53 : vector<1x1x8xf32> to vector<1x8xf32>
    %55 = vector.broadcast %54 : vector<1x8xf32> to vector<32x8xf32>
    %56 = arith.addf %52, %55 : vector<32x8xf32>
    %57 = vector.shape_cast %56 : vector<32x8xf32> to vector<2x16x8xf32>
    %c7 = arith.constant 7 : index
    %c0_43 = arith.constant 0 : index
    %c0_44 = arith.constant 0 : index
    %58 = vector.load %arg3[%c7, %c0_43, %c0_44] : memref<12x16x8xbf16, #tpu.memory_space<vmem>>, vector<1x16x8xbf16>
    %59 = vector.shape_cast %58 : vector<1x16x8xbf16> to vector<16x8xbf16>
    %cst_45 = arith.constant dense<0.000000e+00> : vector<32x8xf32>
    %60 = tpu.matmul %1, %59, %cst_45 {dimension_numbers = #tpu.dot_dimension_numbers<[1], [0], [0], [1], [0, 0, 1, 1], [], []>} : vector<32x16xbf16>, vector<16x8xbf16>, vector<32x8xf32> -> vector<32x8xf32>
    %c7_46 = arith.constant 7 : index
    %c0_47 = arith.constant 0 : index
    %c0_48 = arith.constant 0 : index
    %61 = vector.load %arg4[%c7_46, %c0_47, %c0_48] : memref<12x1x8xf32, #tpu.memory_space<vmem>>, vector<1x1x8xf32>
    %62 = vector.shape_cast %61 : vector<1x1x8xf32> to vector<1x8xf32>
    %63 = vector.broadcast %62 : vector<1x8xf32> to vector<32x8xf32>
    %64 = arith.addf %60, %63 : vector<32x8xf32>
    %65 = vector.shape_cast %64 : vector<32x8xf32> to vector<2x16x8xf32>
    %c8 = arith.constant 8 : index
    %c0_49 = arith.constant 0 : index
    %c0_50 = arith.constant 0 : index
    %66 = vector.load %arg3[%c8, %c0_49, %c0_50] : memref<12x16x8xbf16, #tpu.memory_space<vmem>>, vector<1x16x8xbf16>
    %67 = vector.shape_cast %66 : vector<1x16x8xbf16> to vector<16x8xbf16>
    %cst_51 = arith.constant dense<0.000000e+00> : vector<32x8xf32>
    %68 = tpu.matmul %1, %67, %cst_51 {dimension_numbers = #tpu.dot_dimension_numbers<[1], [0], [0], [1], [0, 0, 1, 1], [], []>} : vector<32x16xbf16>, vector<16x8xbf16>, vector<32x8xf32> -> vector<32x8xf32>
    %c8_52 = arith.constant 8 : index
    %c0_53 = arith.constant 0 : index
    %c0_54 = arith.constant 0 : index
    %69 = vector.load %arg4[%c8_52, %c0_53, %c0_54] : memref<12x1x8xf32, #tpu.memory_space<vmem>>, vector<1x1x8xf32>
    %70 = vector.shape_cast %69 : vector<1x1x8xf32> to vector<1x8xf32>
    %71 = vector.broadcast %70 : vector<1x8xf32> to vector<32x8xf32>
    %72 = arith.addf %68, %71 : vector<32x8xf32>
    %73 = vector.shape_cast %72 : vector<32x8xf32> to vector<2x16x8xf32>
    %c9 = arith.constant 9 : index
    %c0_55 = arith.constant 0 : index
    %c0_56 = arith.constant 0 : index
    %74 = vector.load %arg3[%c9, %c0_55, %c0_56] : memref<12x16x8xbf16, #tpu.memory_space<vmem>>, vector<1x16x8xbf16>
    %75 = vector.shape_cast %74 : vector<1x16x8xbf16> to vector<16x8xbf16>
    %cst_57 = arith.constant dense<0.000000e+00> : vector<32x8xf32>
    %76 = tpu.matmul %1, %75, %cst_57 {dimension_numbers = #tpu.dot_dimension_numbers<[1], [0], [0], [1], [0, 0, 1, 1], [], []>} : vector<32x16xbf16>, vector<16x8xbf16>, vector<32x8xf32> -> vector<32x8xf32>
    %c9_58 = arith.constant 9 : index
    %c0_59 = arith.constant 0 : index
    %c0_60 = arith.constant 0 : index
    %77 = vector.load %arg4[%c9_58, %c0_59, %c0_60] : memref<12x1x8xf32, #tpu.memory_space<vmem>>, vector<1x1x8xf32>
    %78 = vector.shape_cast %77 : vector<1x1x8xf32> to vector<1x8xf32>
    %79 = vector.broadcast %78 : vector<1x8xf32> to vector<32x8xf32>
    %80 = arith.addf %76, %79 : vector<32x8xf32>
    %81 = vector.shape_cast %80 : vector<32x8xf32> to vector<2x16x8xf32>
    %c10 = arith.constant 10 : index
    %c0_61 = arith.constant 0 : index
    %c0_62 = arith.constant 0 : index
    %82 = vector.load %arg3[%c10, %c0_61, %c0_62] : memref<12x16x8xbf16, #tpu.memory_space<vmem>>, vector<1x16x8xbf16>
    %83 = vector.shape_cast %82 : vector<1x16x8xbf16> to vector<16x8xbf16>
    %cst_63 = arith.constant dense<0.000000e+00> : vector<32x8xf32>
    %84 = tpu.matmul %1, %83, %cst_63 {dimension_numbers = #tpu.dot_dimension_numbers<[1], [0], [0], [1], [0, 0, 1, 1], [], []>} : vector<32x16xbf16>, vector<16x8xbf16>, vector<32x8xf32> -> vector<32x8xf32>
    %c10_64 = arith.constant 10 : index
    %c0_65 = arith.constant 0 : index
    %c0_66 = arith.constant 0 : index
    %85 = vector.load %arg4[%c10_64, %c0_65, %c0_66] : memref<12x1x8xf32, #tpu.memory_space<vmem>>, vector<1x1x8xf32>
    %86 = vector.shape_cast %85 : vector<1x1x8xf32> to vector<1x8xf32>
    %87 = vector.broadcast %86 : vector<1x8xf32> to vector<32x8xf32>
    %88 = arith.addf %84, %87 : vector<32x8xf32>
    %89 = vector.shape_cast %88 : vector<32x8xf32> to vector<2x16x8xf32>
    %c11 = arith.constant 11 : index
    %c0_67 = arith.constant 0 : index
    %c0_68 = arith.constant 0 : index
    %90 = vector.load %arg3[%c11, %c0_67, %c0_68] : memref<12x16x8xbf16, #tpu.memory_space<vmem>>, vector<1x16x8xbf16>
    %91 = vector.shape_cast %90 : vector<1x16x8xbf16> to vector<16x8xbf16>
    %cst_69 = arith.constant dense<0.000000e+00> : vector<32x8xf32>
    %92 = tpu.matmul %1, %91, %cst_69 {dimension_numbers = #tpu.dot_dimension_numbers<[1], [0], [0], [1], [0, 0, 1, 1], [], []>} : vector<32x16xbf16>, vector<16x8xbf16>, vector<32x8xf32> -> vector<32x8xf32>
    %c11_70 = arith.constant 11 : index
    %c0_71 = arith.constant 0 : index
    %c0_72 = arith.constant 0 : index
    %93 = vector.load %arg4[%c11_70, %c0_71, %c0_72] : memref<12x1x8xf32, #tpu.memory_space<vmem>>, vector<1x1x8xf32>
    %94 = vector.shape_cast %93 : vector<1x1x8xf32> to vector<1x8xf32>
    %95 = vector.broadcast %94 : vector<1x8xf32> to vector<32x8xf32>
    %96 = arith.addf %92, %95 : vector<32x8xf32>
    %97 = vector.shape_cast %96 : vector<32x8xf32> to vector<2x16x8xf32>
    %c0_73 = arith.constant 0 : index
    %c0_74 = arith.constant 0 : index
    %c0_75 = arith.constant 0 : index
    %98 = vector.load %arg1[%c0_73, %c0_74, %c0_75] : memref<4x8x8xf32, #tpu.memory_space<vmem>>, vector<1x8x8xf32>
    %99 = vector.shape_cast %98 : vector<1x8x8xf32> to vector<8x8xf32>
    %100 = vector.shape_cast %99 : vector<8x8xf32> to vector<1x8x8xf32>
    %101 = vector.shape_cast %100 : vector<1x8x8xf32> to vector<1x8x8xf32>
    %102 = vector.broadcast %101 : vector<1x8x8xf32> to vector<2x8x8xf32>
    %c1_76 = arith.constant 1 : index
    %c0_77 = arith.constant 0 : index
    %c0_78 = arith.constant 0 : index
    %103 = vector.load %arg1[%c1_76, %c0_77, %c0_78] : memref<4x8x8xf32, #tpu.memory_space<vmem>>, vector<1x8x8xf32>
    %104 = vector.shape_cast %103 : vector<1x8x8xf32> to vector<8x8xf32>
    %105 = vector.shape_cast %104 : vector<8x8xf32> to vector<1x8x8xf32>
    %106 = vector.shape_cast %105 : vector<1x8x8xf32> to vector<1x8x8xf32>
    %107 = vector.broadcast %106 : vector<1x8x8xf32> to vector<2x8x8xf32>
    %c2_79 = arith.constant 2 : index
    %c0_80 = arith.constant 0 : index
    %c0_81 = arith.constant 0 : index
    %108 = vector.load %arg1[%c2_79, %c0_80, %c0_81] : memref<4x8x8xf32, #tpu.memory_space<vmem>>, vector<1x8x8xf32>
    %109 = vector.shape_cast %108 : vector<1x8x8xf32> to vector<8x8xf32>
    %110 = vector.shape_cast %109 : vector<8x8xf32> to vector<1x8x8xf32>
    %111 = vector.shape_cast %110 : vector<1x8x8xf32> to vector<1x8x8xf32>
    %112 = vector.broadcast %111 : vector<1x8x8xf32> to vector<2x8x8xf32>
    %c3_82 = arith.constant 3 : index
    %c0_83 = arith.constant 0 : index
    %c0_84 = arith.constant 0 : index
    %113 = vector.load %arg1[%c3_82, %c0_83, %c0_84] : memref<4x8x8xf32, #tpu.memory_space<vmem>>, vector<1x8x8xf32>
    %114 = vector.shape_cast %113 : vector<1x8x8xf32> to vector<8x8xf32>
    %115 = vector.shape_cast %114 : vector<8x8xf32> to vector<1x8x8xf32>
    %116 = vector.shape_cast %115 : vector<1x8x8xf32> to vector<1x8x8xf32>
    %117 = vector.broadcast %116 : vector<1x8x8xf32> to vector<2x8x8xf32>
    %cst_85 = arith.constant 0.000000e+00 : f32
    %118 = vector.broadcast %cst_85 : f32 to vector<16x32xf32>
    %119 = arith.truncf %102 : vector<2x8x8xf32> to vector<2x8x8xbf16>
    %120 = arith.truncf %9 : vector<2x16x8xf32> to vector<2x16x8xbf16>
    "tpu.trace_start"() <{level = 10 : i32, message = "bqd,bkd->bqk"}> : () -> ()
    %cst_86 = arith.constant dense<0.000000e+00> : vector<2x8x16xf32>
    %121 = tpu.matmul %119, %120, %cst_86 {dimension_numbers = #tpu.dot_dimension_numbers<[2], [2], [1], [1], [0, 0, 0, 1, 1, 1], [0], [0]>} : vector<2x8x8xbf16>, vector<2x16x8xbf16>, vector<2x8x16xf32> -> vector<2x8x16xf32>
    "tpu.trace_stop"() : () -> ()
    %cst_87 = arith.constant 0.176776692 : f32
    %122 = vector.broadcast %cst_87 : f32 to vector<2x8x16xf32>
    %123 = arith.mulf %121, %122 : vector<2x8x16xf32>
    %cst_88 = arith.constant dense<0xFF800000> : vector<2x8xf32>
    %124 = vector.multi_reduction <maximumf>, %123, %cst_88 [2] : vector<2x8x16xf32> to vector<2x8xf32>
    %125 = vector.shape_cast %124 : vector<2x8xf32> to vector<2x8x1xf32>
    %126 = vector.broadcast %125 : vector<2x8x1xf32> to vector<2x8x16xf32>
    %127 = arith.subf %123, %126 : vector<2x8x16xf32>
    %128 = math.exp %127 : vector<2x8x16xf32>
    %cst_89 = arith.constant dense<0.000000e+00> : vector<2x8xf32>
    %129 = vector.multi_reduction <add>, %128, %cst_89 [2] : vector<2x8x16xf32> to vector<2x8xf32>
    %130 = vector.shape_cast %129 : vector<2x8xf32> to vector<2x8x1xf32>
    %131 = tpu.reciprocal %130 {approx = true} : vector<2x8x1xf32> -> vector<2x8x1xf32>
    %132 = arith.mulf %130, %131 : vector<2x8x1xf32>
    %cst_90 = arith.constant 2.000000e+00 : f32
    %133 = vector.broadcast %cst_90 : f32 to vector<2x8x1xf32>
    %134 = arith.subf %133, %132 : vector<2x8x1xf32>
    %135 = arith.mulf %131, %134 : vector<2x8x1xf32>
    %136 = vector.broadcast %135 : vector<2x8x1xf32> to vector<2x8x16xf32>
    %137 = arith.mulf %128, %136 : vector<2x8x16xf32>
    %138 = arith.truncf %137 : vector<2x8x16xf32> to vector<2x8x16xbf16>
    %139 = arith.truncf %41 : vector<2x16x8xf32> to vector<2x16x8xbf16>
    "tpu.trace_start"() <{level = 10 : i32, message = "bqk,bkd->bqd"}> : () -> ()
    %cst_91 = arith.constant dense<0.000000e+00> : vector<2x8x8xf32>
    %140 = tpu.matmul %138, %139, %cst_91 {dimension_numbers = #tpu.dot_dimension_numbers<[2], [1], [1], [2], [0, 0, 0, 1, 1, 2], [0], [0]>} : vector<2x8x16xbf16>, vector<2x16x8xbf16>, vector<2x8x8xf32> -> vector<2x8x8xf32>
    "tpu.trace_stop"() : () -> ()
    %141 = arith.addf %102, %140 : vector<2x8x8xf32>
    %142 = vector.shape_cast %141 : vector<2x8x8xf32> to vector<16x8xf32>
    %143 = arith.truncf %142 : vector<16x8xf32> to vector<16x8xbf16>
    %c0_92 = arith.constant 0 : index
    %c0_93 = arith.constant 0 : index
    %c0_94 = arith.constant 0 : index
    %144 = vector.load %arg7[%c0_92, %c0_93, %c0_94] : memref<8x8x32xbf16, #tpu.memory_space<vmem>>, vector<1x8x32xbf16>
    %145 = vector.shape_cast %144 : vector<1x8x32xbf16> to vector<8x32xbf16>
    %cst_95 = arith.constant dense<0.000000e+00> : vector<16x32xf32>
    %146 = tpu.matmul %143, %145, %cst_95 {dimension_numbers = #tpu.dot_dimension_numbers<[1], [0], [0], [1], [0, 0, 1, 1], [], []>} : vector<16x8xbf16>, vector<8x32xbf16>, vector<16x32xf32> -> vector<16x32xf32>
    %147 = arith.addf %118, %146 : vector<16x32xf32>
    %148 = arith.truncf %107 : vector<2x8x8xf32> to vector<2x8x8xbf16>
    %149 = arith.truncf %17 : vector<2x16x8xf32> to vector<2x16x8xbf16>
    "tpu.trace_start"() <{level = 10 : i32, message = "bqd,bkd->bqk"}> : () -> ()
    %cst_96 = arith.constant dense<0.000000e+00> : vector<2x8x16xf32>
    %150 = tpu.matmul %148, %149, %cst_96 {dimension_numbers = #tpu.dot_dimension_numbers<[2], [2], [1], [1], [0, 0, 0, 1, 1, 1], [0], [0]>} : vector<2x8x8xbf16>, vector<2x16x8xbf16>, vector<2x8x16xf32> -> vector<2x8x16xf32>
    "tpu.trace_stop"() : () -> ()
    %cst_97 = arith.constant 0.176776692 : f32
    %151 = vector.broadcast %cst_97 : f32 to vector<2x8x16xf32>
    %152 = arith.mulf %150, %151 : vector<2x8x16xf32>
    %cst_98 = arith.constant dense<0xFF800000> : vector<2x8xf32>
    %153 = vector.multi_reduction <maximumf>, %152, %cst_98 [2] : vector<2x8x16xf32> to vector<2x8xf32>
    %154 = vector.shape_cast %153 : vector<2x8xf32> to vector<2x8x1xf32>
    %155 = vector.broadcast %154 : vector<2x8x1xf32> to vector<2x8x16xf32>
    %156 = arith.subf %152, %155 : vector<2x8x16xf32>
    %157 = math.exp %156 : vector<2x8x16xf32>
    %cst_99 = arith.constant dense<0.000000e+00> : vector<2x8xf32>
    %158 = vector.multi_reduction <add>, %157, %cst_99 [2] : vector<2x8x16xf32> to vector<2x8xf32>
    %159 = vector.shape_cast %158 : vector<2x8xf32> to vector<2x8x1xf32>
    %160 = tpu.reciprocal %159 {approx = true} : vector<2x8x1xf32> -> vector<2x8x1xf32>
    %161 = arith.mulf %159, %160 : vector<2x8x1xf32>
    %cst_100 = arith.constant 2.000000e+00 : f32
    %162 = vector.broadcast %cst_100 : f32 to vector<2x8x1xf32>
    %163 = arith.subf %162, %161 : vector<2x8x1xf32>
    %164 = arith.mulf %160, %163 : vector<2x8x1xf32>
    %165 = vector.broadcast %164 : vector<2x8x1xf32> to vector<2x8x16xf32>
    %166 = arith.mulf %157, %165 : vector<2x8x16xf32>
    %167 = arith.truncf %166 : vector<2x8x16xf32> to vector<2x8x16xbf16>
    %168 = arith.truncf %49 : vector<2x16x8xf32> to vector<2x16x8xbf16>
    "tpu.trace_start"() <{level = 10 : i32, message = "bqk,bkd->bqd"}> : () -> ()
    %cst_101 = arith.constant dense<0.000000e+00> : vector<2x8x8xf32>
    %169 = tpu.matmul %167, %168, %cst_101 {dimension_numbers = #tpu.dot_dimension_numbers<[2], [1], [1], [2], [0, 0, 0, 1, 1, 2], [0], [0]>} : vector<2x8x16xbf16>, vector<2x16x8xbf16>, vector<2x8x8xf32> -> vector<2x8x8xf32>
    "tpu.trace_stop"() : () -> ()
    %170 = arith.addf %107, %169 : vector<2x8x8xf32>
    %171 = vector.shape_cast %170 : vector<2x8x8xf32> to vector<16x8xf32>
    %172 = arith.truncf %171 : vector<16x8xf32> to vector<16x8xbf16>
    %c1_102 = arith.constant 1 : index
    %c0_103 = arith.constant 0 : index
    %c0_104 = arith.constant 0 : index
    %173 = vector.load %arg7[%c1_102, %c0_103, %c0_104] : memref<8x8x32xbf16, #tpu.memory_space<vmem>>, vector<1x8x32xbf16>
    %174 = vector.shape_cast %173 : vector<1x8x32xbf16> to vector<8x32xbf16>
    %cst_105 = arith.constant dense<0.000000e+00> : vector<16x32xf32>
    %175 = tpu.matmul %172, %174, %cst_105 {dimension_numbers = #tpu.dot_dimension_numbers<[1], [0], [0], [1], [0, 0, 1, 1], [], []>} : vector<16x8xbf16>, vector<8x32xbf16>, vector<16x32xf32> -> vector<16x32xf32>
    %176 = arith.addf %147, %175 : vector<16x32xf32>
    %177 = arith.truncf %112 : vector<2x8x8xf32> to vector<2x8x8xbf16>
    %178 = arith.truncf %25 : vector<2x16x8xf32> to vector<2x16x8xbf16>
    "tpu.trace_start"() <{level = 10 : i32, message = "bqd,bkd->bqk"}> : () -> ()
    %cst_106 = arith.constant dense<0.000000e+00> : vector<2x8x16xf32>
    %179 = tpu.matmul %177, %178, %cst_106 {dimension_numbers = #tpu.dot_dimension_numbers<[2], [2], [1], [1], [0, 0, 0, 1, 1, 1], [0], [0]>} : vector<2x8x8xbf16>, vector<2x16x8xbf16>, vector<2x8x16xf32> -> vector<2x8x16xf32>
    "tpu.trace_stop"() : () -> ()
    %cst_107 = arith.constant 0.176776692 : f32
    %180 = vector.broadcast %cst_107 : f32 to vector<2x8x16xf32>
    %181 = arith.mulf %179, %180 : vector<2x8x16xf32>
    %cst_108 = arith.constant dense<0xFF800000> : vector<2x8xf32>
    %182 = vector.multi_reduction <maximumf>, %181, %cst_108 [2] : vector<2x8x16xf32> to vector<2x8xf32>
    %183 = vector.shape_cast %182 : vector<2x8xf32> to vector<2x8x1xf32>
    %184 = vector.broadcast %183 : vector<2x8x1xf32> to vector<2x8x16xf32>
    %185 = arith.subf %181, %184 : vector<2x8x16xf32>
    %186 = math.exp %185 : vector<2x8x16xf32>
    %cst_109 = arith.constant dense<0.000000e+00> : vector<2x8xf32>
    %187 = vector.multi_reduction <add>, %186, %cst_109 [2] : vector<2x8x16xf32> to vector<2x8xf32>
    %188 = vector.shape_cast %187 : vector<2x8xf32> to vector<2x8x1xf32>
    %189 = tpu.reciprocal %188 {approx = true} : vector<2x8x1xf32> -> vector<2x8x1xf32>
    %190 = arith.mulf %188, %189 : vector<2x8x1xf32>
    %cst_110 = arith.constant 2.000000e+00 : f32
    %191 = vector.broadcast %cst_110 : f32 to vector<2x8x1xf32>
    %192 = arith.subf %191, %190 : vector<2x8x1xf32>
    %193 = arith.mulf %189, %192 : vector<2x8x1xf32>
    %194 = vector.broadcast %193 : vector<2x8x1xf32> to vector<2x8x16xf32>
    %195 = arith.mulf %186, %194 : vector<2x8x16xf32>
    %196 = arith.truncf %195 : vector<2x8x16xf32> to vector<2x8x16xbf16>
    %197 = arith.truncf %57 : vector<2x16x8xf32> to vector<2x16x8xbf16>
    "tpu.trace_start"() <{level = 10 : i32, message = "bqk,bkd->bqd"}> : () -> ()
    %cst_111 = arith.constant dense<0.000000e+00> : vector<2x8x8xf32>
    %198 = tpu.matmul %196, %197, %cst_111 {dimension_numbers = #tpu.dot_dimension_numbers<[2], [1], [1], [2], [0, 0, 0, 1, 1, 2], [0], [0]>} : vector<2x8x16xbf16>, vector<2x16x8xbf16>, vector<2x8x8xf32> -> vector<2x8x8xf32>
    "tpu.trace_stop"() : () -> ()
    %199 = arith.addf %112, %198 : vector<2x8x8xf32>
    %200 = vector.shape_cast %199 : vector<2x8x8xf32> to vector<16x8xf32>
    %201 = arith.truncf %200 : vector<16x8xf32> to vector<16x8xbf16>
    %c2_112 = arith.constant 2 : index
    %c0_113 = arith.constant 0 : index
    %c0_114 = arith.constant 0 : index
    %202 = vector.load %arg7[%c2_112, %c0_113, %c0_114] : memref<8x8x32xbf16, #tpu.memory_space<vmem>>, vector<1x8x32xbf16>
    %203 = vector.shape_cast %202 : vector<1x8x32xbf16> to vector<8x32xbf16>
    %cst_115 = arith.constant dense<0.000000e+00> : vector<16x32xf32>
    %204 = tpu.matmul %201, %203, %cst_115 {dimension_numbers = #tpu.dot_dimension_numbers<[1], [0], [0], [1], [0, 0, 1, 1], [], []>} : vector<16x8xbf16>, vector<8x32xbf16>, vector<16x32xf32> -> vector<16x32xf32>
    %205 = arith.addf %176, %204 : vector<16x32xf32>
    %206 = arith.truncf %117 : vector<2x8x8xf32> to vector<2x8x8xbf16>
    %207 = arith.truncf %33 : vector<2x16x8xf32> to vector<2x16x8xbf16>
    "tpu.trace_start"() <{level = 10 : i32, message = "bqd,bkd->bqk"}> : () -> ()
    %cst_116 = arith.constant dense<0.000000e+00> : vector<2x8x16xf32>
    %208 = tpu.matmul %206, %207, %cst_116 {dimension_numbers = #tpu.dot_dimension_numbers<[2], [2], [1], [1], [0, 0, 0, 1, 1, 1], [0], [0]>} : vector<2x8x8xbf16>, vector<2x16x8xbf16>, vector<2x8x16xf32> -> vector<2x8x16xf32>
    "tpu.trace_stop"() : () -> ()
    %cst_117 = arith.constant 0.176776692 : f32
    %209 = vector.broadcast %cst_117 : f32 to vector<2x8x16xf32>
    %210 = arith.mulf %208, %209 : vector<2x8x16xf32>
    %cst_118 = arith.constant dense<0xFF800000> : vector<2x8xf32>
    %211 = vector.multi_reduction <maximumf>, %210, %cst_118 [2] : vector<2x8x16xf32> to vector<2x8xf32>
    %212 = vector.shape_cast %211 : vector<2x8xf32> to vector<2x8x1xf32>
    %213 = vector.broadcast %212 : vector<2x8x1xf32> to vector<2x8x16xf32>
    %214 = arith.subf %210, %213 : vector<2x8x16xf32>
    %215 = math.exp %214 : vector<2x8x16xf32>
    %cst_119 = arith.constant dense<0.000000e+00> : vector<2x8xf32>
    %216 = vector.multi_reduction <add>, %215, %cst_119 [2] : vector<2x8x16xf32> to vector<2x8xf32>
    %217 = vector.shape_cast %216 : vector<2x8xf32> to vector<2x8x1xf32>
    %218 = tpu.reciprocal %217 {approx = true} : vector<2x8x1xf32> -> vector<2x8x1xf32>
    %219 = arith.mulf %217, %218 : vector<2x8x1xf32>
    %cst_120 = arith.constant 2.000000e+00 : f32
    %220 = vector.broadcast %cst_120 : f32 to vector<2x8x1xf32>
    %221 = arith.subf %220, %219 : vector<2x8x1xf32>
    %222 = arith.mulf %218, %221 : vector<2x8x1xf32>
    %223 = vector.broadcast %222 : vector<2x8x1xf32> to vector<2x8x16xf32>
    %224 = arith.mulf %215, %223 : vector<2x8x16xf32>
    %225 = arith.truncf %224 : vector<2x8x16xf32> to vector<2x8x16xbf16>
    %226 = arith.truncf %65 : vector<2x16x8xf32> to vector<2x16x8xbf16>
    "tpu.trace_start"() <{level = 10 : i32, message = "bqk,bkd->bqd"}> : () -> ()
    %cst_121 = arith.constant dense<0.000000e+00> : vector<2x8x8xf32>
    %227 = tpu.matmul %225, %226, %cst_121 {dimension_numbers = #tpu.dot_dimension_numbers<[2], [1], [1], [2], [0, 0, 0, 1, 1, 2], [0], [0]>} : vector<2x8x16xbf16>, vector<2x16x8xbf16>, vector<2x8x8xf32> -> vector<2x8x8xf32>
    "tpu.trace_stop"() : () -> ()
    %228 = arith.addf %117, %227 : vector<2x8x8xf32>
    %229 = vector.shape_cast %228 : vector<2x8x8xf32> to vector<16x8xf32>
    %230 = arith.truncf %229 : vector<16x8xf32> to vector<16x8xbf16>
    %c3_122 = arith.constant 3 : index
    %c0_123 = arith.constant 0 : index
    %c0_124 = arith.constant 0 : index
    %231 = vector.load %arg7[%c3_122, %c0_123, %c0_124] : memref<8x8x32xbf16, #tpu.memory_space<vmem>>, vector<1x8x32xbf16>
    %232 = vector.shape_cast %231 : vector<1x8x32xbf16> to vector<8x32xbf16>
    %cst_125 = arith.constant dense<0.000000e+00> : vector<16x32xf32>
    %233 = tpu.matmul %230, %232, %cst_125 {dimension_numbers = #tpu.dot_dimension_numbers<[1], [0], [0], [1], [0, 0, 1, 1], [], []>} : vector<16x8xbf16>, vector<8x32xbf16>, vector<16x32xf32> -> vector<16x32xf32>
    %234 = arith.addf %205, %233 : vector<16x32xf32>
    %235 = tpu.concatenate %142, %171, %200, %229 in 1 : vector<16x8xf32>, vector<16x8xf32>, vector<16x8xf32>, vector<16x8xf32> -> vector<16x32xf32>
    %c0_126 = arith.constant 0 : index
    %c0_127 = arith.constant 0 : index
    %c0_128 = arith.constant 0 : index
    %236 = vector.load %arg8[%c0_126, %c0_127, %c0_128] : memref<2x1x32xf32, #tpu.memory_space<vmem>>, vector<1x1x32xf32>
    %237 = vector.shape_cast %236 : vector<1x1x32xf32> to vector<1x32xf32>
    %238 = vector.broadcast %237 : vector<1x32xf32> to vector<16x32xf32>
    %239 = arith.addf %234, %238 : vector<16x32xf32>
    %cst_129 = arith.constant 0.000000e+00 : f32
    %240 = vector.broadcast %cst_129 : f32 to vector<16x32xf32>
    %241 = arith.maximumf %239, %240 : vector<16x32xf32>
    %242 = arith.addf %235, %241 : vector<16x32xf32>
    %243 = arith.truncf %242 : vector<16x32xf32> to vector<16x32xbf16>
    %c0_130 = arith.constant 0 : index
    %c0_131 = arith.constant 0 : index
    %c0_132 = arith.constant 0 : index
    %244 = vector.load %arg5[%c0_130, %c0_131, %c0_132] : memref<8x32x8xbf16, #tpu.memory_space<vmem>>, vector<1x32x8xbf16>
    %245 = vector.shape_cast %244 : vector<1x32x8xbf16> to vector<32x8xbf16>
    %cst_133 = arith.constant dense<0.000000e+00> : vector<16x8xf32>
    %246 = tpu.matmul %243, %245, %cst_133 {dimension_numbers = #tpu.dot_dimension_numbers<[1], [0], [0], [1], [0, 0, 1, 1], [], []>} : vector<16x32xbf16>, vector<32x8xbf16>, vector<16x8xf32> -> vector<16x8xf32>
    %c0_134 = arith.constant 0 : index
    %c0_135 = arith.constant 0 : index
    %c0_136 = arith.constant 0 : index
    %247 = vector.load %arg6[%c0_134, %c0_135, %c0_136] : memref<8x1x8xf32, #tpu.memory_space<vmem>>, vector<1x1x8xf32>
    %248 = vector.shape_cast %247 : vector<1x1x8xf32> to vector<1x8xf32>
    %249 = vector.broadcast %248 : vector<1x8xf32> to vector<16x8xf32>
    %250 = arith.addf %246, %249 : vector<16x8xf32>
    %251 = vector.shape_cast %250 : vector<16x8xf32> to vector<2x8x8xf32>
    %c1_137 = arith.constant 1 : index
    %c0_138 = arith.constant 0 : index
    %c0_139 = arith.constant 0 : index
    %252 = vector.load %arg5[%c1_137, %c0_138, %c0_139] : memref<8x32x8xbf16, #tpu.memory_space<vmem>>, vector<1x32x8xbf16>
    %253 = vector.shape_cast %252 : vector<1x32x8xbf16> to vector<32x8xbf16>
    %cst_140 = arith.constant dense<0.000000e+00> : vector<16x8xf32>
    %254 = tpu.matmul %243, %253, %cst_140 {dimension_numbers = #tpu.dot_dimension_numbers<[1], [0], [0], [1], [0, 0, 1, 1], [], []>} : vector<16x32xbf16>, vector<32x8xbf16>, vector<16x8xf32> -> vector<16x8xf32>
    %c1_141 = arith.constant 1 : index
    %c0_142 = arith.constant 0 : index
    %c0_143 = arith.constant 0 : index
    %255 = vector.load %arg6[%c1_141, %c0_142, %c0_143] : memref<8x1x8xf32, #tpu.memory_space<vmem>>, vector<1x1x8xf32>
    %256 = vector.shape_cast %255 : vector<1x1x8xf32> to vector<1x8xf32>
    %257 = vector.broadcast %256 : vector<1x8xf32> to vector<16x8xf32>
    %258 = arith.addf %254, %257 : vector<16x8xf32>
    %259 = vector.shape_cast %258 : vector<16x8xf32> to vector<2x8x8xf32>
    %c2_144 = arith.constant 2 : index
    %c0_145 = arith.constant 0 : index
    %c0_146 = arith.constant 0 : index
    %260 = vector.load %arg5[%c2_144, %c0_145, %c0_146] : memref<8x32x8xbf16, #tpu.memory_space<vmem>>, vector<1x32x8xbf16>
    %261 = vector.shape_cast %260 : vector<1x32x8xbf16> to vector<32x8xbf16>
    %cst_147 = arith.constant dense<0.000000e+00> : vector<16x8xf32>
    %262 = tpu.matmul %243, %261, %cst_147 {dimension_numbers = #tpu.dot_dimension_numbers<[1], [0], [0], [1], [0, 0, 1, 1], [], []>} : vector<16x32xbf16>, vector<32x8xbf16>, vector<16x8xf32> -> vector<16x8xf32>
    %c2_148 = arith.constant 2 : index
    %c0_149 = arith.constant 0 : index
    %c0_150 = arith.constant 0 : index
    %263 = vector.load %arg6[%c2_148, %c0_149, %c0_150] : memref<8x1x8xf32, #tpu.memory_space<vmem>>, vector<1x1x8xf32>
    %264 = vector.shape_cast %263 : vector<1x1x8xf32> to vector<1x8xf32>
    %265 = vector.broadcast %264 : vector<1x8xf32> to vector<16x8xf32>
    %266 = arith.addf %262, %265 : vector<16x8xf32>
    %267 = vector.shape_cast %266 : vector<16x8xf32> to vector<2x8x8xf32>
    %c3_151 = arith.constant 3 : index
    %c0_152 = arith.constant 0 : index
    %c0_153 = arith.constant 0 : index
    %268 = vector.load %arg5[%c3_151, %c0_152, %c0_153] : memref<8x32x8xbf16, #tpu.memory_space<vmem>>, vector<1x32x8xbf16>
    %269 = vector.shape_cast %268 : vector<1x32x8xbf16> to vector<32x8xbf16>
    %cst_154 = arith.constant dense<0.000000e+00> : vector<16x8xf32>
    %270 = tpu.matmul %243, %269, %cst_154 {dimension_numbers = #tpu.dot_dimension_numbers<[1], [0], [0], [1], [0, 0, 1, 1], [], []>} : vector<16x32xbf16>, vector<32x8xbf16>, vector<16x8xf32> -> vector<16x8xf32>
    %c3_155 = arith.constant 3 : index
    %c0_156 = arith.constant 0 : index
    %c0_157 = arith.constant 0 : index
    %271 = vector.load %arg6[%c3_155, %c0_156, %c0_157] : memref<8x1x8xf32, #tpu.memory_space<vmem>>, vector<1x1x8xf32>
    %272 = vector.shape_cast %271 : vector<1x1x8xf32> to vector<1x8xf32>
    %273 = vector.broadcast %272 : vector<1x8xf32> to vector<16x8xf32>
    %274 = arith.addf %270, %273 : vector<16x8xf32>
    %275 = vector.shape_cast %274 : vector<16x8xf32> to vector<2x8x8xf32>
    %c4_158 = arith.constant 4 : index
    %c0_159 = arith.constant 0 : index
    %c0_160 = arith.constant 0 : index
    %276 = vector.load %arg5[%c4_158, %c0_159, %c0_160] : memref<8x32x8xbf16, #tpu.memory_space<vmem>>, vector<1x32x8xbf16>
    %277 = vector.shape_cast %276 : vector<1x32x8xbf16> to vector<32x8xbf16>
    %cst_161 = arith.constant dense<0.000000e+00> : vector<16x8xf32>
    %278 = tpu.matmul %243, %277, %cst_161 {dimension_numbers = #tpu.dot_dimension_numbers<[1], [0], [0], [1], [0, 0, 1, 1], [], []>} : vector<16x32xbf16>, vector<32x8xbf16>, vector<16x8xf32> -> vector<16x8xf32>
    %c4_162 = arith.constant 4 : index
    %c0_163 = arith.constant 0 : index
    %c0_164 = arith.constant 0 : index
    %279 = vector.load %arg6[%c4_162, %c0_163, %c0_164] : memref<8x1x8xf32, #tpu.memory_space<vmem>>, vector<1x1x8xf32>
    %280 = vector.shape_cast %279 : vector<1x1x8xf32> to vector<1x8xf32>
    %281 = vector.broadcast %280 : vector<1x8xf32> to vector<16x8xf32>
    %282 = arith.addf %278, %281 : vector<16x8xf32>
    %283 = vector.shape_cast %282 : vector<16x8xf32> to vector<2x8x8xf32>
    %c5_165 = arith.constant 5 : index
    %c0_166 = arith.constant 0 : index
    %c0_167 = arith.constant 0 : index
    %284 = vector.load %arg5[%c5_165, %c0_166, %c0_167] : memref<8x32x8xbf16, #tpu.memory_space<vmem>>, vector<1x32x8xbf16>
    %285 = vector.shape_cast %284 : vector<1x32x8xbf16> to vector<32x8xbf16>
    %cst_168 = arith.constant dense<0.000000e+00> : vector<16x8xf32>
    %286 = tpu.matmul %243, %285, %cst_168 {dimension_numbers = #tpu.dot_dimension_numbers<[1], [0], [0], [1], [0, 0, 1, 1], [], []>} : vector<16x32xbf16>, vector<32x8xbf16>, vector<16x8xf32> -> vector<16x8xf32>
    %c5_169 = arith.constant 5 : index
    %c0_170 = arith.constant 0 : index
    %c0_171 = arith.constant 0 : index
    %287 = vector.load %arg6[%c5_169, %c0_170, %c0_171] : memref<8x1x8xf32, #tpu.memory_space<vmem>>, vector<1x1x8xf32>
    %288 = vector.shape_cast %287 : vector<1x1x8xf32> to vector<1x8xf32>
    %289 = vector.broadcast %288 : vector<1x8xf32> to vector<16x8xf32>
    %290 = arith.addf %286, %289 : vector<16x8xf32>
    %291 = vector.shape_cast %290 : vector<16x8xf32> to vector<2x8x8xf32>
    %c6_172 = arith.constant 6 : index
    %c0_173 = arith.constant 0 : index
    %c0_174 = arith.constant 0 : index
    %292 = vector.load %arg5[%c6_172, %c0_173, %c0_174] : memref<8x32x8xbf16, #tpu.memory_space<vmem>>, vector<1x32x8xbf16>
    %293 = vector.shape_cast %292 : vector<1x32x8xbf16> to vector<32x8xbf16>
    %cst_175 = arith.constant dense<0.000000e+00> : vector<16x8xf32>
    %294 = tpu.matmul %243, %293, %cst_175 {dimension_numbers = #tpu.dot_dimension_numbers<[1], [0], [0], [1], [0, 0, 1, 1], [], []>} : vector<16x32xbf16>, vector<32x8xbf16>, vector<16x8xf32> -> vector<16x8xf32>
    %c6_176 = arith.constant 6 : index
    %c0_177 = arith.constant 0 : index
    %c0_178 = arith.constant 0 : index
    %295 = vector.load %arg6[%c6_176, %c0_177, %c0_178] : memref<8x1x8xf32, #tpu.memory_space<vmem>>, vector<1x1x8xf32>
    %296 = vector.shape_cast %295 : vector<1x1x8xf32> to vector<1x8xf32>
    %297 = vector.broadcast %296 : vector<1x8xf32> to vector<16x8xf32>
    %298 = arith.addf %294, %297 : vector<16x8xf32>
    %299 = vector.shape_cast %298 : vector<16x8xf32> to vector<2x8x8xf32>
    %c7_179 = arith.constant 7 : index
    %c0_180 = arith.constant 0 : index
    %c0_181 = arith.constant 0 : index
    %300 = vector.load %arg5[%c7_179, %c0_180, %c0_181] : memref<8x32x8xbf16, #tpu.memory_space<vmem>>, vector<1x32x8xbf16>
    %301 = vector.shape_cast %300 : vector<1x32x8xbf16> to vector<32x8xbf16>
    %cst_182 = arith.constant dense<0.000000e+00> : vector<16x8xf32>
    %302 = tpu.matmul %243, %301, %cst_182 {dimension_numbers = #tpu.dot_dimension_numbers<[1], [0], [0], [1], [0, 0, 1, 1], [], []>} : vector<16x32xbf16>, vector<32x8xbf16>, vector<16x8xf32> -> vector<16x8xf32>
    %c7_183 = arith.constant 7 : index
    %c0_184 = arith.constant 0 : index
    %c0_185 = arith.constant 0 : index
    %303 = vector.load %arg6[%c7_183, %c0_184, %c0_185] : memref<8x1x8xf32, #tpu.memory_space<vmem>>, vector<1x1x8xf32>
    %304 = vector.shape_cast %303 : vector<1x1x8xf32> to vector<1x8xf32>
    %305 = vector.broadcast %304 : vector<1x8xf32> to vector<16x8xf32>
    %306 = arith.addf %302, %305 : vector<16x8xf32>
    %307 = vector.shape_cast %306 : vector<16x8xf32> to vector<2x8x8xf32>
    %cst_186 = arith.constant 0.000000e+00 : f32
    %308 = vector.broadcast %cst_186 : f32 to vector<32x32xf32>
    %309 = arith.truncf %73 : vector<2x16x8xf32> to vector<2x16x8xbf16>
    %310 = arith.truncf %251 : vector<2x8x8xf32> to vector<2x8x8xbf16>
    "tpu.trace_start"() <{level = 10 : i32, message = "bqd,bkd->bqk"}> : () -> ()
    %cst_187 = arith.constant dense<0.000000e+00> : vector<2x16x8xf32>
    %311 = tpu.matmul %309, %310, %cst_187 {dimension_numbers = #tpu.dot_dimension_numbers<[2], [2], [1], [1], [0, 0, 0, 1, 1, 1], [0], [0]>} : vector<2x16x8xbf16>, vector<2x8x8xbf16>, vector<2x16x8xf32> -> vector<2x16x8xf32>
    "tpu.trace_stop"() : () -> ()
    %cst_188 = arith.constant 0.176776692 : f32
    %312 = vector.broadcast %cst_188 : f32 to vector<2x16x8xf32>
    %313 = arith.mulf %311, %312 : vector<2x16x8xf32>
    %cst_189 = arith.constant dense<0xFF800000> : vector<2x16xf32>
    %314 = vector.multi_reduction <maximumf>, %313, %cst_189 [2] : vector<2x16x8xf32> to vector<2x16xf32>
    %315 = vector.shape_cast %314 : vector<2x16xf32> to vector<2x16x1xf32>
    %316 = vector.broadcast %315 : vector<2x16x1xf32> to vector<2x16x8xf32>
    %317 = arith.subf %313, %316 : vector<2x16x8xf32>
    %318 = math.exp %317 : vector<2x16x8xf32>
    %cst_190 = arith.constant dense<0.000000e+00> : vector<2x16xf32>
    %319 = vector.multi_reduction <add>, %318, %cst_190 [2] : vector<2x16x8xf32> to vector<2x16xf32>
    %320 = vector.shape_cast %319 : vector<2x16xf32> to vector<2x16x1xf32>
    %321 = tpu.reciprocal %320 {approx = true} : vector<2x16x1xf32> -> vector<2x16x1xf32>
    %322 = arith.mulf %320, %321 : vector<2x16x1xf32>
    %cst_191 = arith.constant 2.000000e+00 : f32
    %323 = vector.broadcast %cst_191 : f32 to vector<2x16x1xf32>
    %324 = arith.subf %323, %322 : vector<2x16x1xf32>
    %325 = arith.mulf %321, %324 : vector<2x16x1xf32>
    %326 = vector.broadcast %325 : vector<2x16x1xf32> to vector<2x16x8xf32>
    %327 = arith.mulf %318, %326 : vector<2x16x8xf32>
    %328 = arith.truncf %327 : vector<2x16x8xf32> to vector<2x16x8xbf16>
    %329 = arith.truncf %283 : vector<2x8x8xf32> to vector<2x8x8xbf16>
    "tpu.trace_start"() <{level = 10 : i32, message = "bqk,bkd->bqd"}> : () -> ()
    %cst_192 = arith.constant dense<0.000000e+00> : vector<2x16x8xf32>
    %330 = tpu.matmul %328, %329, %cst_192 {dimension_numbers = #tpu.dot_dimension_numbers<[2], [1], [1], [2], [0, 0, 0, 1, 1, 2], [0], [0]>} : vector<2x16x8xbf16>, vector<2x8x8xbf16>, vector<2x16x8xf32> -> vector<2x16x8xf32>
    "tpu.trace_stop"() : () -> ()
    %331 = arith.addf %73, %330 : vector<2x16x8xf32>
    %332 = vector.shape_cast %331 : vector<2x16x8xf32> to vector<32x8xf32>
    %333 = arith.truncf %332 : vector<32x8xf32> to vector<32x8xbf16>
    %c4_193 = arith.constant 4 : index
    %c0_194 = arith.constant 0 : index
    %c0_195 = arith.constant 0 : index
    %334 = vector.load %arg7[%c4_193, %c0_194, %c0_195] : memref<8x8x32xbf16, #tpu.memory_space<vmem>>, vector<1x8x32xbf16>
    %335 = vector.shape_cast %334 : vector<1x8x32xbf16> to vector<8x32xbf16>
    %cst_196 = arith.constant dense<0.000000e+00> : vector<32x32xf32>
    %336 = tpu.matmul %333, %335, %cst_196 {dimension_numbers = #tpu.dot_dimension_numbers<[1], [0], [0], [1], [0, 0, 1, 1], [], []>} : vector<32x8xbf16>, vector<8x32xbf16>, vector<32x32xf32> -> vector<32x32xf32>
    %337 = arith.addf %308, %336 : vector<32x32xf32>
    %338 = arith.truncf %81 : vector<2x16x8xf32> to vector<2x16x8xbf16>
    %339 = arith.truncf %259 : vector<2x8x8xf32> to vector<2x8x8xbf16>
    "tpu.trace_start"() <{level = 10 : i32, message = "bqd,bkd->bqk"}> : () -> ()
    %cst_197 = arith.constant dense<0.000000e+00> : vector<2x16x8xf32>
    %340 = tpu.matmul %338, %339, %cst_197 {dimension_numbers = #tpu.dot_dimension_numbers<[2], [2], [1], [1], [0, 0, 0, 1, 1, 1], [0], [0]>} : vector<2x16x8xbf16>, vector<2x8x8xbf16>, vector<2x16x8xf32> -> vector<2x16x8xf32>
    "tpu.trace_stop"() : () -> ()
    %cst_198 = arith.constant 0.176776692 : f32
    %341 = vector.broadcast %cst_198 : f32 to vector<2x16x8xf32>
    %342 = arith.mulf %340, %341 : vector<2x16x8xf32>
    %cst_199 = arith.constant dense<0xFF800000> : vector<2x16xf32>
    %343 = vector.multi_reduction <maximumf>, %342, %cst_199 [2] : vector<2x16x8xf32> to vector<2x16xf32>
    %344 = vector.shape_cast %343 : vector<2x16xf32> to vector<2x16x1xf32>
    %345 = vector.broadcast %344 : vector<2x16x1xf32> to vector<2x16x8xf32>
    %346 = arith.subf %342, %345 : vector<2x16x8xf32>
    %347 = math.exp %346 : vector<2x16x8xf32>
    %cst_200 = arith.constant dense<0.000000e+00> : vector<2x16xf32>
    %348 = vector.multi_reduction <add>, %347, %cst_200 [2] : vector<2x16x8xf32> to vector<2x16xf32>
    %349 = vector.shape_cast %348 : vector<2x16xf32> to vector<2x16x1xf32>
    %350 = tpu.reciprocal %349 {approx = true} : vector<2x16x1xf32> -> vector<2x16x1xf32>
    %351 = arith.mulf %349, %350 : vector<2x16x1xf32>
    %cst_201 = arith.constant 2.000000e+00 : f32
    %352 = vector.broadcast %cst_201 : f32 to vector<2x16x1xf32>
    %353 = arith.subf %352, %351 : vector<2x16x1xf32>
    %354 = arith.mulf %350, %353 : vector<2x16x1xf32>
    %355 = vector.broadcast %354 : vector<2x16x1xf32> to vector<2x16x8xf32>
    %356 = arith.mulf %347, %355 : vector<2x16x8xf32>
    %357 = arith.truncf %356 : vector<2x16x8xf32> to vector<2x16x8xbf16>
    %358 = arith.truncf %291 : vector<2x8x8xf32> to vector<2x8x8xbf16>
    "tpu.trace_start"() <{level = 10 : i32, message = "bqk,bkd->bqd"}> : () -> ()
    %cst_202 = arith.constant dense<0.000000e+00> : vector<2x16x8xf32>
    %359 = tpu.matmul %357, %358, %cst_202 {dimension_numbers = #tpu.dot_dimension_numbers<[2], [1], [1], [2], [0, 0, 0, 1, 1, 2], [0], [0]>} : vector<2x16x8xbf16>, vector<2x8x8xbf16>, vector<2x16x8xf32> -> vector<2x16x8xf32>
    "tpu.trace_stop"() : () -> ()
    %360 = arith.addf %81, %359 : vector<2x16x8xf32>
    %361 = vector.shape_cast %360 : vector<2x16x8xf32> to vector<32x8xf32>
    %362 = arith.truncf %361 : vector<32x8xf32> to vector<32x8xbf16>
    %c5_203 = arith.constant 5 : index
    %c0_204 = arith.constant 0 : index
    %c0_205 = arith.constant 0 : index
    %363 = vector.load %arg7[%c5_203, %c0_204, %c0_205] : memref<8x8x32xbf16, #tpu.memory_space<vmem>>, vector<1x8x32xbf16>
    %364 = vector.shape_cast %363 : vector<1x8x32xbf16> to vector<8x32xbf16>
    %cst_206 = arith.constant dense<0.000000e+00> : vector<32x32xf32>
    %365 = tpu.matmul %362, %364, %cst_206 {dimension_numbers = #tpu.dot_dimension_numbers<[1], [0], [0], [1], [0, 0, 1, 1], [], []>} : vector<32x8xbf16>, vector<8x32xbf16>, vector<32x32xf32> -> vector<32x32xf32>
    %366 = arith.addf %337, %365 : vector<32x32xf32>
    %367 = arith.truncf %89 : vector<2x16x8xf32> to vector<2x16x8xbf16>
    %368 = arith.truncf %267 : vector<2x8x8xf32> to vector<2x8x8xbf16>
    "tpu.trace_start"() <{level = 10 : i32, message = "bqd,bkd->bqk"}> : () -> ()
    %cst_207 = arith.constant dense<0.000000e+00> : vector<2x16x8xf32>
    %369 = tpu.matmul %367, %368, %cst_207 {dimension_numbers = #tpu.dot_dimension_numbers<[2], [2], [1], [1], [0, 0, 0, 1, 1, 1], [0], [0]>} : vector<2x16x8xbf16>, vector<2x8x8xbf16>, vector<2x16x8xf32> -> vector<2x16x8xf32>
    "tpu.trace_stop"() : () -> ()
    %cst_208 = arith.constant 0.176776692 : f32
    %370 = vector.broadcast %cst_208 : f32 to vector<2x16x8xf32>
    %371 = arith.mulf %369, %370 : vector<2x16x8xf32>
    %cst_209 = arith.constant dense<0xFF800000> : vector<2x16xf32>
    %372 = vector.multi_reduction <maximumf>, %371, %cst_209 [2] : vector<2x16x8xf32> to vector<2x16xf32>
    %373 = vector.shape_cast %372 : vector<2x16xf32> to vector<2x16x1xf32>
    %374 = vector.broadcast %373 : vector<2x16x1xf32> to vector<2x16x8xf32>
    %375 = arith.subf %371, %374 : vector<2x16x8xf32>
    %376 = math.exp %375 : vector<2x16x8xf32>
    %cst_210 = arith.constant dense<0.000000e+00> : vector<2x16xf32>
    %377 = vector.multi_reduction <add>, %376, %cst_210 [2] : vector<2x16x8xf32> to vector<2x16xf32>
    %378 = vector.shape_cast %377 : vector<2x16xf32> to vector<2x16x1xf32>
    %379 = tpu.reciprocal %378 {approx = true} : vector<2x16x1xf32> -> vector<2x16x1xf32>
    %380 = arith.mulf %378, %379 : vector<2x16x1xf32>
    %cst_211 = arith.constant 2.000000e+00 : f32
    %381 = vector.broadcast %cst_211 : f32 to vector<2x16x1xf32>
    %382 = arith.subf %381, %380 : vector<2x16x1xf32>
    %383 = arith.mulf %379, %382 : vector<2x16x1xf32>
    %384 = vector.broadcast %383 : vector<2x16x1xf32> to vector<2x16x8xf32>
    %385 = arith.mulf %376, %384 : vector<2x16x8xf32>
    %386 = arith.truncf %385 : vector<2x16x8xf32> to vector<2x16x8xbf16>
    %387 = arith.truncf %299 : vector<2x8x8xf32> to vector<2x8x8xbf16>
    "tpu.trace_start"() <{level = 10 : i32, message = "bqk,bkd->bqd"}> : () -> ()
    %cst_212 = arith.constant dense<0.000000e+00> : vector<2x16x8xf32>
    %388 = tpu.matmul %386, %387, %cst_212 {dimension_numbers = #tpu.dot_dimension_numbers<[2], [1], [1], [2], [0, 0, 0, 1, 1, 2], [0], [0]>} : vector<2x16x8xbf16>, vector<2x8x8xbf16>, vector<2x16x8xf32> -> vector<2x16x8xf32>
    "tpu.trace_stop"() : () -> ()
    %389 = arith.addf %89, %388 : vector<2x16x8xf32>
    %390 = vector.shape_cast %389 : vector<2x16x8xf32> to vector<32x8xf32>
    %391 = arith.truncf %390 : vector<32x8xf32> to vector<32x8xbf16>
    %c6_213 = arith.constant 6 : index
    %c0_214 = arith.constant 0 : index
    %c0_215 = arith.constant 0 : index
    %392 = vector.load %arg7[%c6_213, %c0_214, %c0_215] : memref<8x8x32xbf16, #tpu.memory_space<vmem>>, vector<1x8x32xbf16>
    %393 = vector.shape_cast %392 : vector<1x8x32xbf16> to vector<8x32xbf16>
    %cst_216 = arith.constant dense<0.000000e+00> : vector<32x32xf32>
    %394 = tpu.matmul %391, %393, %cst_216 {dimension_numbers = #tpu.dot_dimension_numbers<[1], [0], [0], [1], [0, 0, 1, 1], [], []>} : vector<32x8xbf16>, vector<8x32xbf16>, vector<32x32xf32> -> vector<32x32xf32>
    %395 = arith.addf %366, %394 : vector<32x32xf32>
    %396 = arith.truncf %97 : vector<2x16x8xf32> to vector<2x16x8xbf16>
    %397 = arith.truncf %275 : vector<2x8x8xf32> to vector<2x8x8xbf16>
    "tpu.trace_start"() <{level = 10 : i32, message = "bqd,bkd->bqk"}> : () -> ()
    %cst_217 = arith.constant dense<0.000000e+00> : vector<2x16x8xf32>
    %398 = tpu.matmul %396, %397, %cst_217 {dimension_numbers = #tpu.dot_dimension_numbers<[2], [2], [1], [1], [0, 0, 0, 1, 1, 1], [0], [0]>} : vector<2x16x8xbf16>, vector<2x8x8xbf16>, vector<2x16x8xf32> -> vector<2x16x8xf32>
    "tpu.trace_stop"() : () -> ()
    %cst_218 = arith.constant 0.176776692 : f32
    %399 = vector.broadcast %cst_218 : f32 to vector<2x16x8xf32>
    %400 = arith.mulf %398, %399 : vector<2x16x8xf32>
    %cst_219 = arith.constant dense<0xFF800000> : vector<2x16xf32>
    %401 = vector.multi_reduction <maximumf>, %400, %cst_219 [2] : vector<2x16x8xf32> to vector<2x16xf32>
    %402 = vector.shape_cast %401 : vector<2x16xf32> to vector<2x16x1xf32>
    %403 = vector.broadcast %402 : vector<2x16x1xf32> to vector<2x16x8xf32>
    %404 = arith.subf %400, %403 : vector<2x16x8xf32>
    %405 = math.exp %404 : vector<2x16x8xf32>
    %cst_220 = arith.constant dense<0.000000e+00> : vector<2x16xf32>
    %406 = vector.multi_reduction <add>, %405, %cst_220 [2] : vector<2x16x8xf32> to vector<2x16xf32>
    %407 = vector.shape_cast %406 : vector<2x16xf32> to vector<2x16x1xf32>
    %408 = tpu.reciprocal %407 {approx = true} : vector<2x16x1xf32> -> vector<2x16x1xf32>
    %409 = arith.mulf %407, %408 : vector<2x16x1xf32>
    %cst_221 = arith.constant 2.000000e+00 : f32
    %410 = vector.broadcast %cst_221 : f32 to vector<2x16x1xf32>
    %411 = arith.subf %410, %409 : vector<2x16x1xf32>
    %412 = arith.mulf %408, %411 : vector<2x16x1xf32>
    %413 = vector.broadcast %412 : vector<2x16x1xf32> to vector<2x16x8xf32>
    %414 = arith.mulf %405, %413 : vector<2x16x8xf32>
    %415 = arith.truncf %414 : vector<2x16x8xf32> to vector<2x16x8xbf16>
    %416 = arith.truncf %307 : vector<2x8x8xf32> to vector<2x8x8xbf16>
    "tpu.trace_start"() <{level = 10 : i32, message = "bqk,bkd->bqd"}> : () -> ()
    %cst_222 = arith.constant dense<0.000000e+00> : vector<2x16x8xf32>
    %417 = tpu.matmul %415, %416, %cst_222 {dimension_numbers = #tpu.dot_dimension_numbers<[2], [1], [1], [2], [0, 0, 0, 1, 1, 2], [0], [0]>} : vector<2x16x8xbf16>, vector<2x8x8xbf16>, vector<2x16x8xf32> -> vector<2x16x8xf32>
    "tpu.trace_stop"() : () -> ()
    %418 = arith.addf %97, %417 : vector<2x16x8xf32>
    %419 = vector.shape_cast %418 : vector<2x16x8xf32> to vector<32x8xf32>
    %420 = arith.truncf %419 : vector<32x8xf32> to vector<32x8xbf16>
    %c7_223 = arith.constant 7 : index
    %c0_224 = arith.constant 0 : index
    %c0_225 = arith.constant 0 : index
    %421 = vector.load %arg7[%c7_223, %c0_224, %c0_225] : memref<8x8x32xbf16, #tpu.memory_space<vmem>>, vector<1x8x32xbf16>
    %422 = vector.shape_cast %421 : vector<1x8x32xbf16> to vector<8x32xbf16>
    %cst_226 = arith.constant dense<0.000000e+00> : vector<32x32xf32>
    %423 = tpu.matmul %420, %422, %cst_226 {dimension_numbers = #tpu.dot_dimension_numbers<[1], [0], [0], [1], [0, 0, 1, 1], [], []>} : vector<32x8xbf16>, vector<8x32xbf16>, vector<32x32xf32> -> vector<32x32xf32>
    %424 = arith.addf %395, %423 : vector<32x32xf32>
    %425 = tpu.concatenate %332, %361, %390, %419 in 1 : vector<32x8xf32>, vector<32x8xf32>, vector<32x8xf32>, vector<32x8xf32> -> vector<32x32xf32>
    %c1_227 = arith.constant 1 : index
    %c0_228 = arith.constant 0 : index
    %c0_229 = arith.constant 0 : index
    %426 = vector.load %arg8[%c1_227, %c0_228, %c0_229] : memref<2x1x32xf32, #tpu.memory_space<vmem>>, vector<1x1x32xf32>
    %427 = vector.shape_cast %426 : vector<1x1x32xf32> to vector<1x32xf32>
    %428 = vector.broadcast %427 : vector<1x32xf32> to vector<32x32xf32>
    %429 = arith.addf %424, %428 : vector<32x32xf32>
    %cst_230 = arith.constant 0.000000e+00 : f32
    %430 = vector.broadcast %cst_230 : f32 to vector<32x32xf32>
    %431 = arith.maximumf %429, %430 : vector<32x32xf32>
    %432 = arith.addf %425, %431 : vector<32x32xf32>
    %c0_231 = arith.constant 0 : index
    %c0_232 = arith.constant 0 : index
    %433 = vector.load %arg9[%c0_231, %c0_232] : memref<32x32xf32, #tpu.memory_space<vmem>>, vector<32x32xf32>
    tpu.vector_store %arg9[%c0_231, %c0_232], %432 {strides = array<i32>} : memref<32x32xf32, #tpu.memory_space<vmem>>, vector<32x32xf32>,
    return
  }
  func.func @transform_0(%arg0: i32) -> (i32, i32, i32) {
    %c0_i32 = arith.constant 0 : i32
    %c0_i32_0 = arith.constant 0 : i32
    %c0_i32_1 = arith.constant 0 : i32
    %c0_i32_2 = arith.constant 0 : i32
    return %c0_i32, %c0_i32_0, %c0_i32_1 : i32, i32, i32
  }
  func.func @transform_1(%arg0: i32) -> (i32, i32) {
    %c0_i32 = arith.constant 0 : i32
    %c0_i32_0 = arith.constant 0 : i32
    return %arg0, %c0_i32 : i32, i32
  }
  func.func @transform_2(%arg0: i32) -> (i32, i32, i32) {
    %c0_i32 = arith.constant 0 : i32
    %c0_i32_0 = arith.constant 0 : i32
    %c0_i32_1 = arith.constant 0 : i32
    %c0_i32_2 = arith.constant 0 : i32
    return %c0_i32, %c0_i32_0, %c0_i32_1 : i32, i32, i32
  }
  func.func @transform_3(%arg0: i32) -> (i32, i32, i32) {
    %c0_i32 = arith.constant 0 : i32
    %c0_i32_0 = arith.constant 0 : i32
    %c0_i32_1 = arith.constant 0 : i32
    %c0_i32_2 = arith.constant 0 : i32
    return %c0_i32, %c0_i32_0, %c0_i32_1 : i32, i32, i32
  }
  func.func @transform_4(%arg0: i32) -> (i32, i32, i32) {
    %c0_i32 = arith.constant 0 : i32
    %c0_i32_0 = arith.constant 0 : i32
    %c0_i32_1 = arith.constant 0 : i32
    %c0_i32_2 = arith.constant 0 : i32
    return %c0_i32, %c0_i32_0, %c0_i32_1 : i32, i32, i32
  }
  func.func @transform_5(%arg0: i32) -> (i32, i32, i32) {
    %c0_i32 = arith.constant 0 : i32
    %c0_i32_0 = arith.constant 0 : i32
    %c0_i32_1 = arith.constant 0 : i32
    %c0_i32_2 = arith.constant 0 : i32
    return %c0_i32, %c0_i32_0, %c0_i32_1 : i32, i32, i32
  }
  func.func @transform_6(%arg0: i32) -> (i32, i32, i32) {
    %c0_i32 = arith.constant 0 : i32
    %c0_i32_0 = arith.constant 0 : i32
    %c0_i32_1 = arith.constant 0 : i32
    %c0_i32_2 = arith.constant 0 : i32
    return %c0_i32, %c0_i32_0, %c0_i32_1 : i32, i32, i32
  }
  func.func @transform_7(%arg0: i32) -> (i32, i32, i32) {
    %c0_i32 = arith.constant 0 : i32
    %c0_i32_0 = arith.constant 0 : i32
    %c0_i32_1 = arith.constant 0 : i32
    %c0_i32_2 = arith.constant 0 : i32
    return %c0_i32, %c0_i32_0, %c0_i32_1 : i32, i32, i32
  }
  func.func @transform_8(%arg0: i32) -> (i32, i32) {
    %c0_i32 = arith.constant 0 : i32
    %c0_i32_0 = arith.constant 0 : i32
    return %arg0, %c0_i32 : i32, i32
  }
}

</mosaic_0001>

<bundles_post_ra>
// kernel: tpu_custom_call.1
= control target key start
LH: loop header
LB: loop body
LE: loop exit
PB: predicated region body
PF: predicated region fallthrough
CT: control target
= control target key end

     0   :  { %vm52_vm0 = vcmask 130048   ;;  %s5784_s0 = inlined_call_operand.vmem [shape: f32[4,8,8], index: 0, kind: input, shape index: {}]   ;;  %s5785_s1 = inlined_call_operand.vmem [shape: f32[32,16], index: 1, kind: input, shape index: {}]   ;;  %s5786_s2 = inlined_call_operand.vmem [shape: bf16[12,16,8], index: 2, kind: input, shape index: {}]   ;;  %s5787_s3 = inlined_call_operand.vmem [shape: f32[12,1,8], index: 3, kind: input, shape index: {}]   ;;  %s5788_s4 = inlined_call_operand.vmem [shape: bf16[8,32,8], index: 4, kind: input, shape index: {}]   ;;  %s5789_s5 = inlined_call_operand.vmem [shape: f32[8,1,8], index: 5, kind: input, shape index: {}]   ;;  %s5790_s6 = inlined_call_operand.vmem [shape: bf16[8,8,32], index: 6, kind: input, shape index: {}]   ;;  %s5791_s7 = inlined_call_operand.vmem [shape: f32[2,1,32], index: 7, kind: input, shape index: {}]   ;;  %s5792_s8 = inlined_call_operand.hbm [shape: f32[32,32], index: 8, kind: output, shape index: {}]  }
   0x1   :  { %v4609_v0 = vld [vmem:[%s5786_s2] sm:$0xff]   ;;  %v32_v2 = vld [vmem:[%s5785_s1 + $0x8] sm:$0xff]  ;;  %v33_v3 = vld [vmem:[%s5785_s1 + $0x10] sm:$0xff] }
   0x2   :  { %v31_v1 = vld [vmem:[%s5785_s1] sm:$0xff]  ;;  %4222 = vmatprep.subr.bf16.mxu0 %v4609_v0  ;;  %v34_v5 = vld [vmem:[%s5785_s1 + $0x18] sm:$0xff]  ;;  %v4610_v7 = vld [vmem:[%s5786_s2 + $0x8] sm:$0xff]  }
   0x3   :  { %v35_v4 = vpack.c.bf16 %v32_v2, %v31_v1  ;;  %4223 = vmatpush3.bf16.msra.mxu0 %v4609_v0  ;;  %v36_v6 = vpack.c.bf16 %v34_v5, %v33_v3  ;;  %v4611_v8 = vld [vmem:[%s5786_s2 + $0x10] sm:$0xff]   ;;  %4228 = vmatprep.subr.bf16.mxu1 %v4610_v7  ;;  %v4612_v9 = vld [vmem:[%s5786_s2 + $0x18] sm:$0xff]   ;;  %v4613_v10 = vld [vmem:[%s5786_s2 + $0x20] sm:$0xff]  }
   0x4   :  { %4229 = vmatpush3.bf16.msra.mxu1 %v4610_v7  ;;  %4234 = vmatprep.subr.bf16.mxu0 %v4611_v8  ;;  %v4614_v11 = vld [vmem:[%s5786_s2 + $0x28] sm:$0xff]   ;;  %v4615_v12 = vld [vmem:[%s5786_s2 + $0x30] sm:$0xff]   ;;  %v4616_v13 = vld [vmem:[%s5786_s2 + $0x38] sm:$0xff]  }
   0x5   :  { %4224 = vmatprep.mubr.msk.bf16.mxu0 %vm52_vm0, %v35_v4  ;;  %4230 = vmatprep.mubr.msk.bf16.mxu1 %vm52_vm0, %v35_v4  ;;  %v4617_v14 = vld [vmem:[%s5786_s2 + $0x40] sm:$0xff]   ;;  %v4618_v15 = vld [vmem:[%s5786_s2 + $0x48] sm:$0xff]  }
   0x6   :  { %4225 = vmatmul.mubr.msk.bf16.vlgmr.msra.gmra.mxu0 %vm52_vm0, %v36_v6  ;;  %4240 = vmatprep.subr.bf16.mxu1 %v4612_v9 }
   0x7   :  { %4236 = vmatprep.mubr.msk.bf16.mxu0 %vm52_vm0, %v35_v4  ;;  %4235 = vmatpush3.bf16.msra.mxu0 %v4611_v8 }
   0x8   :  { %4231 = vmatmul.mubr.msk.bf16.vlgmr.msra.gmra.mxu1 %vm52_vm0, %v36_v6  ;;  %4246 = vmatprep.subr.bf16.mxu0 %v4613_v10 }
   0x9   :  { %4241 = vmatpush3.bf16.msra.mxu1 %v4612_v9  ;;  %4242 = vmatprep.mubr.msk.bf16.mxu1 %vm52_vm0, %v35_v4 }
   0xa   :  { %4252 = vmatprep.subr.bf16.mxu1 %v4614_v11 }
   0xe   :  { %4237 = vmatmul.mubr.msk.bf16.vlgmr.msra.gmra.mxu0 %vm52_vm0, %v36_v6 }
   0xf   :  { %4247 = vmatpush3.bf16.msra.mxu0 %v4613_v10  ;;  %4248 = vmatprep.mubr.msk.bf16.mxu0 %vm52_vm0, %v35_v4 }
  0x10   :  { %4258 = vmatprep.subr.bf16.mxu0 %v4615_v12  ;;  %4243 = vmatmul.mubr.msk.bf16.vlgmr.msra.gmra.mxu1 %vm52_vm0, %v36_v6 }
  0x11   :  { %4253 = vmatpush3.bf16.msra.mxu1 %v4614_v11  ;;  %4254 = vmatprep.mubr.msk.bf16.mxu1 %vm52_vm0, %v35_v4 }
  0x12   :  { %4264 = vmatprep.subr.bf16.mxu1 %v4616_v13 }
  0x16   :  { %4249 = vmatmul.mubr.msk.bf16.vlgmr.msra.gmra.mxu0 %vm52_vm0, %v36_v6 }
  0x17   :  { %4259 = vmatpush3.bf16.msra.mxu0 %v4615_v12  ;;  %4260 = vmatprep.mubr.msk.bf16.mxu0 %vm52_vm0, %v35_v4 }
  0x18   :  { %13 = vsyncpa [#allocation3], 0  ;;  %4270 = vmatprep.subr.bf16.mxu0 %v4617_v14  ;;  %4255 = vmatmul.mubr.msk.bf16.vlgmr.msra.gmra.mxu1 %vm52_vm0, %v36_v6  ;;  %v4619_v16 = vld [vmem:[%s5786_s2 + $0x50] sm:$0xff]   ;;  %v4620_v17 = vld [vmem:[%s5786_s2 + $0x58] sm:$0xff]   ;;  %v4757_v18 = vmov 0.0   ;;  %vm4758_vm1 = vmmov 0  }
  0x19   :  { %4265 = vmatpush3.bf16.msra.mxu1 %v4616_v13  ;;  %4266 = vmatprep.mubr.msk.bf16.mxu1 %vm52_vm0, %v35_v4  ;;  %v3873_v20 = vld [vmem:[%s5787_s3] ss:$0 sm:$0xff]  ;;  %v4893_v23 = vld [vmem:[%s5787_s3 + $0x1] ss:$0 sm:$0xff]  ;;  %vm844_vm2 = vcmask 64512   ;;  %vm1278_vm3 = vcmask 1043456  }
  0x1a   :  { %4276 = vmatprep.subr.bf16.mxu1 %v4618_v15  ;;  %v3887_v36 = vld [vmem:[%s5787_s3 + $0x2] ss:$0 sm:$0xff]  ;;  %v4912_v40 = vld [vmem:[%s5787_s3 + $0x3] ss:$0 sm:$0xff]  ;;  %v3901_v59 = vld [vmem:[%s5787_s3 + $0x4] ss:$0 sm:$0xff] }
  0x1b   :  { %v4917_v41 = vld [vmem:[%s5784_s0] sm:$0xff]  ;;  %s4759_s21 = smov 8   ;;  %s4760_s22 = smov 24   ;;  %vm1930_vm4 = vcmask 195584   ;;  %vm1970_vm5 = vcmask 261120  }
  0x1c   :  { %v841_v50 = vpack.c.bf16 %v4917_v41, %v4917_v41  ;;  %v3908_v2 = vld [vmem:[%s5787_s3 + $0x5] ss:$0 sm:$0xff]  ;;  %s4761_s23 = smov 16  }
  0x1e   :  { %4261 = vmatmul.mubr.msk.bf16.vlgmr.msra.gmra.mxu0 %vm52_vm0, %v36_v6 }
  0x1f   :  { %4271 = vmatpush3.bf16.msra.mxu0 %v4617_v14  ;;  %4272 = vmatprep.mubr.msk.bf16.mxu0 %vm52_vm0, %v35_v4 }
  0x20   :  { %4267 = vmatmul.mubr.msk.bf16.vlgmr.msra.gmra.mxu1 %vm52_vm0, %v36_v6  ;;  %4282 = vmatprep.subr.bf16.mxu0 %v4619_v16 }
  0x21   :  { %4277 = vmatpush3.bf16.msra.mxu1 %v4618_v15  ;;  %4278 = vmatprep.mubr.msk.bf16.mxu1 %vm52_vm0, %v35_v4  ;;  %v3915_v15 = vld [vmem:[%s5787_s3 + $0x6] ss:$0 sm:$0xff] }
  0x22   :  { %4288 = vmatprep.subr.bf16.mxu1 %v4620_v17 }
  0x26   :  { %4273 = vmatmul.mubr.msk.bf16.vlgmr.msra.gmra.mxu0 %vm52_vm0, %v36_v6 }
  0x27   :  { %4284 = vmatprep.mubr.msk.bf16.mxu0 %vm52_vm0, %v35_v4  ;;  %4283 = vmatpush3.bf16.msra.mxu0 %v4619_v16 }
  0x28   :  { %4279 = vmatmul.mubr.msk.bf16.vlgmr.msra.gmra.mxu1 %vm52_vm0, %v36_v6  ;;  %4294 = vmatprep.subr.bf16.mxu0 %v4757_v18 }
  0x29   :  { %4290 = vmatprep.mubr.msk.bf16.mxu1 %vm52_vm0, %v35_v4  ;;  %4289 = vmatpush3.bf16.msra.mxu1 %v4620_v17 }
  0x2a   :  { %4300 = vmatprep.subr.bf16.mxu1 %v4757_v18 }
  0x2e   :  { %4285 = vmatmul.mubr.msk.bf16.vlgmr.msra.gmra.mxu0 %vm52_vm0, %v36_v6 }
  0x2f   :  { %4296 = vmatprep.mubr.msk.bf16.mxu0 %vm4758_vm1, %v4757_v18 }
  0x30   :  { %4291 = vmatmul.mubr.msk.bf16.vlgmr.msra.gmra.mxu1 %vm52_vm0, %v36_v6 }
  0x31   :  { %4302 = vmatprep.mubr.msk.bf16.mxu1 %vm4758_vm1, %v4757_v18 }
  0xc6   :  { %v4226_v19 = vpop.f32.mrf.mxu0 }
  0xc7   :  { %v102_v25 = vadd.f32 %v4226_v19, %v3873_v20  ;;  %v3922_v19 = vld [vmem:[%s5787_s3 + $0x7] ss:$0 sm:$0xff] }
  0xc8   :  { %v93_v21 = vpop.f32.mrf.mxu0  ;;  %v4232_v22 = vpop.f32.mrf.mxu1 }
  0xc9   :  { %v4898_v29 = vadd.f32 %v4232_v22, %v4893_v23  ;;  %v94_v30 = vadd.f32 %v3873_v20, %v93_v21 }
  0xca   :  { %v4227_v24 = vpop.f32.mrf.mxu0  ;;  %v4895_v27 = vpop.f32.mrf.mxu1 }
  0xcb   :  { %v105_v26 = vadd.f32 %v4227_v24, %v3873_v20 }
  0xcc   :  { %v96_v28 = vpop.f32.mrf.mxu0  ;;  %v4233_v33 = vpop.f32.mrf.mxu1 }
  0xcd   :  { %v843_v31 = vpack.c.bf16 %v105_v26, %v102_v25  ;;  %v97_v32 = vadd.f32 %v3873_v20, %v96_v28  ;;  %v4901_v34 = vadd.f32 %v4233_v33, %v4893_v23 }
  0xce   :  { %v4238_v35 = vpop.f32.mrf.mxu0  ;;  %v4907_v39 = vpop.f32.mrf.mxu1 }
  0xcf   :  { %v842_v37 = vpack.c.bf16 %v97_v32, %v94_v30  ;;  %v892_v38 = vsel %vm844_vm2, %v843_v31, 0  ;;  %v1060_v42 = vpack.c.bf16 %v4901_v34, %v4898_v29  ;;  %v4922_v45 = vadd.f32 %v4238_v35, %v3887_v36 }
  0xd0   :  { %4301 = vmatpush3.bf16.xpose.msra.mxu1 %v892_v38  ;;  %v225_v43 = vpop.f32.mrf.mxu0  ;;  %v4244_v47 = vpop.f32.mrf.mxu1 }
  0xd1   :  { %v849_v44 = vsel %vm844_vm2, %v842_v37, 0  ;;  %v4924_v46 = vadd.f32 %v3887_v36, %v225_v43  ;;  %4312 = vmatprep.subr.bf16.mxu1 %v4757_v18  ;;  %v4928_v49 = vadd.f32 %v4244_v47, %v4912_v40 }
  0xd2   :  { %4295 = vmatpush3.bf16.xpose.msra.mxu0 %v849_v44  ;;  %v4239_v48 = vpop.f32.mrf.mxu0  ;;  %v4934_v52 = vpop.f32.mrf.mxu1 }
  0xd3   :  { %v4932_v51 = vadd.f32 %v4239_v48, %v3887_v36  ;;  %4306 = vmatprep.subr.bf16.mxu0 %v4757_v18 }
  0xd4   :  { %v228_v53 = vpop.f32.mrf.mxu0  ;;  %v4245_v56 = vpop.f32.mrf.mxu1 }
  0xd5   :  { %v4939_v55 = vadd.f32 %v3887_v36, %v228_v53  ;;  %v4942_v57 = vadd.f32 %v4245_v56, %v4912_v40 }
  0xd6   :  { %v4250_v58 = vpop.f32.mrf.mxu0  ;;  %v4950_v61 = vpop.f32.mrf.mxu1 }
  0xd7   :  { %4303 = vmatmul.mubr.msk.bf16.vlgmr.msra.gmra.mxu1 %vm844_vm2, %v841_v50  ;;  %v366_v0 = vadd.f32 %v4250_v58, %v3901_v59 }
  0xd8   :  { %v357_v63 = vpop.f32.mrf.mxu0  ;;  %4314 = vmatprep.mubr.msk.bf16.mxu1 %vm4758_vm1, %v4757_v18  ;;  %v4256_v1 = vpop.f32.mrf.mxu1 }
  0xd9   :  { %4297 = vmatmul.mubr.msk.bf16.vlgmr.msra.gmra.mxu0 %vm844_vm2, %v841_v50  ;;  %v358_v4 = vadd.f32 %v3901_v59, %v357_v63  ;;  %v4962_v7 = vadd.f32 %v4256_v1, %v3908_v2 }
  0xda   :  { %v4251_v3 = vpop.f32.mrf.mxu0  ;;  %4308 = vmatprep.mubr.msk.bf16.mxu0 %vm4758_vm1, %v4757_v18  ;;  %v423_v6 = vpop.f32.mrf.mxu1 }
  0xdb   :  { %v369_v5 = vadd.f32 %v4251_v3, %v3901_v59  ;;  %v4964_v12 = vadd.f32 %v3908_v2, %v423_v6 }
  0xdc   :  { %v360_v8 = vpop.f32.mrf.mxu0  ;;  %v4257_v11 = vpop.f32.mrf.mxu1 }
  0xdd   :  { %v967_v9 = vpack.c.bf16 %v369_v5, %v366_v0  ;;  %v361_v10 = vadd.f32 %v3901_v59, %v360_v8  ;;  %v4966_v13 = vadd.f32 %v4257_v11, %v3908_v2  ;;  %v3943_v5 = vld [vmem:[%s5787_s3 + $0xa] ss:$0 sm:$0xff] }
  0xde   :  { %v4262_v14 = vpop.f32.mrf.mxu0  ;;  %v426_v17 = vpop.f32.mrf.mxu1 }
  0xdf   :  { %v966_v16 = vpack.c.bf16 %v361_v10, %v358_v4  ;;  %4313 = vmatpush3.bf16.msra.mxu1 %v967_v9  ;;  %v4976_v21 = vadd.f32 %v3908_v2, %v426_v17  ;;  %v4979_v24 = vadd.f32 %v4262_v14, %v3915_v15  ;;  %v3950_v9 = vld [vmem:[%s5787_s3 + $0xb] ss:$0 sm:$0xff]  ;;  %v5793_v29 = vpack.c.bf16 %v4966_v13, %v4962_v7 }
  0xe0   :  { %v489_v22 = vpop.f32.mrf.mxu0  ;;  %4324 = vmatprep.subr.bf16.mxu1 %v4757_v18  ;;  %v4268_v26 = vpop.f32.mrf.mxu1 }
  0xe1   :  { %v4981_v25 = vadd.f32 %v3915_v15, %v489_v22  ;;  %4307 = vmatpush3.bf16.msra.mxu0 %v966_v16  ;;  %v1182_v28 = vpack.c.bf16 %v4976_v21, %v4964_v12  ;;  %v4985_v31 = vadd.f32 %v4268_v26, %v3922_v19 }
  0xe2   :  { %v4263_v30 = vpop.f32.mrf.mxu0  ;;  %4318 = vmatprep.subr.bf16.mxu0 %v4757_v18  ;;  %v555_v33 = vpop.f32.mrf.mxu1 }
  0xe3   :  { %v4988_v32 = vadd.f32 %v4263_v30, %v3915_v15  ;;  %v4994_v43 = vadd.f32 %v3922_v19, %v555_v33 }
  0xe4   :  { %v492_v35 = vpop.f32.mrf.mxu0  ;;  %v4269_v38 = vpop.f32.mrf.mxu1 }
  0xe5   :  { %v4992_v37 = vadd.f32 %v3915_v15, %v492_v35  ;;  %v4996_v44 = vadd.f32 %v4269_v38, %v3922_v19 }
  0xe6   :  { %v558_v48 = vpop.f32.mrf.mxu1  ;;  %v5006_v58 = vpop.f32.mrf.mxu0 }
  0xe7   :  { %v5002_v53 = vadd.f32 %v3922_v19, %v558_v48 }
  0xe8   :  { %v5008_v59 = vpop.f32.mrf.mxu0  ;;  %v5010_v63 = vpop.f32.mrf.mxu1 }
  0xea   :  { %v5012_v0 = vpop.f32.mrf.mxu0  ;;  %v5014_v1 = vpop.f32.mrf.mxu1 }
  0xec   :  { %v5016_v2 = vpop.f32.mrf.mxu0  ;;  %v5018_v3 = vpop.f32.mrf.mxu1 }
  0xee   :  { %v5020_v4 = vpop.f32.mrf.mxu0  ;;  %v5025_v6 = vpop.f32.mrf.mxu1 }
  0xf0   :  { %v753_v8 = vpop.f32.mrf.mxu0  ;;  %v4292_v11 = vpop.f32.mrf.mxu1 }
  0xf1   :  { %v5030_v10 = vadd.f32 %v3943_v5, %v753_v8  ;;  %v5032_v14 = vadd.f32 %v4292_v11, %v3950_v9 }
  0xf2   :  { %v5034_v15 = vpop.f32.mrf.mxu1  ;;  %v5038_v19 = vpop.f32.mrf.mxu0 }
  0xf4   :  { %v4293_v16 = vpop.f32.mrf.mxu1  ;;  %v5042_v26 = vpop.f32.mrf.mxu0 }
  0xf5   :  { %v5036_v17 = vadd.f32 %v4293_v16, %v3950_v9 }
  0xf6   :  { %v5040_v22 = vpop.f32.mrf.mxu1 }
 0x197   :  { %v928_v30 = vpop.f32.mrf.mxu1 }
 0x198   :  { %v935_v38 = vmul.f32 0.17677669, %v928_v30 }
 0x199   :  { %v885_v33 = vpop.f32.mrf.mxu0  ;;  %v4304_v35 = vpop.f32.mrf.mxu1 }
 0x19a   :  { %v934_v48 = vmul.f32 0.17677669, %v885_v33  ;;  %v939_v9 = vsel %vm52_vm0, %v935_v38, -inf }
 0x19b   :  { %v4298_v5 = vpop.f32.mrf.mxu0  ;;  %v931_v8 = vpop.f32.mrf.mxu1 }
 0x19c   :  { %v936_v11 = vsel %vm52_vm0, %v934_v48, -inf }
 0x19d   :  { %v4305_v50 = vpop.f32.mrf.mxu1  ;;  %937 = vmax.xlane.f32.xlu0 %v936_v11  ;;  %v888_v62 = vpop.f32.mrf.mxu0 }
 0x19f   :  { %v4299_v16 = vpop.f32.mrf.mxu0 }
 0x1a1   :  { %940 = vmax.xlane.f32.xlu0 %v939_v9 }
 0x226   :  { %v938_v56 = vpop.xlane.xlu0 %937 }
 0x227   :  { %v942_v47 = vsub.f32 %v934_v48, %v938_v56 }
 0x229   :  { %v944_v60 = vmul.f32 1.442695, %v942_v47 }
 0x22a   :  { %v941_v36 = vpop.xlane.xlu0 %940 }
 0x22b   :  { %4637 = vpow2.f32 %v944_v60  ;;  %v943_v54 = vsub.f32 %v935_v38, %v941_v36  ;;  %v160_v60 = vadd.f32 %v4893_v23, %v4895_v27 }
 0x22d   :  { %v946_v35 = vmul.f32 1.442695, %v943_v54  ;;  %v163_v54 = vadd.f32 %v4893_v23, %v4907_v39  ;;  %v5059_v23 = vld [vmem:[%s5784_s0 + $0x8] sm:$0xff]  ;;  %v1108_v39 = vsel %vm844_vm2, %v1060_v42, 0 }
 0x22f   :  { %4639 = vpow2.f32 %v946_v35  ;;  %v1059_v9 = vpack.c.bf16 %v163_v54, %v160_v60 }
 0x238   :  { %v4638_v30 = vpop.eup %4637 }
 0x239   :  { %v948_v33 = vsel %vm52_vm0, %v4638_v30, 0.0 }
 0x23a   :  { %949 = vadd.xlane.f32.xlu1 %v948_v33 }
 0x23c   :  { %v4640_v5 = vpop.eup %4639 }
 0x23d   :  { %v951_v50 = vsel %vm52_vm0, %v4640_v5, 0.0 }
 0x23e   :  { %952 = vadd.xlane.f32.xlu1 %v951_v50 }
 0x2c3   :  { %v950_v62 = vpop.xlane.xlu1 %949 }
 0x2c4   :  { %4641 = vrcp.f32 %v950_v62 }
 0x2c7   :  { %v953_v8 = vpop.xlane.xlu1 %952 }
 0x2c8   :  { %4643 = vrcp.f32 %v953_v8 }
 0x2d1   :  { %v4642_v11 = vpop.eup %4641 }
 0x2d2   :  { %v956_v56 = vmul.f32 %v4642_v11, %v950_v62  ;;  %v1065_v62 = vsel %vm844_vm2, %v1059_v9, 0 }
 0x2d4   :  { %v958_v36 = vsub.f32 2.0, %v956_v56 }
 0x2d5   :  { %v4644_v47 = vpop.eup %4643 }
 0x2d6   :  { %v960_v38 = vmul.f32 %v4642_v11, %v958_v36  ;;  %v957_v48 = vmul.f32 %v4644_v47, %v953_v8 }
 0x2d8   :  { %v962_v16 = vmul.f32 %v4638_v30, %v960_v38  ;;  %v959_v35 = vsub.f32 2.0, %v957_v48  ;;  %v1058_v30 = vpack.c.bf16 %v5059_v23, %v5059_v23 }
 0x2da   :  { %v964_v33 = vpack.c.bf16 %v962_v16, %v962_v16  ;;  %v961_v50 = vmul.f32 %v4644_v47, %v959_v35 }
 0x2dc   :  { %v963_v20 = vmul.f32 %v4640_v5, %v961_v50  ;;  %4309 = vmatmul.mubr.msk.bf16.vlgmr.msra.gmra.mxu0 %vm52_vm0, %v964_v33 }
 0x2dd   :  { %4319 = vmatpush3.bf16.xpose.msra.mxu0 %v1065_v62  ;;  %4320 = vmatprep.mubr.msk.bf16.mxu0 %vm4758_vm1, %v4757_v18 }
 0x2de   :  { %v965_v27 = vpack.c.bf16 %v963_v20, %v963_v20  ;;  %4330 = vmatprep.subr.bf16.mxu0 %v4757_v18 }
 0x2e0   :  { %4315 = vmatmul.mubr.msk.bf16.vlgmr.msra.gmra.mxu1 %vm52_vm0, %v965_v27 }
 0x2e1   :  { %4325 = vmatpush3.bf16.xpose.msra.mxu1 %v1108_v39  ;;  %4326 = vmatprep.mubr.msk.bf16.mxu1 %vm4758_vm1, %v4757_v18 }
 0x2e2   :  { %4336 = vmatprep.subr.bf16.mxu1 %v4757_v18 }
 0x2e4   :  { %4321 = vmatmul.mubr.msk.bf16.vlgmr.msra.gmra.mxu0 %vm844_vm2, %v1058_v30 }
 0x2e5   :  { %4331 = vmatpush3.bf16.msra.mxu0 %v1182_v28  ;;  %4332 = vmatprep.mubr.msk.bf16.mxu0 %vm4758_vm1, %v4757_v18 }
 0x2e6   :  { %4342 = vmatprep.subr.bf16.mxu0 %v4757_v18 }
 0x2e8   :  { %4327 = vmatmul.mubr.msk.bf16.vlgmr.msra.gmra.mxu1 %vm844_vm2, %v1058_v30 }
 0x2e9   :  { %4337 = vmatpush3.bf16.msra.mxu1 %v5793_v29  ;;  %4338 = vmatprep.mubr.msk.bf16.mxu1 %vm4758_vm1, %v4757_v18 }
 0x2ea   :  { %4348 = vmatprep.subr.bf16.mxu1 %v4757_v18 }
 0x39c   :  { %v1005_v34 = vpop.f32.mrf.mxu0 }
 0x39e   :  { %v4310_v42 = vpop.f32.mrf.mxu0 }
 0x3a0   :  { %v1008_v12 = vpop.f32.mrf.mxu0  ;;  %v1048_v20 = vpop.f32.mrf.mxu1 }
 0x3a2   :  { %v4311_v21 = vpop.f32.mrf.mxu0  ;;  %v4316_v28 = vpop.f32.mrf.mxu1 }
 0x3a4   :  { %v1051_v5 = vpop.f32.mrf.mxu1  ;;  %v1101_v8 = vpop.f32.mrf.mxu0 }
 0x3a5   :  { %v1150_v11 = vmul.f32 0.17677669, %v1101_v8 }
 0x3a6   :  { %v4317_v56 = vpop.f32.mrf.mxu1  ;;  %v4322_v60 = vpop.f32.mrf.mxu0 }
 0x3a7   :  { %v1152_v54 = vsel %vm52_vm0, %v1150_v11, -inf }
 0x3a8   :  { %v1144_v7 = vpop.f32.mrf.mxu1  ;;  %1153 = vmax.xlane.f32.xlu0 %v1152_v54  ;;  %v1104_v13 = vpop.f32.mrf.mxu0 }
 0x3a9   :  { %v1151_v36 = vmul.f32 0.17677669, %v1144_v7 }
 0x3aa   :  { %v4323_v47 = vpop.f32.mrf.mxu0  ;;  %v4328_v38 = vpop.f32.mrf.mxu1 }
 0x3ab   :  { %v1155_v48 = vsel %vm52_vm0, %v1151_v36, -inf  ;;  %v1057_v38 = vld [vmem:[%s5790_s6] sm:$0xf] }
 0x3ac   :  { %1156 = vmax.xlane.f32.xlu1 %v1155_v48  ;;  %v1147_v9 = vpop.f32.mrf.mxu1 }
 0x3ae   :  { %v4329_v16 = vpop.f32.mrf.mxu1 }
 0x3af   :  { %v1327_v16 = vsel %vm1278_vm3, %v1057_v38, 0 }
 0x431   :  { %v1154_v35 = vpop.xlane.xlu0 %1153 }
 0x432   :  { %v1158_v33 = vsub.f32 %v1150_v11, %v1154_v35  ;;  %v5101_v35 = vadd.f32 %v1048_v20, %v4917_v41  ;;  %v5119_v20 = vld [vmem:[%s5784_s0 + $0x10] sm:$0xff] }
 0x434   :  { %v1160_v50 = vmul.f32 1.442695, %v1158_v33  ;;  %v5105_v33 = vadd.f32 %v1005_v34, %v4917_v41  ;;  %v1370_v41 = vpack.c.bf16 %v5119_v20, %v5119_v20 }
 0x435   :  { %v1157_v62 = vpop.xlane.xlu1 %1156 }
 0x436   :  { %4645 = vpow2.f32 %v1160_v50  ;;  %v1159_v27 = vsub.f32 %v1151_v36, %v1157_v62  ;;  %v1056_v50 = vpack.c.bf16 %v5101_v35, %v5105_v33  ;;  %v5794_v62 = vpack.c.bf16 %v4932_v51, %v4922_v45  ;;  %v3965_v51 = vld [vmem:[%s5790_s6 + $0x4] sm:$0xf] }
 0x437   :  { %v5795_v45 = vpack.c.bf16 %v4988_v32, %v4979_v24  ;;  %v1280_v34 = vsel %vm1278_vm3, %v3965_v51, 0 }
 0x438   :  { %v1162_v39 = vmul.f32 1.442695, %v1159_v27  ;;  %v1420_v27 = vsel %vm844_vm2, %v5794_v62, 0 }
 0x43a   :  { %4647 = vpow2.f32 %v1162_v39 }
 0x443   :  { %v4646_v30 = vpop.eup %4645 }
 0x444   :  { %v1164_v29 = vsel %vm52_vm0, %v4646_v30, 0.0 }
 0x445   :  { %1165 = vadd.xlane.f32.xlu0 %v1164_v29 }
 0x447   :  { %v4648_v42 = vpop.eup %4647 }
 0x448   :  { %v1167_v12 = vsel %vm52_vm0, %v4648_v42, 0.0 }
 0x449   :  { %1168 = vadd.xlane.f32.xlu1 %v1167_v12 }
 0x4ce   :  { %v1166_v21 = vpop.xlane.xlu0 %1165 }
 0x4cf   :  { %4649 = vrcp.f32 %v1166_v21 }
 0x4d2   :  { %v1169_v28 = vpop.xlane.xlu1 %1168 }
 0x4d3   :  { %4651 = vrcp.f32 %v1169_v28 }
 0x4dc   :  { %v4650_v5 = vpop.eup %4649 }
 0x4dd   :  { %v1172_v8 = vmul.f32 %v4650_v5, %v1166_v21 }
 0x4df   :  { %v1174_v11 = vsub.f32 2.0, %v1172_v8  ;;  %v5796_v8 = vpack.c.bf16 %v4939_v55, %v4924_v46 }
 0x4e0   :  { %v4652_v56 = vpop.eup %4651 }
 0x4e1   :  { %v1176_v60 = vmul.f32 %v4650_v5, %v1174_v11  ;;  %v1173_v54 = vmul.f32 %v4652_v56, %v1169_v28  ;;  %v1377_v11 = vsel %vm844_vm2, %v5796_v8, 0  ;;  %v295_v8 = vadd.f32 %v4912_v40, %v4950_v61 }
 0x4e3   :  { %v1178_v7 = vmul.f32 %v4646_v30, %v1176_v60  ;;  %v1175_v13 = vsub.f32 2.0, %v1173_v54 }
 0x4e5   :  { %v1180_v36 = vpack.c.bf16 %v1178_v7, %v1178_v7  ;;  %v1177_v47 = vmul.f32 %v4652_v56, %v1175_v13  ;;  %v5797_v7 = vpack.c.bf16 %v4992_v37, %v4981_v25 }
 0x4e7   :  { %v1179_v48 = vmul.f32 %v4648_v42, %v1177_v47  ;;  %4333 = vmatmul.mubr.msk.bf16.vlgmr.msra.gmra.mxu0 %vm52_vm0, %v1180_v36 }
 0x4e8   :  { %4344 = vmatprep.mubr.msk.bf16.mxu0 %vm4758_vm1, %v4757_v18  ;;  %4343 = vmatpush3.bf16.msra.mxu0 %v1280_v34 }
 0x4e9   :  { %v1181_v9 = vpack.c.bf16 %v1179_v48, %v1179_v48  ;;  %4354 = vmatprep.subr.bf16.mxu0 %v4757_v18 }
 0x4eb   :  { %4339 = vmatmul.mubr.msk.bf16.vlgmr.msra.gmra.mxu1 %vm52_vm0, %v1181_v9 }
 0x4ec   :  { %4349 = vmatpush3.bf16.msra.mxu1 %v1327_v16  ;;  %4350 = vmatprep.mubr.msk.bf16.mxu1 %vm4758_vm1, %v4757_v18 }
 0x4ed   :  { %4360 = vmatprep.subr.bf16.mxu1 %v4757_v18 }
 0x4f3   :  { %4351 = vmatmul.mubr.msk.bf16.vlgmr.msra.gmra.mxu1 %vm844_vm2, %v1056_v50 }
 0x4f4   :  { %4361 = vmatpush3.bf16.xpose.msra.mxu1 %v1420_v27  ;;  %4362 = vmatprep.mubr.msk.bf16.mxu1 %vm4758_vm1, %v4757_v18 }
 0x4f5   :  { %4372 = vmatprep.subr.bf16.mxu1 %v4757_v18 }
 0x4fb   :  { %4363 = vmatmul.mubr.msk.bf16.vlgmr.msra.gmra.mxu1 %vm844_vm2, %v1370_v41 }
 0x4fc   :  { %4373 = vmatpush3.bf16.msra.mxu1 %v5795_v45  ;;  %4374 = vmatprep.mubr.msk.bf16.mxu1 %vm4758_vm1, %v4757_v18 }
 0x4fd   :  { %4384 = vmatprep.subr.bf16.mxu1 %v4757_v18 }
 0x5a7   :  { %v1221_v39 = vpop.f32.mrf.mxu0 }
 0x5a8   :  { %v5137_v24 = vadd.f32 %v5059_v23, %v1221_v39 }
 0x5a9   :  { %v4334_v30 = vpop.f32.mrf.mxu0 }
 0x5ab   :  { %v1224_v29 = vpop.f32.mrf.mxu0  ;;  %v1264_v42 = vpop.f32.mrf.mxu1 }
 0x5ac   :  { %v5140_v32 = vadd.f32 %v5059_v23, %v1264_v42 }
 0x5ad   :  { %v4335_v12 = vpop.f32.mrf.mxu0  ;;  %v4340_v21 = vpop.f32.mrf.mxu1 }
 0x5ae   :  { %v1272_v28 = vpack.c.bf16 %v5140_v32, %v5137_v24 }
 0x5af   :  { %v1267_v5 = vpop.f32.mrf.mxu1 }
 0x5b0   :  { %4345 = vmatmul.mubr.msk.bf16.vlgmr.msra.gmra.mxu0 %vm844_vm2, %v1272_v28  ;;  %v292_v5 = vadd.f32 %v4912_v40, %v4934_v52  ;;  %v5181_v52 = vld [vmem:[%s5784_s0 + $0x18] sm:$0xff] }
 0x5b1   :  { %4355 = vmatpush3.bf16.xpose.msra.mxu0 %v1377_v11  ;;  %v4341_v56 = vpop.f32.mrf.mxu1  ;;  %4356 = vmatprep.mubr.msk.bf16.mxu0 %vm4758_vm1, %v4757_v18  ;;  %v1636_v40 = vpack.c.bf16 %v5181_v52, %v5181_v52 }
 0x5b2   :  { %4366 = vmatprep.subr.bf16.mxu0 %v4757_v18 }
 0x5b3   :  { %v5152_v23 = vpop.f32.mrf.mxu1 }
 0x5b5   :  { %v4352_v60 = vpop.f32.mrf.mxu1 }
 0x5b6   :  { %v1637_v60 = vpack.c.bf16 %v295_v8, %v292_v5 }
 0x5b7   :  { %v5154_v54 = vpop.f32.mrf.mxu1 }
 0x5b8   :  { %4357 = vmatmul.mubr.msk.bf16.vlgmr.msra.gmra.mxu0 %vm844_vm2, %v1370_v41 }
 0x5b9   :  { %4367 = vmatpush3.bf16.msra.mxu0 %v5797_v7  ;;  %v4353_v46 = vpop.f32.mrf.mxu1  ;;  %4368 = vmatprep.mubr.msk.bf16.mxu0 %vm4758_vm1, %v4757_v18 }
 0x5ba   :  { %4378 = vmatprep.subr.bf16.mxu0 %v4757_v18 }
 0x5bb   :  { %v1456_v55 = vpop.f32.mrf.mxu1 }
 0x5bc   :  { %v1463_v13 = vmul.f32 0.17677669, %v1456_v55  ;;  %v1643_v55 = vsel %vm844_vm2, %v1637_v60, 0 }
 0x5bd   :  { %v4364_v36 = vpop.f32.mrf.mxu1 }
 0x5be   :  { %v1467_v47 = vsel %vm52_vm0, %v1463_v13, -inf  ;;  %v5798_v36 = vpack.c.bf16 %v5002_v53, %v4994_v43 }
 0x5bf   :  { %1468 = vmax.xlane.f32.xlu1 %v1467_v47  ;;  %v1459_v38 = vpop.f32.mrf.mxu1 }
 0x5c1   :  { %v4365_v48 = vpop.f32.mrf.mxu1 }
 0x648   :  { %v1469_v9 = vpop.xlane.xlu1 %1468 }
 0x649   :  { %v1471_v16 = vsub.f32 %v1463_v13, %v1469_v9 }
 0x64b   :  { %v1474_v50 = vmul.f32 1.442695, %v1471_v16 }
 0x64d   :  { %4653 = vpow2.f32 %v1474_v50 }
 0x65a   :  { %v4654_v25 = vpop.eup %4653 }
 0x65b   :  { %v1479_v37 = vsel %vm52_vm0, %v4654_v25, 0.0 }
 0x65c   :  { %1480 = vadd.xlane.f32.xlu1 %v1479_v37 }
 0x670   :  { %v5165_v62 = vpop.f32.mrf.mxu0 }
 0x672   :  { %v4346_v27 = vpop.f32.mrf.mxu0 }
 0x674   :  { %v5167_v41 = vpop.f32.mrf.mxu0 }
 0x676   :  { %v4347_v45 = vpop.f32.mrf.mxu0 }
 0x678   :  { %v1413_v51 = vpop.f32.mrf.mxu0 }
 0x679   :  { %v1462_v34 = vmul.f32 0.17677669, %v1413_v51 }
 0x67a   :  { %v4358_v39 = vpop.f32.mrf.mxu0 }
 0x67b   :  { %v1464_v30 = vsel %vm52_vm0, %v1462_v34, -inf }
 0x67c   :  { %1465 = vmax.xlane.f32.xlu0 %v1464_v30  ;;  %v1416_v29 = vpop.f32.mrf.mxu0 }
 0x67e   :  { %v4359_v42 = vpop.f32.mrf.mxu0 }
 0x6e5   :  { %v1481_v12 = vpop.xlane.xlu1 %1480 }
 0x6e6   :  { %4655 = vrcp.f32 %v1481_v12 }
 0x6f3   :  { %v4656_v21 = vpop.eup %4655 }
 0x6f4   :  { %v1485_v28 = vmul.f32 %v4656_v21, %v1481_v12 }
 0x6f6   :  { %v1487_v11 = vsub.f32 2.0, %v1485_v28  ;;  %v3972_v28 = vld [vmem:[%s5790_s6 + $0x8] sm:$0xf] }
 0x6f7   :  { %v1591_v5 = vsel %vm1278_vm3, %v3972_v28, 0 }
 0x6f8   :  { %v1489_v56 = vmul.f32 %v4656_v21, %v1487_v11 }
 0x6fa   :  { %v1491_v7 = vmul.f32 %v4654_v25, %v1489_v56 }
 0x6fc   :  { %v1493_v46 = vpack.c.bf16 %v1491_v7, %v1491_v7 }
 0x6fe   :  { %4375 = vmatmul.mubr.msk.bf16.vlgmr.msra.gmra.mxu1 %vm52_vm0, %v1493_v46 }
 0x6ff   :  { %4385 = vmatpush3.bf16.xpose.msra.mxu1 %v1643_v55  ;;  %4386 = vmatprep.mubr.msk.bf16.mxu1 %vm4758_vm1, %v4757_v18 }
 0x700   :  { %4396 = vmatprep.subr.bf16.mxu1 %v4757_v18 }
 0x705   :  { %v1466_v61 = vpop.xlane.xlu0 %1465 }
 0x706   :  { %v1470_v13 = vsub.f32 %v1462_v34, %v1466_v61  ;;  %4387 = vmatmul.mubr.msk.bf16.vlgmr.msra.gmra.mxu1 %vm844_vm2, %v1636_v40 }
 0x707   :  { %4397 = vmatpush3.bf16.msra.mxu1 %v5798_v36  ;;  %4398 = vmatprep.mubr.msk.bf16.mxu1 %vm4758_vm1, %v4757_v18 }
 0x708   :  { %v1472_v47 = vmul.f32 1.442695, %v1470_v13  ;;  %4408 = vmatprep.subr.bf16.mxu1 %v4757_v18 }
 0x70a   :  { %4657 = vpow2.f32 %v1472_v47 }
 0x717   :  { %v4658_v38 = vpop.eup %4657 }
 0x718   :  { %v1476_v48 = vsel %vm52_vm0, %v4658_v38, 0.0 }
 0x719   :  { %1477 = vadd.xlane.f32.xlu0 %v1476_v48 }
 0x7a2   :  { %v1478_v9 = vpop.xlane.xlu0 %1477 }
 0x7a3   :  { %4659 = vrcp.f32 %v1478_v9 }
 0x7b0   :  { %v4660_v16 = vpop.eup %4659 }
 0x7b1   :  { %v1484_v50 = vmul.f32 %v4660_v16, %v1478_v9 }
 0x7b3   :  { %v1486_v25 = vsub.f32 2.0, %v1484_v50 }
 0x7b5   :  { %v1488_v37 = vmul.f32 %v4660_v16, %v1486_v25 }
 0x7b7   :  { %v1490_v27 = vmul.f32 %v4658_v38, %v1488_v37  ;;  %v5799_v38 = vpack.c.bf16 %v4942_v57, %v4928_v49 }
 0x7b9   :  { %v1492_v43 = vpack.c.bf16 %v1490_v27, %v1490_v27  ;;  %v1686_v48 = vsel %vm844_vm2, %v5799_v38, 0 }
 0x7bb   :  { %4369 = vmatmul.mubr.msk.bf16.vlgmr.msra.gmra.mxu0 %vm52_vm0, %v1492_v43  ;;  %v1367_v43 = vadd.f32 %v5154_v54, %v5167_v41 }
 0x7bc   :  { %4380 = vmatprep.mubr.msk.bf16.mxu0 %vm4758_vm1, %v4757_v18  ;;  %4379 = vmatpush3.bf16.msra.mxu0 %v1591_v5 }
 0x7bd   :  { %4390 = vmatprep.subr.bf16.mxu0 %v4757_v18 }
 0x7be   :  { %v1576_v53 = vpop.f32.mrf.mxu1 }
 0x7bf   :  { %v1583_v55 = vadd.f32 %v5119_v20, %v1576_v53 }
 0x7c0   :  { %v4376_v45 = vpop.f32.mrf.mxu1 }
 0x7c2   :  { %v1579_v51 = vpop.f32.mrf.mxu1 }
 0x7c4   :  { %v4377_v34 = vpop.f32.mrf.mxu1 }
 0x7c6   :  { %v1679_v39 = vpop.f32.mrf.mxu1 }
 0x7c7   :  { %v1728_v30 = vmul.f32 0.17677669, %v1679_v39 }
 0x7c8   :  { %v4388_v29 = vpop.f32.mrf.mxu1 }
 0x7c9   :  { %v1730_v42 = vsel %vm52_vm0, %v1728_v30, -inf }
 0x7ca   :  { %1731 = vmax.xlane.f32.xlu0 %v1730_v42  ;;  %v1682_v12 = vpop.f32.mrf.mxu1 }
 0x7cc   :  { %v4389_v21 = vpop.f32.mrf.mxu1 }
 0x853   :  { %v1732_v8 = vpop.xlane.xlu0 %1731 }
 0x854   :  { %v1736_v11 = vsub.f32 %v1728_v30, %v1732_v8 }
 0x856   :  { %v1738_v56 = vmul.f32 1.442695, %v1736_v11 }
 0x858   :  { %4661 = vpow2.f32 %v1738_v56 }
 0x865   :  { %v4662_v60 = vpop.eup %4661 }
 0x866   :  { %v1742_v7 = vsel %vm52_vm0, %v4662_v60, 0.0 }
 0x867   :  { %1743 = vadd.xlane.f32.xlu0 %v1742_v7 }
 0x87b   :  { %v1533_v46 = vpop.f32.mrf.mxu0 }
 0x87c   :  { %v1582_v61 = vadd.f32 %v5119_v20, %v1533_v46  ;;  %v5800_v20 = vpack.c.bf16 %v4996_v44, %v4985_v31  ;;  %v1364_v31 = vadd.f32 %v5152_v23, %v5165_v62 }
 0x87d   :  { %1904 = vrot.lane.b32.xlu0 %v5137_v24, %s4759_s21  ;;  %v4370_v13 = vpop.f32.mrf.mxu0 }
 0x87e   :  { %v1584_v36 = vpack.c.bf16 %v1583_v55, %v1582_v61 }
 0x87f   :  { %v1536_v47 = vpop.f32.mrf.mxu0 }
 0x880   :  { %4381 = vmatmul.mubr.msk.bf16.vlgmr.msra.gmra.mxu0 %vm844_vm2, %v1584_v36 }
 0x881   :  { %4391 = vmatpush3.bf16.xpose.msra.mxu0 %v1686_v48  ;;  %v4371_v9 = vpop.f32.mrf.mxu0  ;;  %4392 = vmatprep.mubr.msk.bf16.mxu0 %vm4758_vm1, %v4757_v18 }
 0x882   :  { %4402 = vmatprep.subr.bf16.mxu0 %v4757_v18 }
 0x888   :  { %4393 = vmatmul.mubr.msk.bf16.vlgmr.msra.gmra.mxu0 %vm844_vm2, %v1636_v40 }
 0x889   :  { %4403 = vmatpush3.bf16.msra.mxu0 %v5800_v20  ;;  %4404 = vmatprep.mubr.msk.bf16.mxu0 %vm4758_vm1, %v4757_v18 }
 0x88a   :  { %4414 = vmatprep.subr.bf16.mxu0 %v4757_v18 }
 0x8f0   :  { %v1744_v49 = vpop.xlane.xlu0 %1743 }
 0x8f1   :  { %4663 = vrcp.f32 %v1744_v49 }
 0x8fe   :  { %v4664_v57 = vpop.eup %4663 }
 0x8ff   :  { %v1750_v24 = vmul.f32 %v4664_v57, %v1744_v49 }
 0x901   :  { %v1752_v16 = vsub.f32 2.0, %v1750_v24  ;;  %v4621_v24 = vld [vmem:[%s5788_s4 + $0x8] sm:$0xff]  }
 0x903   :  { %v1754_v50 = vmul.f32 %v4664_v57, %v1752_v16  ;;  %v4622_v16 = vld [vmem:[%s5788_s4 + $0x18] sm:$0xff]  }
 0x905   :  { %v1756_v25 = vmul.f32 %v4662_v60, %v1754_v50  ;;  %v3978_v60 = vld [vmem:[%s5790_s6 + $0xc] sm:$0xf]  ;;  %v4624_v50 = vld [vmem:[%s5788_s4 + $0x10] sm:$0xff]  }
 0x906   :  { %v1857_v7 = vsel %vm1278_vm3, %v3978_v60, 0 }
 0x907   :  { %v1758_v37 = vpack.c.bf16 %v1756_v25, %v1756_v25 }
 0x909   :  { %4399 = vmatmul.mubr.msk.bf16.vlgmr.msra.gmra.mxu1 %vm52_vm0, %v1758_v37 }
 0x90a   :  { %4410 = vmatprep.mubr.msk.bf16.mxu1 %vm4758_vm1, %v4757_v18  ;;  %4409 = vmatpush3.bf16.msra.mxu1 %v1857_v7  ;;  %v4628_v7 = vld [vmem:[%s5788_s4 + $0x30] sm:$0xff]  }
 0x90b   :  { %4422 = vmatprep.subr.bf16.mxu1 %v4757_v18 }
 0x940   :  { %v1627_v44 = vpop.f32.mrf.mxu0 }
 0x941   :  { %v5228_v40 = vadd.f32 %v1627_v44, %v1364_v31  ;;  %v3980_v44 = vld [vmem:[%s5791_s7] ss:$0 sm:$0xff] }
 0x942   :  { %v4382_v27 = vpop.f32.mrf.mxu0 }
 0x944   :  { %v1630_v53 = vpop.f32.mrf.mxu0 }
 0x945   :  { %v5232_v45 = vadd.f32 %v1630_v53, %v1367_v43  ;;  %v1905_v53 = vpop.permute.xlu0 %1904 }
 0x946   :  { %v4383_v51 = vpop.f32.mrf.mxu0 }
 0x948   :  { %v1722_v34 = vpop.f32.mrf.mxu0 }
 0x949   :  { %v1729_v39 = vmul.f32 0.17677669, %v1722_v34 }
 0x94a   :  { %v4394_v30 = vpop.f32.mrf.mxu0 }
 0x94b   :  { %v1733_v29 = vsel %vm52_vm0, %v1729_v39, -inf }
 0x94c   :  { %1734 = vmax.xlane.f32.xlu1 %v1733_v29  ;;  %v1725_v42 = vpop.f32.mrf.mxu0  ;;  %v1926_v29 = vsel %vm844_vm2, %v5105_v33, %v1905_v53 }
 0x94e   :  { %v4395_v12 = vpop.f32.mrf.mxu0 }
 0x9c9   :  { %v1799_v23 = vpop.f32.mrf.mxu1 }
 0x9ca   :  { %v1848_v62 = vadd.f32 %v5181_v52, %v1799_v23 }
 0x9cb   :  { %v4400_v21 = vpop.f32.mrf.mxu1 }
 0x9cc   :  { %1920 = vrot.lane.b32.xlu0 %v1848_v62, %s4760_s22 }
 0x9cd   :  { %v1802_v54 = vpop.f32.mrf.mxu1 }
 0x9cf   :  { %v4401_v41 = vpop.f32.mrf.mxu1 }
 0x9d5   :  { %v1735_v28 = vpop.xlane.xlu1 %1734 }
 0x9d6   :  { %v1737_v5 = vsub.f32 %v1729_v39, %v1735_v28 }
 0x9d8   :  { %v1740_v8 = vmul.f32 1.442695, %v1737_v5 }
 0x9da   :  { %4665 = vpow2.f32 %v1740_v8 }
 0x9e7   :  { %v4666_v11 = vpop.eup %4665 }
 0x9e8   :  { %v1745_v56 = vsel %vm52_vm0, %v4666_v11, 0.0 }
 0x9e9   :  { %1746 = vadd.xlane.f32.xlu1 %v1745_v56  ;;  %v4626_v56 = vld [vmem:[%s5788_s4 + $0x38] sm:$0xff]  }
 0x9fa   :  { %1906 = vrot.lane.b32.xlu1 %v5140_v32, %s4759_s21 }
 0x9fe   :  { %1912 = vrot.lane.b32.xlu1 %v1582_v61, %s4761_s23 }
 0xa02   :  { %1914 = vrot.lane.b32.xlu1 %v1583_v55, %s4761_s23 }
 0xa3e   :  { %v1921_v23 = vpop.permute.xlu0 %1920 }
 0xa72   :  { %v1747_v46 = vpop.xlane.xlu1 %1746 }
 0xa73   :  { %4667 = vrcp.f32 %v1747_v46 }
 0xa76   :  { %v1907_v25 = vpop.permute.xlu1 %1906 }
 0xa7a   :  { %v1913_v37 = vpop.permute.xlu1 %1912 }
 0xa7b   :  { %v1928_v12 = vsel %vm52_vm0, %v1926_v29, %v1913_v37 }
 0xa7c   :  { %v1931_v5 = vsel %vm1930_vm4, %v1928_v12, %v1921_v23 }
 0xa7e   :  { %v1915_v51 = vpop.permute.xlu1 %1914 }
 0xa80   :  { %v4668_v13 = vpop.eup %4667 }
 0xa81   :  { %v1751_v36 = vmul.f32 %v4668_v13, %v1747_v46  ;;  %v4629_v46 = vld [vmem:[%s5788_s4 + $0x48] sm:$0xff]  }
 0xa83   :  { %v1753_v47 = vsub.f32 2.0, %v1751_v36  ;;  %v4631_v36 = vld [vmem:[%s5788_s4 + $0x40] sm:$0xff]  }
 0xa85   :  { %v1755_v32 = vmul.f32 %v4668_v13, %v1753_v47  ;;  %v4630_v13 = vld [vmem:[%s5788_s4 + $0x58] sm:$0xff]   ;;  %v4632_v47 = vld [vmem:[%s5788_s4 + $0x50] sm:$0xff]  }
 0xa87   :  { %v1757_v38 = vmul.f32 %v4666_v11, %v1755_v32  ;;  %v4625_v11 = vld [vmem:[%s5788_s4 + $0x28] sm:$0xff]  }
 0xa88   :  { %v4633_v32 = vld [vmem:[%s5788_s4 + $0x68] sm:$0xff]  }
 0xa89   :  { %v1759_v48 = vpack.c.bf16 %v1757_v38, %v1757_v38  ;;  %v4634_v38 = vld [vmem:[%s5788_s4 + $0x78] sm:$0xff]  }
 0xa8b   :  { %4405 = vmatmul.mubr.msk.bf16.vlgmr.msra.gmra.mxu0 %vm52_vm0, %v1759_v48  ;;  %v4635_v48 = vld [vmem:[%s5788_s4 + $0x60] sm:$0xff]  }
 0xa8c   :  { %4418 = vmatprep.mubr.msk.bf16.mxu0 %vm4758_vm1, %v4757_v18  ;;  %4415 = vmatpush3.bf16.msra.mxu0 %v4621_v24 }
 0xa8d   :  { %4416 = vmatprep.subr.bf16.mxu0 %v4757_v18 }
 0xb4b   :  { %v1842_v55 = vpop.f32.mrf.mxu0 }
 0xb4c   :  { %v1849_v61 = vadd.f32 %v5181_v52, %v1842_v55  ;;  %v4623_v52 = vld [vmem:[%s5788_s4] sm:$0xff]   ;;  %v4636_v55 = vld [vmem:[%s5788_s4 + $0x70] sm:$0xff]  }
 0xb4d   :  { %v4406_v9 = vpop.f32.mrf.mxu0  ;;  %4417 = vmatpush3.bf16.msra.mxu0 %v4623_v52  ;;  %v3929_v52 = vld [vmem:[%s5787_s3 + $0x8] ss:$0 sm:$0xff] }
 0xb4e   :  { %v1850_v20 = vpack.c.bf16 %v1849_v61, %v1848_v62  ;;  %1922 = vrot.lane.b32.xlu1 %v1849_v61, %s4760_s22  ;;  %4430 = vmatprep.subr.bf16.mxu0 %v4757_v18  ;;  %v3981_v61 = vld [vmem:[%s5789_s5] ss:$0 sm:$0xff]  ;;  %v5373_v53 = vadd.f32 %v3929_v52, %v5008_v59  ;;  %v5386_v59 = vadd.f32 %v5006_v58, %v3929_v52 }
 0xb4f   :  { %v1845_v49 = vpop.f32.mrf.mxu0 }
 0xb50   :  { %4411 = vmatmul.mubr.msk.bf16.vlgmr.msra.gmra.mxu1 %vm844_vm2, %v1850_v20 }
 0xb51   :  { %v4407_v57 = vpop.f32.mrf.mxu0  ;;  %4426 = vmatprep.mubr.msk.bf16.mxu1 %vm4758_vm1, %v4757_v18  ;;  %4423 = vmatpush3.bf16.msra.mxu1 %v4622_v16 }
 0xb52   :  { %4424 = vmatprep.subr.bf16.mxu1 %v4757_v18 }
 0xb55   :  { %4425 = vmatpush3.bf16.msra.mxu1 %v4624_v50 }
 0xb56   :  { %4438 = vmatprep.subr.bf16.mxu1 %v4757_v18 }
 0xbc0   :  { %v1923_v62 = vpop.permute.xlu1 %1922 }
 0xc10   :  { %v1893_v31 = vpop.f32.mrf.mxu1 }
 0xc11   :  { %v1900_v27 = vadd.f32 %v1893_v31, %v5228_v40  ;;  %v1927_v40 = vsel %vm844_vm2, %v5101_v35, %v1907_v25  ;;  %v4627_v35 = vld [vmem:[%s5788_s4 + $0x20] sm:$0xff]  }
 0xc12   :  { %v4412_v43 = vpop.f32.mrf.mxu1  ;;  %v1929_v41 = vsel %vm52_vm0, %v1927_v40, %v1915_v51  ;;  %v5376_v51 = vadd.f32 %v3929_v52, %v5016_v2  ;;  %v5389_v2 = vadd.f32 %v5012_v0, %v3929_v52 }
 0xc13   :  { %v1940_v34 = vadd.f32 %v3980_v44, %v1900_v27  ;;  %v5370_v43 = vld [vmem:[%s5789_s5 + $0x2] ss:$0 sm:$0xff] }
 0xc14   :  { %v1896_v39 = vpop.f32.mrf.mxu1 }
 0xc15   :  { %v1901_v30 = vadd.f32 %v1896_v39, %v5232_v45  ;;  %v1942_v21 = vmax.f32 %v1940_v34, 0.0  ;;  %v1932_v45 = vsel %vm1930_vm4, %v1929_v41, %v1923_v62  ;;  %v2477_v62 = vpack.c.bf16 %v5376_v51, %v5373_v53 }
 0xc16   :  { %v4413_v42 = vpop.f32.mrf.mxu1 }
 0xc17   :  { %v1941_v54 = vadd.f32 %v3980_v44, %v1901_v30  ;;  %v1944_v8 = vadd.f32 %v1942_v21, %v1931_v5  ;;  %v5397_v21 = vld [vmem:[%s5789_s5 + $0x3] ss:$0 sm:$0xff]  ;;  %v2478_v5 = vpack.c.bf16 %v5389_v2, %v5386_v59 }
 0xc19   :  { %v1943_v28 = vmax.f32 %v1941_v54, 0.0 }
 0xc1b   :  { %v1945_v33 = vadd.f32 %v1943_v28, %v1932_v45  ;;  %v4017_v28 = vld [vmem:[%s5789_s5 + $0x4] ss:$0 sm:$0xff] }
 0xc1d   :  { %v1946_v60 = vpack.c.bf16 %v1945_v33, %v1944_v8 }
 0xc1f   :  { %4419 = vmatmul.mubr.msk.bf16.vlgmr.msra.gmra.mxu0 %vm1970_vm5, %v1946_v60  ;;  %4427 = vmatmul.mubr.msk.bf16.vlgmr.msra.gmra.mxu1 %vm1970_vm5, %v1946_v60 }
 0xc20   :  { %4431 = vmatpush3.bf16.msra.mxu0 %v4625_v11  ;;  %4439 = vmatpush3.bf16.msra.mxu1 %v4626_v56 }
 0xc21   :  { %4432 = vmatprep.subr.bf16.mxu0 %v4757_v18  ;;  %4440 = vmatprep.subr.bf16.mxu1 %v4757_v18 }
 0xc22   :  { %4434 = vmatprep.mubr.msk.bf16.mxu0 %vm4758_vm1, %v4757_v18  ;;  %4442 = vmatprep.mubr.msk.bf16.mxu1 %vm4758_vm1, %v4757_v18 }
 0xc24   :  { %4433 = vmatpush3.bf16.msra.mxu0 %v4627_v35  ;;  %4441 = vmatpush3.bf16.msra.mxu1 %v4628_v7 }
 0xc25   :  { %4446 = vmatprep.subr.bf16.mxu0 %v4757_v18  ;;  %4454 = vmatprep.subr.bf16.mxu1 %v4757_v18 }
 0xc27   :  { %4435 = vmatmul.mubr.msk.bf16.vlgmr.msra.gmra.mxu0 %vm1970_vm5, %v1946_v60  ;;  %4443 = vmatmul.mubr.msk.bf16.vlgmr.msra.gmra.mxu1 %vm1970_vm5, %v1946_v60 }
 0xc28   :  { %4447 = vmatpush3.bf16.msra.mxu0 %v4629_v46  ;;  %4455 = vmatpush3.bf16.msra.mxu1 %v4630_v13 }
 0xc29   :  { %4448 = vmatprep.subr.bf16.mxu0 %v4757_v18  ;;  %4456 = vmatprep.subr.bf16.mxu1 %v4757_v18 }
 0xc2a   :  { %4450 = vmatprep.mubr.msk.bf16.mxu0 %vm4758_vm1, %v4757_v18  ;;  %4458 = vmatprep.mubr.msk.bf16.mxu1 %vm4758_vm1, %v4757_v18 }
 0xc2c   :  { %4449 = vmatpush3.bf16.msra.mxu0 %v4631_v36  ;;  %4457 = vmatpush3.bf16.msra.mxu1 %v4632_v47 }
 0xc2d   :  { %4462 = vmatprep.subr.bf16.mxu0 %v4757_v18  ;;  %4470 = vmatprep.subr.bf16.mxu1 %v4757_v18 }
 0xc2f   :  { %4451 = vmatmul.mubr.msk.bf16.vlgmr.msra.gmra.mxu0 %vm1970_vm5, %v1946_v60  ;;  %4459 = vmatmul.mubr.msk.bf16.vlgmr.msra.gmra.mxu1 %vm1970_vm5, %v1946_v60 }
 0xc30   :  { %4463 = vmatpush3.bf16.msra.mxu0 %v4633_v32  ;;  %4471 = vmatpush3.bf16.msra.mxu1 %v4634_v38  ;;  %v5423_v32 = vld [vmem:[%s5789_s5 + $0x6] ss:$0 sm:$0xff] }
 0xc31   :  { %4464 = vmatprep.subr.bf16.mxu0 %v4757_v18  ;;  %4472 = vmatprep.subr.bf16.mxu1 %v4757_v18 }
 0xc32   :  { %4466 = vmatprep.mubr.msk.bf16.mxu0 %vm4758_vm1, %v4757_v18  ;;  %4474 = vmatprep.mubr.msk.bf16.mxu1 %vm4758_vm1, %v4757_v18 }
 0xc34   :  { %4465 = vmatpush3.bf16.msra.mxu0 %v4635_v48  ;;  %4473 = vmatpush3.bf16.msra.mxu1 %v4636_v55 }
 0xc35   :  { %4478 = vmatprep.subr.bf16.mxu0 %v4757_v18  ;;  %4484 = vmatprep.subr.bf16.mxu1 %v4757_v18 }
 0xc37   :  { %4467 = vmatmul.mubr.msk.bf16.vlgmr.msra.gmra.mxu0 %vm1970_vm5, %v1946_v60  ;;  %4475 = vmatmul.mubr.msk.bf16.vlgmr.msra.gmra.mxu1 %vm1970_vm5, %v1946_v60 }
 0xc38   :  { %4480 = vmatprep.mubr.msk.bf16.mxu0 %vm4758_vm1, %v4757_v18  ;;  %4486 = vmatprep.mubr.msk.bf16.mxu1 %vm4758_vm1, %v4757_v18 }
 0xcdf   :  { %v2008_v9 = vpop.f32.mrf.mxu0  ;;  %v5359_v20 = vpop.f32.mrf.mxu1 }
 0xce0   :  { %v2009_v49 = vadd.f32 %v3981_v61, %v2008_v9 }
 0xce1   :  { %v4420_v57 = vpop.f32.mrf.mxu0  ;;  %v4428_v24 = vpop.f32.mrf.mxu1 }
 0xce2   :  { %v2479_v16 = vpack.c.bf16 %v2009_v49, %v2009_v49  ;;  %v5436_v24 = vld [vmem:[%s5789_s5 + $0x7] ss:$0 sm:$0xff] }
 0xce3   :  { %v2011_v50 = vpop.f32.mrf.mxu0  ;;  %v5364_v25 = vpop.f32.mrf.mxu1 }
 0xce4   :  { %v2485_v37 = vsel %vm844_vm2, %v2479_v16, 0  ;;  %v2012_v31 = vadd.f32 %v3981_v61, %v2011_v50 }
 0xce5   :  { %v4421_v44 = vpop.f32.mrf.mxu0  ;;  %v4429_v27 = vpop.f32.mrf.mxu1  ;;  %4479 = vmatpush3.bf16.xpose.msra.mxu0 %v2485_v37 }
 0xce6   :  { %v2480_v34 = vpack.c.bf16 %v2012_v31, %v2012_v31  ;;  %4490 = vmatprep.subr.bf16.mxu0 %v4757_v18 }
 0xce7   :  { %v2140_v39 = vpop.f32.mrf.mxu0  ;;  %v5379_v30 = vpop.f32.mrf.mxu1 }
 0xce8   :  { %v2532_v29 = vsel %vm844_vm2, %v2480_v34, 0  ;;  %v5383_v42 = vadd.f32 %v5370_v43, %v2140_v39 }
 0xce9   :  { %v4436_v12 = vpop.f32.mrf.mxu0  ;;  %v4444_v23 = vpop.f32.mrf.mxu1  ;;  %4485 = vmatpush3.bf16.xpose.msra.mxu1 %v2532_v29 }
 0xcea   :  { %4496 = vmatprep.subr.bf16.mxu1 %v4757_v18 }
 0xceb   :  { %v5399_v54 = vpop.f32.mrf.mxu0  ;;  %v2209_v40 = vpop.f32.mrf.mxu1 }
 0xcec   :  { %v5402_v41 = vadd.f32 %v5397_v21, %v2209_v40  ;;  %4481 = vmatmul.mubr.msk.bf16.vlgmr.msra.gmra.mxu0 %vm844_vm2, %v2477_v62 }
 0xced   :  { %v4437_v58 = vpop.f32.mrf.mxu0  ;;  %v4445_v0 = vpop.f32.mrf.mxu1  ;;  %4492 = vmatprep.mubr.msk.bf16.mxu0 %vm4758_vm1, %v4757_v18 }
 0xcef   :  { %v2272_v45 = vpop.f32.mrf.mxu0  ;;  %v5412_v8 = vpop.f32.mrf.mxu1 }
 0xcf0   :  { %v2273_v33 = vadd.f32 %v4017_v28, %v2272_v45  ;;  %4487 = vmatmul.mubr.msk.bf16.vlgmr.msra.gmra.mxu1 %vm844_vm2, %v2478_v5 }
 0xcf1   :  { %v4452_v11 = vpop.f32.mrf.mxu0  ;;  %v4460_v56 = vpop.f32.mrf.mxu1  ;;  %4498 = vmatprep.mubr.msk.bf16.mxu1 %vm4758_vm1, %v4757_v18 }
 0xcf2   :  { %v2637_v60 = vpack.c.bf16 %v2273_v33, %v2273_v33 }
 0xcf3   :  { %v2275_v35 = vpop.f32.mrf.mxu0  ;;  %v5417_v7 = vpop.f32.mrf.mxu1 }
 0xcf4   :  { %v2643_v46 = vsel %vm1278_vm3, %v2637_v60, 0  ;;  %v2276_v13 = vadd.f32 %v4017_v28, %v2275_v35 }
 0xcf5   :  { %v4453_v36 = vpop.f32.mrf.mxu0  ;;  %v4461_v47 = vpop.f32.mrf.mxu1  ;;  %4491 = vmatpush3.bf16.msra.mxu0 %v2643_v46 }
 0xcf6   :  { %v2638_v38 = vpack.c.bf16 %v2276_v13, %v2276_v13  ;;  %4502 = vmatprep.subr.bf16.mxu0 %v4757_v18 }
 0xcf7   :  { %v2404_v48 = vpop.f32.mrf.mxu0  ;;  %v5426_v55 = vpop.f32.mrf.mxu1 }
 0xcf8   :  { %v2690_v61 = vsel %vm1278_vm3, %v2638_v38, 0  ;;  %v5430_v9 = vadd.f32 %v5423_v32, %v2404_v48 }
 0xcf9   :  { %v4468_v49 = vpop.f32.mrf.mxu0  ;;  %v4476_v57 = vpop.f32.mrf.mxu1  ;;  %4497 = vmatpush3.bf16.msra.mxu1 %v2690_v61 }
 0xcfa   :  { %4508 = vmatprep.subr.bf16.mxu1 %v4757_v18 }
 0xcfb   :  { %v5438_v16 = vpop.f32.mrf.mxu0  ;;  %v2473_v52 = vpop.f32.mrf.mxu1 }
 0xcfc   :  { %v5441_v50 = vadd.f32 %v5436_v24, %v2473_v52 }
 0xcfd   :  { %v4469_v37 = vpop.f32.mrf.mxu0  ;;  %v4477_v31 = vpop.f32.mrf.mxu1 }
 0xdac   :  { %v2521_v44 = vpop.f32.mrf.mxu0 }
 0xdad   :  { %v2575_v27 = vmul.f32 0.17677669, %v2521_v44 }
 0xdae   :  { %v4482_v34 = vpop.f32.mrf.mxu0 }
 0xdaf   :  { %v2579_v39 = vsel %vm844_vm2, %v2575_v27, -inf }
 0xdb0   :  { %v2568_v29 = vpop.f32.mrf.mxu1  ;;  %2580 = vmax.xlane.f32.xlu0 %v2579_v39  ;;  %v2524_v12 = vpop.f32.mrf.mxu0 }
 0xdb1   :  { %v2577_v23 = vmul.f32 0.17677669, %v2568_v29  ;;  %v2576_v62 = vmul.f32 0.17677669, %v2524_v12 }
 0xdb2   :  { %v4483_v40 = vpop.f32.mrf.mxu0  ;;  %v4488_v58 = vpop.f32.mrf.mxu1 }
 0xdb3   :  { %v2585_v0 = vsel %vm844_vm2, %v2577_v23, -inf  ;;  %v2582_v28 = vsel %vm844_vm2, %v2576_v62, -inf }
 0xdb4   :  { %v2571_v5 = vpop.f32.mrf.mxu1  ;;  %2586 = vmax.xlane.f32.xlu0 %v2585_v0  ;;  %2583 = vmax.xlane.f32.xlu1 %v2582_v28 }
 0xdb5   :  { %v2578_v45 = vmul.f32 0.17677669, %v2571_v5  ;;  %v3990_v5 = vld [vmem:[%s5789_s5 + $0x1] ss:$0 sm:$0xff] }
 0xdb6   :  { %v4489_v33 = vpop.f32.mrf.mxu1 }
 0xdb7   :  { %v2588_v11 = vsel %vm844_vm2, %v2578_v45, -inf }
 0xdb8   :  { %2589 = vmax.xlane.f32.xlu0 %v2588_v11 }
 0xe39   :  { %v2581_v56 = vpop.xlane.xlu0 %2580 }
 0xe3a   :  { %v2591_v60 = vsub.f32 %v2575_v27, %v2581_v56 }
 0xe3c   :  { %v2595_v35 = vmul.f32 1.442695, %v2591_v60  ;;  %v2075_v60 = vadd.f32 %v3990_v5, %v5359_v20  ;;  %v3936_v20 = vld [vmem:[%s5787_s3 + $0x9] ss:$0 sm:$0xff] }
 0xe3d   :  { %v2587_v46 = vpop.xlane.xlu0 %2586  ;;  %v2584_v13 = vpop.xlane.xlu1 %2583 }
 0xe3e   :  { %4669 = vpow2.f32 %v2595_v35  ;;  %v2593_v36 = vsub.f32 %v2577_v23, %v2587_v46  ;;  %v2592_v47 = vsub.f32 %v2576_v62, %v2584_v13 }
 0xe40   :  { %v2599_v38 = vmul.f32 1.442695, %v2593_v36  ;;  %v2597_v48 = vmul.f32 1.442695, %v2592_v47 }
 0xe41   :  { %v2590_v61 = vpop.xlane.xlu0 %2589 }
 0xe42   :  { %4671 = vpow2.f32 %v2599_v38  ;;  %v2594_v49 = vsub.f32 %v2578_v45, %v2590_v61  ;;  %v2078_v61 = vadd.f32 %v3990_v5, %v5364_v25 }
 0xe43   :  { %4673 = vpow2.f32 %v2597_v48  ;;  %v2743_v48 = vpack.c.bf16 %v2075_v60, %v2075_v60 }
 0xe44   :  { %v2601_v57 = vmul.f32 1.442695, %v2594_v49 }
 0xe46   :  { %4675 = vpow2.f32 %v2601_v57 }
 0xe4b   :  { %v4670_v52 = vpop.eup %4669 }
 0xe4c   :  { %v2603_v37 = vsel %vm844_vm2, %v4670_v52, 0.0 }
 0xe4d   :  { %2604 = vadd.xlane.f32.xlu0 %v2603_v37 }
 0xe4f   :  { %v4672_v31 = vpop.eup %4671 }
 0xe50   :  { %v4674_v44 = vpop.eup %4673  ;;  %v2609_v27 = vsel %vm844_vm2, %v4672_v31, 0.0 }
 0xe51   :  { %2610 = vadd.xlane.f32.xlu0 %v2609_v27  ;;  %v2606_v34 = vsel %vm844_vm2, %v4674_v44, 0.0 }
 0xe52   :  { %2607 = vadd.xlane.f32.xlu1 %v2606_v34  ;;  %v4026_v34 = vld [vmem:[%s5789_s5 + $0x5] ss:$0 sm:$0xff] }
 0xe53   :  { %v4676_v39 = vpop.eup %4675 }
 0xe54   :  { %v2612_v29 = vsel %vm844_vm2, %v4676_v39, 0.0 }
 0xe56   :  { %2613 = vadd.xlane.f32.xlu1 %v2612_v29 }
 0xed6   :  { %v2605_v12 = vpop.xlane.xlu0 %2604 }
 0xed7   :  { %4677 = vrcp.f32 %v2605_v12 }
 0xeda   :  { %v2611_v23 = vpop.xlane.xlu0 %2610 }
 0xedb   :  { %4679 = vrcp.f32 %v2611_v23  ;;  %v2608_v62 = vpop.xlane.xlu1 %2607 }
 0xedc   :  { %4681 = vrcp.f32 %v2608_v62 }
 0xedf   :  { %v2614_v40 = vpop.xlane.xlu1 %2613 }
 0xee0   :  { %4683 = vrcp.f32 %v2614_v40 }
 0xee4   :  { %v4678_v58 = vpop.eup %4677 }
 0xee5   :  { %v2619_v0 = vmul.f32 %v4678_v58, %v2605_v12 }
 0xee7   :  { %v2623_v45 = vsub.f32 2.0, %v2619_v0 }
 0xee8   :  { %v4680_v28 = vpop.eup %4679 }
 0xee9   :  { %v4682_v33 = vpop.eup %4681  ;;  %v2621_v11 = vmul.f32 %v4680_v28, %v2611_v23  ;;  %v2627_v35 = vmul.f32 %v4678_v58, %v2623_v45  ;;  %v2749_v23 = vsel %vm844_vm2, %v2743_v48, 0  ;;  %v5471_v58 = vadd.f32 %v3936_v20, %v5025_v6 }
 0xeea   :  { %v2620_v56 = vmul.f32 %v4682_v33, %v2608_v62  ;;  %v2744_v62 = vpack.c.bf16 %v2078_v61, %v2078_v61  ;;  %v5483_v6 = vadd.f32 %v5018_v3, %v3936_v20 }
 0xeeb   :  { %v2625_v46 = vsub.f32 2.0, %v2621_v11  ;;  %v2631_v49 = vmul.f32 %v4670_v52, %v2627_v35 }
 0xeec   :  { %v2624_v13 = vsub.f32 2.0, %v2620_v56 }
 0xeed   :  { %v4684_v36 = vpop.eup %4683  ;;  %v2629_v57 = vmul.f32 %v4680_v28, %v2625_v46  ;;  %v2796_v28 = vsel %vm844_vm2, %v2744_v62, 0 }
 0xeee   :  { %v2628_v47 = vmul.f32 %v4682_v33, %v2624_v13  ;;  %v2622_v38 = vmul.f32 %v4684_v36, %v2614_v40  ;;  %v2339_v40 = vadd.f32 %v4026_v34, %v5412_v8 }
 0xeef   :  { %v2633_v25 = vmul.f32 %v4672_v31, %v2629_v57  ;;  %v2342_v31 = vadd.f32 %v4026_v34, %v5417_v7 }
 0xef0   :  { %v2632_v37 = vmul.f32 %v4674_v44, %v2628_v47  ;;  %v2626_v27 = vsub.f32 2.0, %v2622_v38  ;;  %v5468_v44 = vadd.f32 %v3936_v20, %v5014_v1  ;;  %v2901_v8 = vpack.c.bf16 %v2339_v40, %v2339_v40 }
 0xef1   :  { %v5480_v1 = vadd.f32 %v5010_v63, %v3936_v20  ;;  %v2902_v7 = vpack.c.bf16 %v2342_v31, %v2342_v31 }
 0xef2   :  { %v2635_v29 = vpack.c.bf16 %v2632_v37, %v2631_v49  ;;  %v2630_v12 = vmul.f32 %v4684_v36, %v2626_v27  ;;  %v2907_v5 = vsel %vm1278_vm3, %v2901_v8, 0 }
 0xef3   :  { %v2742_v63 = vpack.c.bf16 %v5483_v6, %v5480_v1  ;;  %v2954_v3 = vsel %vm1278_vm3, %v2902_v7, 0 }
 0xef4   :  { %v2634_v52 = vmul.f32 %v4676_v39, %v2630_v12  ;;  %4493 = vmatmul.mubr.msk.bf16.vlgmr.msra.gmra.mxu0 %vm844_vm2, %v2635_v29  ;;  %v2741_v39 = vpack.c.bf16 %v5471_v58, %v5468_v44 }
 0xef5   :  { %4503 = vmatpush3.bf16.xpose.msra.mxu0 %v2749_v23  ;;  %4504 = vmatprep.mubr.msk.bf16.mxu0 %vm4758_vm1, %v4757_v18 }
 0xef6   :  { %v2636_v0 = vpack.c.bf16 %v2634_v52, %v2633_v25  ;;  %4514 = vmatprep.subr.bf16.mxu0 %v4757_v18 }
 0xef8   :  { %4499 = vmatmul.mubr.msk.bf16.vlgmr.msra.gmra.mxu1 %vm844_vm2, %v2636_v0 }
 0xef9   :  { %4509 = vmatpush3.bf16.xpose.msra.mxu1 %v2796_v28  ;;  %4510 = vmatprep.mubr.msk.bf16.mxu1 %vm4758_vm1, %v4757_v18 }
 0xefa   :  { %4520 = vmatprep.subr.bf16.mxu1 %v4757_v18 }
 0xefc   :  { %4505 = vmatmul.mubr.msk.bf16.vlgmr.msra.gmra.mxu0 %vm844_vm2, %v2741_v39 }
 0xefd   :  { %4515 = vmatpush3.bf16.msra.mxu0 %v2907_v5  ;;  %4516 = vmatprep.mubr.msk.bf16.mxu0 %vm4758_vm1, %v4757_v18 }
 0xf00   :  { %4511 = vmatmul.mubr.msk.bf16.vlgmr.msra.gmra.mxu1 %vm844_vm2, %v2742_v63 }
 0xf01   :  { %4521 = vmatpush3.bf16.msra.mxu1 %v2954_v3  ;;  %4522 = vmatprep.mubr.msk.bf16.mxu1 %vm4758_vm1, %v4757_v18 }
 0xfb4   :  { %v5498_v45 = vpop.f32.mrf.mxu0 }
 0xfb6   :  { %v4494_v33 = vpop.f32.mrf.mxu0 }
 0xfb8   :  { %v5500_v11 = vpop.f32.mrf.mxu0  ;;  %v5502_v56 = vpop.f32.mrf.mxu1 }
 0xfba   :  { %v4495_v60 = vpop.f32.mrf.mxu0  ;;  %v4500_v35 = vpop.f32.mrf.mxu1 }
 0xfbc   :  { %v5504_v46 = vpop.f32.mrf.mxu1  ;;  %v2785_v13 = vpop.f32.mrf.mxu0 }
 0xfbd   :  { %v2839_v36 = vmul.f32 0.17677669, %v2785_v13 }
 0xfbe   :  { %v4501_v47 = vpop.f32.mrf.mxu1  ;;  %v4506_v38 = vpop.f32.mrf.mxu0 }
 0xfbf   :  { %v2843_v48 = vsel %vm844_vm2, %v2839_v36, -inf }
 0xfc0   :  { %v2832_v61 = vpop.f32.mrf.mxu1  ;;  %2844 = vmax.xlane.f32.xlu0 %v2843_v48  ;;  %v2788_v49 = vpop.f32.mrf.mxu0 }
 0xfc1   :  { %v2841_v57 = vmul.f32 0.17677669, %v2832_v61  ;;  %v2840_v37 = vmul.f32 0.17677669, %v2788_v49  ;;  %v4052_v49 = vld [vmem:[%s5790_s6 + $0x10] sm:$0xf] }
 0xfc2   :  { %v4507_v27 = vpop.f32.mrf.mxu0  ;;  %v4512_v34 = vpop.f32.mrf.mxu1  ;;  %4599 = vmatprep.subr.msk.bf16.mxu1 %vm1278_vm3, %v4052_v49 }
 0xfc3   :  { %v2849_v29 = vsel %vm844_vm2, %v2841_v57, -inf  ;;  %v2846_v12 = vsel %vm844_vm2, %v2840_v37, -inf }
 0xfc4   :  { %v2835_v20 = vpop.f32.mrf.mxu1  ;;  %2850 = vmax.xlane.f32.xlu0 %v2849_v29  ;;  %2847 = vmax.xlane.f32.xlu1 %v2846_v12 }
 0xfc5   :  { %v2842_v23 = vmul.f32 0.17677669, %v2835_v20 }
 0xfc6   :  { %v4513_v62 = vpop.f32.mrf.mxu1 }
 0xfc7   :  { %v2852_v40 = vsel %vm844_vm2, %v2842_v23, -inf }
 0xfc8   :  { %2853 = vmax.xlane.f32.xlu1 %v2852_v40 }
0x1049   :  { %v2845_v25 = vpop.xlane.xlu0 %2844 }
0x104a   :  { %v2855_v52 = vsub.f32 %v2839_v36, %v2845_v25 }
0x104c   :  { %v2859_v0 = vmul.f32 1.442695, %v2855_v52 }
0x104d   :  { %v2851_v28 = vpop.xlane.xlu0 %2850  ;;  %v2848_v8 = vpop.xlane.xlu1 %2847 }
0x104e   :  { %4685 = vpow2.f32 %v2859_v0  ;;  %v2857_v31 = vsub.f32 %v2841_v57, %v2851_v28  ;;  %v2856_v39 = vsub.f32 %v2840_v37, %v2848_v8 }
0x1050   :  { %v2863_v5 = vmul.f32 1.442695, %v2857_v31  ;;  %v2861_v7 = vmul.f32 1.442695, %v2856_v39 }
0x1051   :  { %v2854_v63 = vpop.xlane.xlu1 %2853 }
0x1052   :  { %4687 = vpow2.f32 %v2863_v5  ;;  %v2858_v3 = vsub.f32 %v2842_v23, %v2854_v63 }
0x1053   :  { %4689 = vpow2.f32 %v2861_v7 }
0x1054   :  { %v2865_v33 = vmul.f32 1.442695, %v2858_v3 }
0x1056   :  { %4691 = vpow2.f32 %v2865_v33 }
0x105b   :  { %v4686_v60 = vpop.eup %4685 }
0x105c   :  { %v2867_v35 = vsel %vm844_vm2, %v4686_v60, 0.0 }
0x105d   :  { %2868 = vadd.xlane.f32.xlu0 %v2867_v35 }
0x105f   :  { %v4688_v13 = vpop.eup %4687 }
0x1060   :  { %v4690_v36 = vpop.eup %4689  ;;  %v2873_v47 = vsel %vm844_vm2, %v4688_v13, 0.0 }
0x1061   :  { %2874 = vadd.xlane.f32.xlu0 %v2873_v47  ;;  %v2870_v38 = vsel %vm844_vm2, %v4690_v36, 0.0  ;;  %v5520_v47 = vadd.f32 %v5500_v11, %v5376_v51  ;;  %v5536_v51 = vadd.f32 %v5504_v46, %v5389_v2  ;;  %v4733_v2 = vld [vmem:[%s5787_s3 + $0xa] ss:$0 sm:$0xff] }
0x1062   :  { %2871 = vadd.xlane.f32.xlu1 %v2870_v38 }
0x1063   :  { %v4692_v48 = vpop.eup %4691 }
0x1064   :  { %v2876_v61 = vsel %vm844_vm2, %v4692_v48, 0.0 }
0x1066   :  { %2877 = vadd.xlane.f32.xlu1 %v2876_v61 }
0x10e6   :  { %v2869_v57 = vpop.xlane.xlu0 %2868 }
0x10e7   :  { %4693 = vrcp.f32 %v2869_v57 }
0x10ea   :  { %v2875_v37 = vpop.xlane.xlu0 %2874 }
0x10eb   :  { %4695 = vrcp.f32 %v2875_v37  ;;  %v2872_v27 = vpop.xlane.xlu1 %2871 }
0x10ec   :  { %4697 = vrcp.f32 %v2872_v27 }
0x10ef   :  { %v2878_v34 = vpop.xlane.xlu1 %2877 }
0x10f0   :  { %4699 = vrcp.f32 %v2878_v34 }
0x10f4   :  { %v4694_v29 = vpop.eup %4693 }
0x10f5   :  { %v2883_v12 = vmul.f32 %v4694_v29, %v2869_v57  ;;  %v5525_v57 = vadd.f32 %v5498_v45, %v5373_v53  ;;  %v5541_v45 = vadd.f32 %v5502_v56, %v5386_v59  ;;  %v5555_v59 = vadd.f32 %v4733_v2, %v5020_v4  ;;  %v4057_v4 = vld [vmem:[%s5790_s6 + $0x14] sm:$0xf] }
0x10f6   :  { %v5558_v56 = vadd.f32 %v4733_v2, %v5038_v19  ;;  %4598 = vmatprep.subr.msk.bf16.mxu0 %vm1278_vm3, %v4057_v4  ;;  %v3012_v19 = vsel %vm1278_vm3, %v4057_v4, 0 }
0x10f7   :  { %v2887_v23 = vsub.f32 2.0, %v2883_v12  ;;  %v2738_v11 = vpack.c.bf16 %v5536_v51, %v5541_v45 }
0x10f8   :  { %v4696_v20 = vpop.eup %4695 }
0x10f9   :  { %v4698_v62 = vpop.eup %4697  ;;  %v2885_v40 = vmul.f32 %v4696_v20, %v2875_v37  ;;  %v2891_v52 = vmul.f32 %v4694_v29, %v2887_v23 }
0x10fa   :  { %v2884_v25 = vmul.f32 %v4698_v62, %v2872_v27  ;;  %v2144_v27 = vadd.f32 %v5370_v43, %v5399_v54  ;;  %v2408_v54 = vadd.f32 %v5423_v32, %v5438_v16  ;;  %v3122_v32 = vpack.c.bf16 %v5558_v56, %v5555_v59 }
0x10fb   :  { %v2889_v0 = vsub.f32 2.0, %v2885_v40  ;;  %v2895_v5 = vmul.f32 %v4686_v60, %v2891_v52  ;;  %v3070_v60 = vsel %vm1278_vm3, %v4052_v49, 0 }
0x10fc   :  { %v2888_v28 = vsub.f32 2.0, %v2884_v25  ;;  %v3124_v53 = vpack.c.bf16 %v2144_v27, %v2144_v27  ;;  %v3282_v46 = vpack.c.bf16 %v2408_v54, %v2408_v54  ;;  %v3123_v25 = vpack.c.bf16 %v5383_v42, %v5383_v42 }
0x10fd   :  { %v4700_v8 = vpop.eup %4699  ;;  %v2893_v7 = vmul.f32 %v4696_v20, %v2889_v0 }
0x10fe   :  { %v2892_v31 = vmul.f32 %v4698_v62, %v2888_v28  ;;  %v2886_v39 = vmul.f32 %v4700_v8, %v2878_v34  ;;  %v3176_v43 = vsel %vm844_vm2, %v3124_v53, 0  ;;  %v3334_v16 = vsel %vm1278_vm3, %v3282_v46, 0 }
0x10ff   :  { %v2897_v38 = vmul.f32 %v4688_v13, %v2893_v7 }
0x1100   :  { %v2896_v63 = vmul.f32 %v4690_v36, %v2892_v31  ;;  %v2890_v3 = vsub.f32 2.0, %v2886_v39  ;;  %v2737_v36 = vpack.c.bf16 %v5520_v47, %v5525_v57  ;;  %v3281_v31 = vpack.c.bf16 %v5430_v9, %v5430_v9 }
0x1102   :  { %v2899_v33 = vpack.c.bf16 %v2896_v63, %v2895_v5  ;;  %v2894_v35 = vmul.f32 %v4700_v8, %v2890_v3  ;;  %v3129_v8 = vsel %vm844_vm2, %v3123_v25, 0  ;;  %v3287_v63 = vsel %vm1278_vm3, %v3281_v31, 0 }
0x1104   :  { %v2898_v61 = vmul.f32 %v4692_v48, %v2894_v35  ;;  %4517 = vmatmul.mubr.msk.bf16.vlgmr.msra.gmra.mxu0 %vm844_vm2, %v2899_v33 }
0x1105   :  { %4527 = vmatpush3.bf16.msra.mxu0 %v3012_v19 }
0x1106   :  { %v2900_v37 = vpack.c.bf16 %v2898_v61, %v2897_v38  ;;  %4538 = vmatprep.subr.bf16.mxu0 %v4757_v18 }
0x1108   :  { %4523 = vmatmul.mubr.msk.bf16.vlgmr.msra.gmra.mxu1 %vm844_vm2, %v2900_v37 }
0x1109   :  { %4534 = vmatprep.mubr.msk.bf16.mxu1 %vm844_vm2, %v2737_v36  ;;  %4533 = vmatpush3.bf16.msra.mxu1 %v3070_v60 }
0x110a   :  { %4544 = vmatprep.subr.bf16.mxu1 %v4757_v18 }
0x1110   :  { %4535 = vmatmul.mubr.msk.bf16.vlgmr.msra.gmra.mxu1 %vm844_vm2, %v2738_v11 }
0x1111   :  { %4545 = vmatpush3.bf16.xpose.msra.mxu1 %v3176_v43  ;;  %4546 = vmatprep.mubr.msk.bf16.mxu1 %vm4758_vm1, %v4757_v18 }
0x1112   :  { %4556 = vmatprep.subr.bf16.mxu1 %v4757_v18 }
0x1118   :  { %4547 = vmatmul.mubr.msk.bf16.vlgmr.msra.gmra.mxu1 %vm844_vm2, %v3122_v32 }
0x1119   :  { %4557 = vmatpush3.bf16.msra.mxu1 %v3334_v16  ;;  %4558 = vmatprep.mubr.msk.bf16.mxu1 %vm4758_vm1, %v4757_v18 }
0x111a   :  { %4568 = vmatprep.subr.bf16.mxu1 %v4757_v18 }
0x11c4   :  { %v2943_v13 = vpop.f32.mrf.mxu0 }
0x11c5   :  { %v5575_v29 = vadd.f32 %v2943_v13, %v5468_v44 }
0x11c6   :  { %v4518_v48 = vpop.f32.mrf.mxu0 }
0x11c8   :  { %v2946_v49 = vpop.f32.mrf.mxu0  ;;  %v2990_v34 = vpop.f32.mrf.mxu1 }
0x11c9   :  { %v5578_v12 = vadd.f32 %v2946_v49, %v5471_v58  ;;  %v5585_v52 = vadd.f32 %v2990_v34, %v5480_v1  ;;  %v5602_v1 = vadd.f32 %v4733_v2, %v5042_v26 }
0x11ca   :  { %v4519_v20 = vpop.f32.mrf.mxu0  ;;  %v4524_v23 = vpop.f32.mrf.mxu1 }
0x11cb   :  { %v3001_v62 = vpack.c.bf16 %v5578_v12, %v5575_v29  ;;  %v3121_v5 = vpack.c.bf16 %v5602_v1, %v5030_v10 }
0x11cc   :  { %v2993_v40 = vpop.f32.mrf.mxu1 }
0x11cd   :  { %v5588_v0 = vadd.f32 %v2993_v40, %v5483_v6  ;;  %4528 = vmatprep.mubr.msk.bf16.mxu0 %vm844_vm2, %v3001_v62 }
0x11ce   :  { %v4525_v44 = vpop.f32.mrf.mxu1 }
0x11cf   :  { %v3002_v58 = vpack.c.bf16 %v5588_v0, %v5585_v52 }
0x11d0   :  { %v5593_v28 = vpop.f32.mrf.mxu1 }
0x11d1   :  { %4529 = vmatmul.mubr.msk.bf16.vlgmr.msra.gmra.mxu0 %vm844_vm2, %v3002_v58 }
0x11d2   :  { %4539 = vmatpush3.bf16.xpose.msra.mxu0 %v3129_v8  ;;  %v5597_v42 = vpop.f32.mrf.mxu1  ;;  %4540 = vmatprep.mubr.msk.bf16.mxu0 %vm4758_vm1, %v4757_v18 }
0x11d3   :  { %4550 = vmatprep.subr.bf16.mxu0 %v4757_v18 }
0x11d4   :  { %v5605_v6 = vpop.f32.mrf.mxu1 }
0x11d6   :  { %v5609_v39 = vpop.f32.mrf.mxu1 }
0x11d8   :  { %v3212_v7 = vpop.f32.mrf.mxu1 }
0x11d9   :  { %4541 = vmatmul.mubr.msk.bf16.vlgmr.msra.gmra.mxu0 %vm844_vm2, %v3121_v5  ;;  %v3221_v27 = vmul.f32 0.17677669, %v3212_v7 }
0x11da   :  { %4551 = vmatpush3.bf16.msra.mxu0 %v3287_v63  ;;  %v4548_v26 = vpop.f32.mrf.mxu1  ;;  %4552 = vmatprep.mubr.msk.bf16.mxu0 %vm4758_vm1, %v4757_v18 }
0x11db   :  { %v3229_v46 = vsel %vm844_vm2, %v3221_v27, -inf }
0x11dc   :  { %v3215_v3 = vpop.f32.mrf.mxu1 }
0x11dd   :  { %v3222_v2 = vmul.f32 0.17677669, %v3215_v3 }
0x11de   :  { %v4549_v33 = vpop.f32.mrf.mxu1 }
0x11df   :  { %v3232_v16 = vsel %vm844_vm2, %v3222_v2, -inf }
0x1291   :  { %v5617_v35 = vpop.f32.mrf.mxu0 }
0x1293   :  { %v5619_v9 = vpop.f32.mrf.mxu0 }
0x1295   :  { %v5621_v38 = vpop.f32.mrf.mxu0 }
0x1297   :  { %v5623_v61 = vpop.f32.mrf.mxu0 }
0x1299   :  { %v3165_v37 = vpop.f32.mrf.mxu0 }
0x129a   :  { %v3219_v60 = vmul.f32 0.17677669, %v3165_v37 }
0x129b   :  { %v4542_v36 = vpop.f32.mrf.mxu0 }
0x129c   :  { %v3223_v53 = vsel %vm844_vm2, %v3219_v60, -inf }
0x129d   :  { %3224 = vmax.xlane.f32.xlu0 %v3223_v53  ;;  %v3168_v11 = vpop.f32.mrf.mxu0 }
0x129e   :  { %v3220_v43 = vmul.f32 0.17677669, %v3168_v11 }
0x129f   :  { %v4543_v54 = vpop.f32.mrf.mxu0 }
0x12a0   :  { %v3226_v32 = vsel %vm844_vm2, %v3220_v43, -inf }
0x12a1   :  { %3230 = vmax.xlane.f32.xlu0 %v3229_v46  ;;  %3227 = vmax.xlane.f32.xlu1 %v3226_v32 }
0x12a5   :  { %3233 = vmax.xlane.f32.xlu1 %v3232_v16 }
0x1326   :  { %v3225_v4 = vpop.xlane.xlu0 %3224 }
0x1327   :  { %v3235_v19 = vsub.f32 %v3219_v60, %v3225_v4 }
0x1329   :  { %v3239_v13 = vmul.f32 1.442695, %v3235_v19 }
0x132a   :  { %v3231_v48 = vpop.xlane.xlu0 %3230  ;;  %v3228_v49 = vpop.xlane.xlu1 %3227 }
0x132b   :  { %4701 = vpow2.f32 %v3239_v13  ;;  %v3237_v34 = vsub.f32 %v3221_v27, %v3231_v48  ;;  %v3236_v20 = vsub.f32 %v3220_v43, %v3228_v49  ;;  %v2207_v49 = vadd.f32 %v5397_v21, %v5379_v30  ;;  %v4734_v30 = vld [vmem:[%s5787_s3 + $0xb] ss:$0 sm:$0xff] }
0x132c   :  { %v5646_v21 = vadd.f32 %v4734_v30, %v5034_v15  ;;  %v4066_v15 = vld [vmem:[%s5790_s6 + $0x18] sm:$0xf] }
0x132d   :  { %v3243_v23 = vmul.f32 1.442695, %v3237_v34  ;;  %v3241_v62 = vmul.f32 1.442695, %v3236_v20  ;;  %4600 = vmatprep.subr.msk.bf16.mxu0 %vm1278_vm3, %v4066_v15 }
0x132e   :  { %v3234_v40 = vpop.xlane.xlu1 %3233 }
0x132f   :  { %4703 = vpow2.f32 %v3243_v23  ;;  %v3238_v25 = vsub.f32 %v3222_v2, %v3234_v40 }
0x1330   :  { %4705 = vpow2.f32 %v3241_v62 }
0x1331   :  { %v3245_v44 = vmul.f32 1.442695, %v3238_v25 }
0x1333   :  { %4707 = vpow2.f32 %v3245_v44  ;;  %v3449_v44 = vpack.c.bf16 %v2207_v49, %v2207_v49 }
0x1338   :  { %v4702_v58 = vpop.eup %4701 }
0x1339   :  { %v3247_v8 = vsel %vm844_vm2, %v4702_v58, 0.0 }
0x133a   :  { %3248 = vadd.xlane.f32.xlu0 %v3247_v8 }
0x133c   :  { %v4704_v31 = vpop.eup %4703 }
0x133d   :  { %v4706_v5 = vpop.eup %4705  ;;  %v3253_v7 = vsel %vm844_vm2, %v4704_v31, 0.0 }
0x133e   :  { %3254 = vadd.xlane.f32.xlu0 %v3253_v7  ;;  %v3250_v63 = vsel %vm844_vm2, %v4706_v5, 0.0 }
0x133f   :  { %3251 = vadd.xlane.f32.xlu1 %v3250_v63 }
0x1340   :  { %v4708_v26 = vpop.eup %4707 }
0x1341   :  { %v3256_v3 = vsel %vm844_vm2, %v4708_v26, 0.0 }
0x1343   :  { %3257 = vadd.xlane.f32.xlu1 %v3256_v3  ;;  %v3455_v3 = vsel %vm844_vm2, %v3449_v44, 0 }
0x13c3   :  { %v3249_v33 = vpop.xlane.xlu0 %3248 }
0x13c4   :  { %4709 = vrcp.f32 %v3249_v33 }
0x13c7   :  { %v3255_v37 = vpop.xlane.xlu0 %3254 }
0x13c8   :  { %4711 = vrcp.f32 %v3255_v37  ;;  %v3252_v60 = vpop.xlane.xlu1 %3251 }
0x13c9   :  { %4713 = vrcp.f32 %v3252_v60 }
0x13cc   :  { %v3258_v36 = vpop.xlane.xlu1 %3257 }
0x13cd   :  { %4715 = vrcp.f32 %v3258_v36 }
0x13d1   :  { %v4710_v27 = vpop.eup %4709 }
0x13d2   :  { %v3263_v53 = vmul.f32 %v4710_v27, %v3249_v33  ;;  %v2471_v33 = vadd.f32 %v5436_v24, %v5426_v55 }
0x13d4   :  { %v3267_v43 = vsub.f32 2.0, %v3263_v53 }
0x13d5   :  { %v4712_v11 = vpop.eup %4711 }
0x13d6   :  { %v4714_v54 = vpop.eup %4713  ;;  %v3265_v2 = vmul.f32 %v4712_v11, %v3255_v37  ;;  %v3271_v32 = vmul.f32 %v4710_v27, %v3267_v43 }
0x13d7   :  { %v3264_v46 = vmul.f32 %v4714_v54, %v3252_v60 }
0x13d8   :  { %v3269_v16 = vsub.f32 2.0, %v3265_v2  ;;  %v3275_v34 = vmul.f32 %v4702_v58, %v3271_v32  ;;  %v5649_v58 = vadd.f32 %v4734_v30, %v5040_v22  ;;  %v3392_v22 = vsel %vm1278_vm3, %v4066_v15, 0 }
0x13d9   :  { %v3268_v4 = vsub.f32 2.0, %v3264_v46  ;;  %v3450_v2 = vpack.c.bf16 %v5402_v41, %v5402_v41 }
0x13da   :  { %v4716_v19 = vpop.eup %4715  ;;  %v3273_v20 = vmul.f32 %v4712_v11, %v3269_v16  ;;  %v3447_v55 = vpack.c.bf16 %v5649_v58, %v5646_v21 }
0x13db   :  { %v3272_v13 = vmul.f32 %v4714_v54, %v3268_v4  ;;  %v3266_v48 = vmul.f32 %v4716_v19, %v3258_v36  ;;  %v3502_v4 = vsel %vm844_vm2, %v3450_v2, 0 }
0x13dc   :  { %v3277_v8 = vmul.f32 %v4704_v31, %v3273_v20  ;;  %v3607_v31 = vpack.c.bf16 %v2471_v33, %v2471_v33 }
0x13dd   :  { %v3276_v23 = vmul.f32 %v4706_v5, %v3272_v13  ;;  %v3270_v62 = vsub.f32 2.0, %v3266_v48  ;;  %v3608_v13 = vpack.c.bf16 %v5441_v50, %v5441_v50 }
0x13de   :  { %v3613_v24 = vsel %vm1278_vm3, %v3607_v31, 0 }
0x13df   :  { %v3279_v40 = vpack.c.bf16 %v3276_v23, %v3275_v34  ;;  %v3274_v25 = vmul.f32 %v4716_v19, %v3270_v62  ;;  %v3448_v34 = vpack.c.bf16 %v5036_v17, %v5032_v14  ;;  %v3660_v23 = vsel %vm1278_vm3, %v3608_v13, 0 }
0x13e1   :  { %v3278_v7 = vmul.f32 %v4708_v26, %v3274_v25  ;;  %4553 = vmatmul.mubr.msk.bf16.vlgmr.msra.gmra.mxu0 %vm844_vm2, %v3279_v40 }
0x13e2   :  { %4563 = vmatpush3.bf16.msra.mxu0 %v3392_v22 }
0x13e3   :  { %v3280_v63 = vpack.c.bf16 %v3278_v7, %v3277_v8  ;;  %4574 = vmatprep.subr.bf16.mxu0 %v4757_v18  ;;  %v3115_v8 = vadd.f32 %v5593_v28, %v5617_v35 }
0x13e5   :  { %4559 = vmatmul.mubr.msk.bf16.vlgmr.msra.gmra.mxu1 %vm844_vm2, %v3280_v63 }
0x13e6   :  { %4569 = vmatpush3.bf16.xpose.msra.mxu1 %v3455_v3  ;;  %4570 = vmatprep.mubr.msk.bf16.mxu1 %vm4758_vm1, %v4757_v18  ;;  %v3107_v3 = vadd.f32 %v5597_v42, %v5619_v9 }
0x13e7   :  { %4580 = vmatprep.subr.bf16.mxu1 %v4757_v18 }
0x13ed   :  { %4571 = vmatmul.mubr.msk.bf16.vlgmr.msra.gmra.mxu1 %vm844_vm2, %v3447_v55 }
0x13ee   :  { %4581 = vmatpush3.bf16.msra.mxu1 %v3613_v24  ;;  %4582 = vmatprep.mubr.msk.bf16.mxu1 %vm4758_vm1, %v4757_v18  ;;  %v3110_v24 = vadd.f32 %v5609_v39, %v5623_v61 }
0x14a1   :  { %v3323_v5 = vpop.f32.mrf.mxu0 }
0x14a2   :  { %v5665_v36 = vadd.f32 %v3323_v5, %v5030_v10 }
0x14a3   :  { %v4554_v26 = vpop.f32.mrf.mxu0 }
0x14a5   :  { %v3326_v37 = vpop.f32.mrf.mxu0  ;;  %v3370_v60 = vpop.f32.mrf.mxu1 }
0x14a6   :  { %v5668_v27 = vadd.f32 %v3326_v37, %v5602_v1  ;;  %v5675_v46 = vadd.f32 %v3370_v60, %v5555_v59 }
0x14a7   :  { %v4555_v53 = vpop.f32.mrf.mxu0  ;;  %v4560_v11 = vpop.f32.mrf.mxu1 }
0x14a8   :  { %v3381_v43 = vpack.c.bf16 %v5668_v27, %v5665_v36 }
0x14a9   :  { %v3373_v54 = vpop.f32.mrf.mxu1 }
0x14aa   :  { %v5678_v32 = vadd.f32 %v3373_v54, %v5558_v56  ;;  %4564 = vmatprep.mubr.msk.bf16.mxu0 %vm844_vm2, %v3381_v43 }
0x14ab   :  { %v4561_v10 = vpop.f32.mrf.mxu1 }
0x14ac   :  { %v3382_v1 = vpack.c.bf16 %v5678_v32, %v5675_v46 }
0x14ad   :  { %v3491_v16 = vpop.f32.mrf.mxu1 }
0x14ae   :  { %v3545_v19 = vmul.f32 0.17677669, %v3491_v16  ;;  %4565 = vmatmul.mubr.msk.bf16.vlgmr.msra.gmra.mxu0 %vm844_vm2, %v3382_v1 }
0x14af   :  { %4575 = vmatpush3.bf16.xpose.msra.mxu0 %v3502_v4  ;;  %v4572_v41 = vpop.f32.mrf.mxu1  ;;  %4576 = vmatprep.mubr.msk.bf16.mxu0 %vm4758_vm1, %v4757_v18 }
0x14b0   :  { %v3549_v59 = vsel %vm844_vm2, %v3545_v19, -inf  ;;  %4586 = vmatprep.subr.bf16.mxu0 %v4757_v18 }
0x14b1   :  { %3550 = vmax.xlane.f32.xlu0 %v3549_v59  ;;  %v3494_v56 = vpop.f32.mrf.mxu1 }
0x14b2   :  { %v3546_v48 = vmul.f32 0.17677669, %v3494_v56 }
0x14b3   :  { %v4573_v49 = vpop.f32.mrf.mxu1 }
0x14b4   :  { %v3552_v20 = vsel %vm844_vm2, %v3546_v48, -inf }
0x14b5   :  { %3553 = vmax.xlane.f32.xlu1 %v3552_v20 }
0x14b6   :  { %4577 = vmatmul.mubr.msk.bf16.vlgmr.msra.gmra.mxu0 %vm844_vm2, %v3448_v34 }
0x14b7   :  { %4587 = vmatpush3.bf16.msra.mxu0 %v3660_v23  ;;  %4588 = vmatprep.mubr.msk.bf16.mxu0 %vm4758_vm1, %v4757_v18  ;;  %v3118_v18 = vadd.f32 %v5605_v6, %v5621_v38 }
0x153a   :  { %v3551_v62 = vpop.xlane.xlu0 %3550 }
0x153b   :  { %v3561_v40 = vsub.f32 %v3545_v19, %v3551_v62 }
0x153d   :  { %v3565_v50 = vmul.f32 1.442695, %v3561_v40 }
0x153e   :  { %v3554_v25 = vpop.xlane.xlu1 %3553 }
0x153f   :  { %v3562_v44 = vsub.f32 %v3546_v48, %v3554_v25  ;;  %4717 = vpow2.f32 %v3565_v50 }
0x1541   :  { %v3567_v7 = vmul.f32 1.442695, %v3562_v44 }
0x1543   :  { %4719 = vpow2.f32 %v3567_v7 }
0x154c   :  { %v4718_v26 = vpop.eup %4717 }
0x154d   :  { %v3573_v60 = vsel %vm844_vm2, %v4718_v26, 0.0 }
0x1550   :  { %v4720_v39 = vpop.eup %4719 }
0x1551   :  { %v3576_v61 = vsel %vm844_vm2, %v4720_v39, 0.0 }
0x156e   :  { %v4566_v63 = vpop.f32.mrf.mxu0 }
0x156f   :  { %v5702_v33 = vadd.f32 %v4566_v63, %v3115_v8 }
0x1570   :  { %v3428_v30 = vpop.f32.mrf.mxu0 }
0x1571   :  { %v5706_v31 = vadd.f32 %v3428_v30, %v3107_v3 }
0x1572   :  { %v4567_v55 = vpop.f32.mrf.mxu0 }
0x1573   :  { %v5710_v28 = vadd.f32 %v4567_v55, %v3118_v18 }
0x1574   :  { %v3431_v35 = vpop.f32.mrf.mxu0 }
0x1575   :  { %v5712_v15 = vadd.f32 %v3431_v35, %v3110_v24 }
0x1576   :  { %v3538_v22 = vpop.f32.mrf.mxu0 }
0x1577   :  { %v3547_v42 = vmul.f32 0.17677669, %v3538_v22 }
0x1578   :  { %v4578_v9 = vpop.f32.mrf.mxu0 }
0x1579   :  { %v3555_v5 = vsel %vm844_vm2, %v3547_v42, -inf }
0x157a   :  { %3556 = vmax.xlane.f32.xlu0 %v3555_v5  ;;  %v3541_v6 = vpop.f32.mrf.mxu0  ;;  %v4073_v5 = vld [vmem:[%s5790_s6 + $0x1c] sm:$0xf] }
0x157b   :  { %v3548_v38 = vmul.f32 0.17677669, %v3541_v6  ;;  %4601 = vmatprep.subr.msk.bf16.mxu1 %vm1278_vm3, %v4073_v5 }
0x157c   :  { %v4579_v37 = vpop.f32.mrf.mxu0 }
0x157d   :  { %v3558_v53 = vsel %vm844_vm2, %v3548_v38, -inf }
0x157e   :  { %3574 = vadd.xlane.f32.xlu0 %v3573_v60  ;;  %3559 = vmax.xlane.f32.xlu1 %v3558_v53 }
0x1582   :  { %3577 = vadd.xlane.f32.xlu1 %v3576_v61 }
0x1603   :  { %v3557_v11 = vpop.xlane.xlu0 %3556 }
0x1604   :  { %v3563_v43 = vsub.f32 %v3547_v42, %v3557_v11 }
0x1606   :  { %v3569_v54 = vmul.f32 1.442695, %v3563_v43 }
0x1607   :  { %v3575_v2 = vpop.xlane.xlu0 %3574  ;;  %v3560_v10 = vpop.xlane.xlu1 %3559 }
0x1608   :  { %4721 = vpow2.f32 %v3569_v54  ;;  %v3564_v1 = vsub.f32 %v3548_v38, %v3560_v10 }
0x1609   :  { %4723 = vrcp.f32 %v3575_v2 }
0x160a   :  { %v3571_v16 = vmul.f32 1.442695, %v3564_v1 }
0x160b   :  { %v3578_v4 = vpop.xlane.xlu1 %3577 }
0x160c   :  { %4725 = vpow2.f32 %v3571_v16 }
0x160d   :  { %4727 = vrcp.f32 %v3578_v4 }
0x1615   :  { %v4722_v19 = vpop.eup %4721 }
0x1616   :  { %v4724_v41 = vpop.eup %4723  ;;  %v3579_v59 = vsel %vm844_vm2, %v4722_v19, 0.0 }
0x1617   :  { %v3589_v56 = vmul.f32 %v4724_v41, %v3575_v2  ;;  %3580 = vadd.xlane.f32.xlu0 %v3579_v59 }
0x1619   :  { %v4726_v13 = vpop.eup %4725  ;;  %v3593_v48 = vsub.f32 2.0, %v3589_v56 }
0x161a   :  { %v4728_v49 = vpop.eup %4727  ;;  %v3582_v34 = vsel %vm844_vm2, %v4726_v13, 0.0 }
0x161b   :  { %v3590_v20 = vmul.f32 %v4728_v49, %v3578_v4  ;;  %3583 = vadd.xlane.f32.xlu1 %v3582_v34  ;;  %v3597_v23 = vmul.f32 %v4724_v41, %v3593_v48 }
0x161d   :  { %v3594_v62 = vsub.f32 2.0, %v3590_v20  ;;  %v3601_v25 = vmul.f32 %v4718_v26, %v3597_v23 }
0x161f   :  { %v3598_v40 = vmul.f32 %v4728_v49, %v3594_v62 }
0x1621   :  { %v3602_v50 = vmul.f32 %v4720_v39, %v3598_v40 }
0x1623   :  { %v3605_v44 = vpack.c.bf16 %v3602_v50, %v3601_v25 }
0x1625   :  { %4583 = vmatmul.mubr.msk.bf16.vlgmr.msra.gmra.mxu1 %vm844_vm2, %v3605_v44 }
0x162c   :  { %3779 = vrot.lane.b32.xlu1 %v5578_v12, %s4759_s21 }
0x162d   :  { %3777 = vrot.lane.b32.xlu0 %v5575_v29, %s4759_s21 }
0x1630   :  { %3781 = vrot.lane.b32.xlu1 %v5585_v52, %s4759_s21 }
0x1631   :  { %3793 = vrot.lane.b32.xlu0 %v5665_v36, %s4761_s23 }
0x1634   :  { %3783 = vrot.lane.b32.xlu1 %v5588_v0, %s4759_s21 }
0x1635   :  { %3797 = vrot.lane.b32.xlu0 %v5675_v46, %s4761_s23 }
0x1638   :  { %3795 = vrot.lane.b32.xlu1 %v5668_v27, %s4761_s23 }
0x163c   :  { %3799 = vrot.lane.b32.xlu1 %v5678_v32, %s4761_s23 }
0x16a0   :  { %v3581_v12 = vpop.xlane.xlu0 %3580 }
0x16a1   :  { %4729 = vrcp.f32 %v3581_v12 }
0x16a4   :  { %v3584_v29 = vpop.xlane.xlu1 %3583  ;;  %v3778_v11 = vpop.permute.xlu0 %3777 }
0x16a5   :  { %4731 = vrcp.f32 %v3584_v29  ;;  %v3821_v49 = vsel %vm844_vm2, %v5525_v57, %v3778_v11 }
0x16a8   :  { %v3780_v39 = vpop.permute.xlu1 %3779  ;;  %v3794_v54 = vpop.permute.xlu0 %3793 }
0x16ac   :  { %v3782_v61 = vpop.permute.xlu1 %3781  ;;  %v3798_v10 = vpop.permute.xlu0 %3797 }
0x16ae   :  { %v4730_v52 = vpop.eup %4729 }
0x16af   :  { %v3591_v8 = vmul.f32 %v4730_v52, %v3581_v12 }
0x16b0   :  { %v3784_v43 = vpop.permute.xlu1 %3783 }
0x16b1   :  { %v3595_v7 = vsub.f32 2.0, %v3591_v8  ;;  %v3824_v57 = vsel %vm844_vm2, %v5536_v51, %v3784_v43 }
0x16b2   :  { %v4732_v36 = vpop.eup %4731 }
0x16b3   :  { %v3592_v63 = vmul.f32 %v4732_v36, %v3584_v29  ;;  %v3599_v3 = vmul.f32 %v4730_v52, %v3595_v7 }
0x16b4   :  { %v3796_v2 = vpop.permute.xlu1 %3795 }
0x16b5   :  { %v3596_v0 = vsub.f32 2.0, %v3592_v63  ;;  %v3603_v18 = vmul.f32 %v4722_v19, %v3599_v3  ;;  %v3823_v19 = vsel %vm844_vm2, %v5541_v45, %v3782_v61  ;;  %v3822_v63 = vsel %vm844_vm2, %v5520_v47, %v3780_v39 }
0x16b6   :  { %v3827_v20 = vsel %vm52_vm0, %v3823_v19, %v3798_v10 }
0x16b7   :  { %v3600_v30 = vmul.f32 %v4732_v36, %v3596_v0 }
0x16b9   :  { %v3604_v46 = vmul.f32 %v4726_v13, %v3600_v30 }
0x16bb   :  { %v3606_v55 = vpack.c.bf16 %v3604_v46, %v3603_v18 }
0x16bd   :  { %4589 = vmatmul.mubr.msk.bf16.vlgmr.msra.gmra.mxu0 %vm844_vm2, %v3606_v55 }
0x16e5   :  { %v3649_v27 = vpop.f32.mrf.mxu1 }
0x16e6   :  { %v3703_v32 = vadd.f32 %v3649_v27, %v5646_v21  ;;  %v3718_v21 = vsel %vm1278_vm3, %v4073_v5, 0 }
0x16e7   :  { %v4584_v24 = vpop.f32.mrf.mxu1  ;;  %4593 = vmatpush3.bf16.msra.mxu1 %v3718_v21 }
0x16e8   :  { %3809 = vrot.lane.b32.xlu0 %v3703_v32, %s4760_s22 }
0x16e9   :  { %v3652_v35 = vpop.f32.mrf.mxu1 }
0x16ea   :  { %v3704_v22 = vadd.f32 %v3652_v35, %v5649_v58 }
0x16eb   :  { %v4585_v42 = vpop.f32.mrf.mxu1 }
0x16ec   :  { %v3707_v9 = vpack.c.bf16 %v3704_v22, %v3703_v32  ;;  %3811 = vrot.lane.b32.xlu1 %v3704_v22, %s4760_s22 }
0x16ee   :  { %4594 = vmatprep.mubr.msk.bf16.mxu1 %vm844_vm2, %v3707_v9 }
0x175a   :  { %v3810_v1 = vpop.permute.xlu0 %3809 }
0x177d   :  { %v3696_v26 = vpop.f32.mrf.mxu0 }
0x177e   :  { %v3705_v6 = vadd.f32 %v3696_v26, %v5032_v14  ;;  %v3800_v14 = vpop.permute.xlu1 %3799 }
0x177f   :  { %v4590_v38 = vpop.f32.mrf.mxu0  ;;  %v3828_v8 = vsel %vm52_vm0, %v3824_v57, %v3800_v14 }
0x1780   :  { %3813 = vrot.lane.b32.xlu0 %v3705_v6, %s4760_s22 }
0x1781   :  { %v3699_v58 = vpop.f32.mrf.mxu0 }
0x1782   :  { %v3706_v37 = vadd.f32 %v3699_v58, %v5036_v17  ;;  %v4077_v17 = vld [vmem:[%s5791_s7 + $0x1] ss:$0 sm:$0xff]  ;;  %v3812_v59 = vpop.permute.xlu1 %3811  ;;  %s4762_s7 = smov [#allocation2]  }
0x1783   :  { %v4591_v60 = vpop.f32.mrf.mxu0 }
0x1784   :  { %v3708_v53 = vpack.c.bf16 %v3706_v37, %v3705_v6  ;;  %3815 = vrot.lane.b32.xlu1 %v3706_v37, %s4760_s22  ;;  %s3862_s22 = sshll.u32 %s4762_s7, 4  ;;  %s3863_s22 = int_to_ptr.vmem [resolvable:$true] %s3862_s22 }
0x1785   :  { %s4735_s0 = scalar_lea.vmem %s3863_s22, 512  ;;  %p4740_p1 = scmp.lt.s32.totalorder %s3863_s22, %s3863_s22 }
0x1786   :  { %4595 = vmatmul.mubr.msk.bf16.vlgmr.msra.gmra.mxu1 %vm844_vm2, %v3708_v53  ;;  %p4736_p0 = scmp.ne.s32.totalorder %s3863_s22, %s4735_s0  ;;  %p4741_p2 = scmp.lt.s32.totalorder %s4735_s0, %s4735_s0 }
0x1788   :  { %p4742_p3 = por %p4741_p2, %p4740_p1 }
0x178a   :  { %p4743_p4 = pnand %p4742_p3, %p4736_p0 }
0x17f2   :  { %v3814_v56 = vpop.permute.xlu0 %3813 }
0x17f3   :  { %v3831_v45 = vsel %vm1930_vm4, %v3827_v20, %v3814_v56 }
0x17f6   :  { %v3816_v50 = vpop.permute.xlu1 %3815 }
0x17f7   :  { %v3832_v3 = vsel %vm1930_vm4, %v3828_v8, %v3816_v50 }
0x1846   :  { %v4596_v16 = vpop.f32.mrf.mxu1 }
0x1847   :  { %v3771_v4 = vadd.f32 %v4596_v16, %v5702_v33  ;;  %v3825_v33 = vsel %vm52_vm0, %v3821_v49, %v3794_v54 }
0x1848   :  { %v3754_v41 = vpop.f32.mrf.mxu1  ;;  %v3829_v52 = vsel %vm1930_vm4, %v3825_v33, %v3810_v1 }
0x1849   :  { %v3843_v13 = vadd.f32 %v4077_v17, %v3771_v4  ;;  %v3769_v48 = vadd.f32 %v3754_v41, %v5706_v31 }
0x184a   :  { %v4597_v34 = vpop.f32.mrf.mxu1 }
0x184b   :  { %v3847_v23 = vmax.f32 %v3843_v13, 0.0  ;;  %v3841_v62 = vadd.f32 %v4077_v17, %v3769_v48  ;;  %v3772_v40 = vadd.f32 %v4597_v34, %v5710_v28 }
0x184c   :  { %v3757_v25 = vpop.f32.mrf.mxu1 }
0x184d   :  { %v3851_v44 = vadd.f32 %v3847_v23, %v3831_v45  ;;  %v3845_v12 = vmax.f32 %v3841_v62, 0.0  ;;  %v3844_v29 = vadd.f32 %v4077_v17, %v3772_v40  ;;  %v3770_v31 = vadd.f32 %v3757_v25, %v5712_v15 }
0x184e   :  { %v3826_v15 = vsel %vm52_vm0, %v3822_v63, %v3796_v2 }
0x184f   :  { %3855 = vst.msk [vmem:[#allocation2 + $0x10] sm:$0xff] %vm1970_vm5, %v3851_v44  ;;  %v3849_v28 = vadd.f32 %v3845_v12, %v3829_v52  ;;  %v3848_v7 = vmax.f32 %v3844_v29, 0.0  ;;  %v3842_v36 = vadd.f32 %v4077_v17, %v3770_v31  ;;  %v3830_v30 = vsel %vm1930_vm4, %v3826_v15, %v3812_v59 }
0x1851   :  { %3853 = vst.msk [vmem:[#allocation2] sm:$0xff] %vm1970_vm5, %v3849_v28  ;;  %v3852_v51 = vadd.f32 %v3848_v7, %v3832_v3  ;;  %v3846_v0 = vmax.f32 %v3842_v36, 0.0 }
0x1853   :  { %3856 = vst.msk [vmem:[#allocation2 + $0x18] sm:$0xff] %vm1970_vm5, %v3852_v51  ;;  %v3850_v18 = vadd.f32 %v3846_v0, %v3830_v30 }
0x1855   :  { %3854 = vst.msk [vmem:[#allocation2 + $0x8] sm:$0xff] %vm1970_vm5, %v3850_v18 }
0x1856   :  { %4746 = shalt.err (!%p4743_p4)
}
0x1857   :  { %s4763_s1 = smov 128  }
0x1858   :  { %3868 = dma.vmem_to_hbm [thread:$0]  %s3863_s22, 512, %s5792_s8, [#allocation3], %s4763_s1, %s4763_s1, %s4759_s21  }
0x1859   :  { %4755 = dma.done.wait [#allocation3], 512  }
0x185a   :  { %4756 = vsyncadd [#allocation3], 4294966784 }
0x185b   :  { %3872 = vsyncpa [#allocation3], 1 }

</bundles_post_ra>
